<compile_context>
chip_gen: v6e
topology: v6e:2x2x1
jax: 0.10.0
libtpu: 0.0.40
codegen_flags: <defaults>
</compile_context>

<pallas_src>
import jax
import jax.numpy as jnp
from jax.experimental import pallas as pl
from jax.experimental.pallas import tpu as pltpu

# ---------------- synthetic model config ----------------
VOCAB = 64
HIDDEN = 32
N_HEADS = 4
HEAD_DIM = HIDDEN // N_HEADS
INTERMEDIATE = 64
N_LAYERS = 2
MAX_LENGTH = 8            # T  (even)
NUM_GIST = 4              # G  (even, divides MAX_LENGTH)
COMPRESS_RATIO = MAX_LENGTH // NUM_GIST
SEQ = MAX_LENGTH + NUM_GIST
RMS_EPS = 1e-6
ROPE_THETA = 10000.0
NEG_INF = -1e9            # finite: fully-masked rows attend uniformly (benign,
                          # only the never-padded gist rows are read out)

# dot_general dimension numbers (transposes handled inside the MXU contraction)
TN = (((0,), (0,)), ((), ()))   # out[i, j] = sum_k lhs[k, i] * rhs[k, j]
NT = (((1,), (1,)), ((), ()))   # out[i, j] = sum_k lhs[i, k] * rhs[j, k]


# ---------------- fused forward kernel (single grid step, whole batch) ----------------
def _fused_forward_kernel(x_ref, bias_ref, cos_ref, sinlo_ref, sinhi_ref,
                          in_norm_ref, wqkv_ref, wo_ref, post_norm_ref,
                          wgu_ref, wd_ref, final_norm_ref, o_ref):
    H, Dh, I, G, S = HIDDEN, HEAD_DIM, INTERMEDIATE, NUM_GIST, SEQ
    half = Dh // 2
    S_all = x_ref.shape[1]
    n_seq = S_all // S                        # independent sequences folded into the slab

    h = x_ref[...]                            # (H, S_all) f32 feature-major residual
    bias = bias_ref[...]                      # (S_all, S_all) additive bias (hoisted)
    cos_t = cos_ref[...]                      # (2H, S_all) RoPE tables (hoisted)
    sin_lo = sinlo_ref[...]
    sin_hi = sinhi_ref[...]

    def rms_t(x, w):                          # RMSNorm over the feature (sublane) axis
        var = jnp.mean(x * x, axis=0, keepdims=True)
        return x * jax.lax.rsqrt(var + RMS_EPS) * w

    for l in range(N_LAYERS):                 # static unroll (N_LAYERS small)
        # --- self-attention block ---
        xn = rms_t(h, in_norm_ref[l]).astype(jnp.bfloat16)                 # (H, S_all)
        qkv = jax.lax.dot_general(wqkv_ref[l], xn, TN,
                                  preferred_element_type=jnp.float32)      # (3H, S_all)
        qk = qkv[:2 * H]                                                    # (2H, S_all)
        # Full-width RoPE for all q and k heads at once: rotate-half via two
        # sublane rolls; the +- sign and the cross-head wraparound rows are
        # folded into the precomputed sin tables (zeros where a roll crosses
        # a head boundary).  The 1/sqrt(Dh) scale is folded into Wq offline.
        roll_dn = jnp.concatenate([qk[half:], qk[:half]], axis=0)
        roll_up = jnp.concatenate([qk[-half:], qk[:-half]], axis=0)
        qk = (qk * cos_t + roll_dn * sin_lo + roll_up * sin_hi).astype(jnp.bfloat16)
        v = qkv[2 * H:].astype(jnp.bfloat16)                                # (H, S_all)

        outs = []
        for hd in range(N_HEADS):             # static; all slices are 8-row tile aligned
            q_h = qk[hd * Dh:(hd + 1) * Dh]                                 # (Dh, S_all)
            k_h = qk[H + hd * Dh:H + (hd + 1) * Dh]                         # (Dh, S_all)
            v_h = v[hd * Dh:(hd + 1) * Dh]                                  # (Dh, S_all)
            s = jax.lax.dot_general(q_h, k_h, TN,
                                    preferred_element_type=jnp.float32) + bias
            m = jnp.max(s, axis=-1, keepdims=True)
            p = jnp.exp(s - m)
            r = pl.reciprocal(jnp.sum(p, axis=-1, keepdims=True), approx=True)
            p = (p * r).astype(jnp.bfloat16)
            outs.append(jax.lax.dot_general(v_h, p, NT,
                                            preferred_element_type=jnp.float32))  # (Dh, S_all)
        attn = jnp.concatenate(outs, axis=0).astype(jnp.bfloat16)           # (H, S_all)
        h = h + jax.lax.dot_general(wo_ref[l], attn, TN,
                                    preferred_element_type=jnp.float32)

        # --- SwiGLU MLP block ---
        xm = rms_t(h, post_norm_ref[l]).astype(jnp.bfloat16)
        gu = jax.lax.dot_general(wgu_ref[l], xm, TN,
                                 preferred_element_type=jnp.float32)        # (2I, S_all)
        g = gu[:I]
        u = gu[I:]
        act = (g * jax.nn.sigmoid(g) * u).astype(jnp.bfloat16)
        h = h + jax.lax.dot_general(wd_ref[l], act, TN,
                                    preferred_element_type=jnp.float32)

    # Final RMSNorm only on the gist columns that are actually returned.
    gist_cols = jnp.concatenate(
        [h[:, n * S + S - G: n * S + S] for n in range(n_seq)], axis=1)      # (H, n_seq*G)
    o_ref[...] = rms_t(gist_cols, final_norm_ref[...])


def fused_forward(x_t, bias, cos_t, sin_lo, sin_hi,
                  in_norm, wqkv, wo, post_norm, wgu, wd, final_norm):
    """x_t: (H, n_seq*S) f32 feature-major slab -> (H, n_seq*G) f32."""
    H, S_all = x_t.shape
    n_seq = S_all // SEQ
    out_cols = n_seq * NUM_GIST

    def full(a):
        shape = a.shape
        return pl.BlockSpec(shape, lambda i: (0,) * len(shape))

    args = (x_t, bias, cos_t, sin_lo, sin_hi,
            in_norm, wqkv, wo, post_norm, wgu, wd, final_norm)
    return pl.pallas_call(
        _fused_forward_kernel,
        out_shape=jax.ShapeDtypeStruct((H, out_cols), jnp.float32),
        grid=(1,),                                      # whole batch in one fat step
        in_specs=[full(a) for a in args],
        out_specs=pl.BlockSpec((H, out_cols), lambda i: (0, 0)),
        compiler_params=pltpu.CompilerParams(
            dimension_semantics=("arbitrary",)),
    )(*args)


# ---------------- parameter init (deterministic) ----------------
def init_params(key):
    def nrm(k, shape, scale=0.02):
        return scale * jax.random.normal(k, shape, jnp.float32)

    ks = iter(jax.random.split(key, 4 * N_LAYERS + 4))
    wqkv, wo, wgu, wd = [], [], [], []
    for _ in range(N_LAYERS):
        wqkv.append(nrm(next(ks), (HIDDEN, 3 * HIDDEN)))          # fused q/k/v
        wo.append(nrm(next(ks), (HIDDEN, HIDDEN)))
        wgu.append(nrm(next(ks), (HIDDEN, 2 * INTERMEDIATE)))     # fused gate/up
        wd.append(nrm(next(ks), (INTERMEDIATE, HIDDEN)))
    return {
        "embed": nrm(next(ks), (VOCAB, HIDDEN)),
        # GistCausalLM.__init__: nn.Parameter(torch.randn(G, H))
        "gist_tokens": jax.random.normal(next(ks), (NUM_GIST, HIDDEN), jnp.float32),
        # MultiSpanGistCausalLM extras (used only by forward_objective, not here)
        "auto_encoding_embedding": jax.random.normal(next(ks), (1, HIDDEN), jnp.float32),
        "lm_embedding": jax.random.normal(next(ks), (1, HIDDEN), jnp.float32),
        "in_norm": jnp.ones((N_LAYERS, HIDDEN), jnp.float32),
        "post_norm": jnp.ones((N_LAYERS, HIDDEN), jnp.float32),
        "final_norm": jnp.ones((HIDDEN,), jnp.float32),
        "wqkv": jnp.stack(wqkv),
        "wo": jnp.stack(wo),
        "wgu": jnp.stack(wgu),
        "wd": jnp.stack(wd),
    }


# ---------------- GistCausalLM forward (JAX glue + one fused kernel) ----------------
def gist_causal_lm_forward(params, input_ids, attention_mask):
    N, T = input_ids.shape
    assert T == MAX_LENGTH, f"Input length must equal max_length: {T} != {MAX_LENGTH}"
    G, S, H = NUM_GIST, SEQ, HIDDEN
    S_all = N * S

    # TODO(synk): token-embedding lookup is a data-dependent gather; kept in plain JAX.
    emb = params["embed"][input_ids]                                       # (N, T, H)
    gist = jnp.broadcast_to(params["gist_tokens"][None], (N, G, H))        # (N, G, H)
    x = jnp.concatenate([emb, gist], axis=1).astype(jnp.float32)           # (N, S, H)
    mask = jnp.concatenate([attention_mask.astype(jnp.float32),
                            jnp.ones((N, G), jnp.float32)], axis=1)        # (N, S)

    # Feature-major activation slab: all sequences share one kernel step.
    x_t = x.reshape(S_all, H).T                                            # (H, S_all)

    # Additive bias (hoisted): same-sequence AND causal AND key-not-padded.
    idx = jnp.arange(S_all)
    seq_id = idx // S
    pos_in = idx % S
    key_ok = mask.reshape(S_all) > 0.0
    allowed = ((seq_id[:, None] == seq_id[None, :])
               & (pos_in[:, None] >= pos_in[None, :])
               & key_ok[None, :])
    bias = jnp.where(allowed, 0.0, NEG_INF).astype(jnp.float32)            # (S_all, S_all)

    # RoPE tables laid out for the feature-major (2H, S_all) q/k block.
    # position_ids = cat([arange(T), arange(0, T, compress_ratio)]) per sequence.
    pos_ids = jnp.concatenate([jnp.arange(T, dtype=jnp.float32),
                               jnp.arange(0, T, COMPRESS_RATIO, dtype=jnp.float32)])
    pos_all = jnp.tile(pos_ids, N)                                         # (S_all,)
    inv_freq = 1.0 / (ROPE_THETA ** (
        jnp.arange(0, HEAD_DIM, 2, dtype=jnp.float32) / HEAD_DIM))         # (Dh/2,)
    ang = inv_freq[:, None] * pos_all[None, :]                             # (Dh/2, S_all)
    zeros = jnp.zeros_like(ang)
    cos8 = jnp.concatenate([jnp.cos(ang), jnp.cos(ang)], axis=0)           # (Dh, S_all)
    sinlo8 = jnp.concatenate([-jnp.sin(ang), zeros], axis=0)               # rows d<Dh/2
    sinhi8 = jnp.concatenate([zeros, jnp.sin(ang)], axis=0)                # rows d>=Dh/2
    cos_t = jnp.tile(cos8, (2 * N_HEADS, 1))                               # (2H, S_all)
    sin_lo = jnp.tile(sinlo8, (2 * N_HEADS, 1))
    sin_hi = jnp.tile(sinhi8, (2 * N_HEADS, 1))

    # 1/sqrt(Dh) attention scale folded into the Wq columns (RoPE is linear, so
    # pre-scaling the projection is exact); weights stored bf16 for native MXU.
    scale = HEAD_DIM ** -0.5
    wqkv = jnp.concatenate([params["wqkv"][:, :, :H] * scale,
                            params["wqkv"][:, :, H:]], axis=-1).astype(jnp.bfloat16)
    wo = params["wo"].astype(jnp.bfloat16)
    wgu = params["wgu"].astype(jnp.bfloat16)
    wd = params["wd"].astype(jnp.bfloat16)
    in_norm = params["in_norm"].reshape(N_LAYERS, H, 1)
    post_norm = params["post_norm"].reshape(N_LAYERS, H, 1)
    final_norm = params["final_norm"].reshape(H, 1)

    out_t = fused_forward(x_t, bias, cos_t, sin_lo, sin_hi,
                          in_norm, wqkv, wo, post_norm, wgu, wd, final_norm)   # (H, N*G)
    return out_t.T.reshape(N, G, H)


# ---------------- MultiSpanGistCausalLM forward ----------------
def multi_span_gist_forward(params, input_ids, attention_mask, padding_id):
    B, total = input_ids.shape
    assert total % MAX_LENGTH == 0, "Input length must be a multiple of max_length."
    n_spans = total // MAX_LENGTH
    # TODO(synk): the reference drops spans that are entirely `padding_id`; that is
    # data-dependent control flow (dynamic span count) and is not expressible under
    # jit, so every span is processed here.
    ids = input_ids.reshape(B, n_spans, MAX_LENGTH).transpose(1, 0, 2)      # (spans, B, T)
    msk = attention_mask.reshape(B, n_spans, MAX_LENGTH).transpose(1, 0, 2)
    # Fold (span, batch) into one sequence axis so the whole multi-span forward is
    # a single fused kernel invocation.
    gist = gist_causal_lm_forward(params,
                                  ids.reshape(n_spans * B, MAX_LENGTH),
                                  msk.reshape(n_spans * B, MAX_LENGTH))
    gist = gist.reshape(n_spans, B, NUM_GIST, HIDDEN)
    span_feats = [gist[i] for i in range(n_spans)]
    span_ids = [ids[i] for i in range(n_spans)]
    span_masks = [msk[i] for i in range(n_spans)]
    return span_feats, span_ids, span_masks


# ---------------- driver ----------------
if __name__ == "__main__":
    key = jax.random.PRNGKey(0)
    k_params, k_ids = jax.random.split(key)

    params = init_params(k_params)

    B, NUM_SPANS, PAD_ID = 2, 2, 0
    input_ids = jax.random.randint(
        k_ids, (B, NUM_SPANS * MAX_LENGTH), 0, VOCAB, jnp.int32)
    attention_mask = jnp.ones((B, NUM_SPANS * MAX_LENGTH), jnp.float32)

    forward = jax.jit(multi_span_gist_forward)
    gist_feats, span_ids, span_masks = forward(params, input_ids, attention_mask, PAD_ID)
    gist_feats = jax.block_until_ready(gist_feats)

    assert len(gist_feats) == NUM_SPANS
    for g in gist_feats:
        assert g.shape == (B, NUM_GIST, HIDDEN), g.shape
        assert g.dtype == jnp.float32
        assert bool(jnp.all(jnp.isfinite(g)))
    print("KERNEL_OK")
</pallas_src>

<mosaic_0001>
module attributes {stable_mosaic.version = 11 : i64} {
  func.func @_fused_forward_kernel(%arg0: i32, %arg1: memref<32x48xf32, #tpu.memory_space<vmem>>, %arg2: memref<48x48xf32, #tpu.memory_space<vmem>>, %arg3: memref<64x48xf32, #tpu.memory_space<vmem>>, %arg4: memref<64x48xf32, #tpu.memory_space<vmem>>, %arg5: memref<64x48xf32, #tpu.memory_space<vmem>>, %arg6: memref<2x32x1xf32, #tpu.memory_space<vmem>>, %arg7: memref<2x32x96xbf16, #tpu.memory_space<vmem>>, %arg8: memref<2x32x32xbf16, #tpu.memory_space<vmem>>, %arg9: memref<2x32x1xf32, #tpu.memory_space<vmem>>, %arg10: memref<2x32x128xbf16, #tpu.memory_space<vmem>>, %arg11: memref<2x64x32xbf16, #tpu.memory_space<vmem>>, %arg12: memref<32x1xf32, #tpu.memory_space<vmem>>, %arg13: memref<32x16xf32, #tpu.memory_space<vmem>>) attributes {dimension_semantics = [#tpu.dimension_semantics<arbitrary>], iteration_bounds = array<i64: 1>, scalar_prefetch = 0 : i64, scratch_operands = 0 : i64, tpu.core_type = #tpu.core_type<tc>, window_params = [{pipeline_mode = #tpu.pipeline_mode<synchronous>, transform_indices = @transform_0, window_bounds = array<i64: 32, 48>}, {pipeline_mode = #tpu.pipeline_mode<synchronous>, transform_indices = @transform_1, window_bounds = array<i64: 48, 48>}, {pipeline_mode = #tpu.pipeline_mode<synchronous>, transform_indices = @transform_2, window_bounds = array<i64: 64, 48>}, {pipeline_mode = #tpu.pipeline_mode<synchronous>, transform_indices = @transform_3, window_bounds = array<i64: 64, 48>}, {pipeline_mode = #tpu.pipeline_mode<synchronous>, transform_indices = @transform_4, window_bounds = array<i64: 64, 48>}, {pipeline_mode = #tpu.pipeline_mode<synchronous>, transform_indices = @transform_5, window_bounds = array<i64: 2, 32, 1>}, {pipeline_mode = #tpu.pipeline_mode<synchronous>, transform_indices = @transform_6, window_bounds = array<i64: 2, 32, 96>}, {pipeline_mode = #tpu.pipeline_mode<synchronous>, transform_indices = @transform_7, window_bounds = array<i64: 2, 32, 32>}, {pipeline_mode = #tpu.pipeline_mode<synchronous>, transform_indices = @transform_8, window_bounds = array<i64: 2, 32, 1>}, {pipeline_mode = #tpu.pipeline_mode<synchronous>, transform_indices = @transform_9, window_bounds = array<i64: 2, 32, 128>}, {pipeline_mode = #tpu.pipeline_mode<synchronous>, transform_indices = @transform_10, window_bounds = array<i64: 2, 64, 32>}, {pipeline_mode = #tpu.pipeline_mode<synchronous>, transform_indices = @transform_11, window_bounds = array<i64: 32, 1>}, {pipeline_mode = #tpu.pipeline_mode<synchronous>, transform_indices = @transform_12, window_bounds = array<i64: 32, 16>}]} {
    %c0 = arith.constant 0 : index
    %c0_0 = arith.constant 0 : index
    %0 = vector.load %arg1[%c0, %c0_0] : memref<32x48xf32, #tpu.memory_space<vmem>>, vector<32x48xf32>
    %c0_1 = arith.constant 0 : index
    %c0_2 = arith.constant 0 : index
    %1 = vector.load %arg2[%c0_1, %c0_2] : memref<48x48xf32, #tpu.memory_space<vmem>>, vector<48x48xf32>
    %c0_3 = arith.constant 0 : index
    %c0_4 = arith.constant 0 : index
    %2 = vector.load %arg3[%c0_3, %c0_4] : memref<64x48xf32, #tpu.memory_space<vmem>>, vector<64x48xf32>
    %c0_5 = arith.constant 0 : index
    %c0_6 = arith.constant 0 : index
    %3 = vector.load %arg4[%c0_5, %c0_6] : memref<64x48xf32, #tpu.memory_space<vmem>>, vector<64x48xf32>
    %c0_7 = arith.constant 0 : index
    %c0_8 = arith.constant 0 : index
    %4 = vector.load %arg5[%c0_7, %c0_8] : memref<64x48xf32, #tpu.memory_space<vmem>>, vector<64x48xf32>
    %c0_9 = arith.constant 0 : index
    %c0_10 = arith.constant 0 : index
    %c0_11 = arith.constant 0 : index
    %5 = vector.load %arg6[%c0_9, %c0_10, %c0_11] : memref<2x32x1xf32, #tpu.memory_space<vmem>>, vector<1x32x1xf32>
    %6 = vector.shape_cast %5 : vector<1x32x1xf32> to vector<32x1xf32>
    %7 = arith.mulf %0, %0 : vector<32x48xf32>
    %cst = arith.constant dense<0.000000e+00> : vector<48xf32>
    %8 = vector.multi_reduction <add>, %7, %cst [0] : vector<32x48xf32> to vector<48xf32>
    %9 = vector.shape_cast %8 : vector<48xf32> to vector<1x48xf32>
    %cst_12 = arith.constant 3.200000e+01 : f32
    %10 = vector.broadcast %cst_12 : f32 to vector<1x48xf32>
    %11 = arith.divf %9, %10 : vector<1x48xf32>
    %cst_13 = arith.constant 9.99999997E-7 : f32
    %12 = vector.broadcast %cst_13 : f32 to vector<1x48xf32>
    %13 = arith.addf %11, %12 : vector<1x48xf32>
    %14 = math.rsqrt %13 : vector<1x48xf32>
    %15 = vector.broadcast %14 : vector<1x48xf32> to vector<32x48xf32>
    %16 = arith.mulf %0, %15 : vector<32x48xf32>
    %17 = vector.broadcast %6 : vector<32x1xf32> to vector<32x48xf32>
    %18 = arith.mulf %16, %17 : vector<32x48xf32>
    %19 = arith.truncf %18 : vector<32x48xf32> to vector<32x48xbf16>
    %c0_14 = arith.constant 0 : index
    %c0_15 = arith.constant 0 : index
    %c0_16 = arith.constant 0 : index
    %20 = vector.load %arg7[%c0_14, %c0_15, %c0_16] : memref<2x32x96xbf16, #tpu.memory_space<vmem>>, vector<1x32x96xbf16>
    %21 = vector.shape_cast %20 : vector<1x32x96xbf16> to vector<32x96xbf16>
    %cst_17 = arith.constant dense<0.000000e+00> : vector<96x48xf32>
    %22 = tpu.matmul %21, %19, %cst_17 {dimension_numbers = #tpu.dot_dimension_numbers<[0], [0], [1], [1], [0, 1, 1, 1], [], []>} : vector<32x96xbf16>, vector<32x48xbf16>, vector<96x48xf32> -> vector<96x48xf32>
    %23 = vector.extract_strided_slice %22 {offsets = [0, 0], sizes = [64, 48], strides = [1, 1]} : vector<96x48xf32> to vector<64x48xf32>
    %24 = vector.extract_strided_slice %23 {offsets = [4, 0], sizes = [60, 48], strides = [1, 1]} : vector<64x48xf32> to vector<60x48xf32>
    %25 = vector.extract_strided_slice %23 {offsets = [0, 0], sizes = [4, 48], strides = [1, 1]} : vector<64x48xf32> to vector<4x48xf32>
    %26 = tpu.concatenate %24, %25 in 0 : vector<60x48xf32>, vector<4x48xf32> -> vector<64x48xf32>
    %27 = vector.extract_strided_slice %23 {offsets = [60, 0], sizes = [4, 48], strides = [1, 1]} : vector<64x48xf32> to vector<4x48xf32>
    %28 = vector.extract_strided_slice %23 {offsets = [0, 0], sizes = [60, 48], strides = [1, 1]} : vector<64x48xf32> to vector<60x48xf32>
    %29 = tpu.concatenate %27, %28 in 0 : vector<4x48xf32>, vector<60x48xf32> -> vector<64x48xf32>
    %30 = arith.mulf %23, %2 : vector<64x48xf32>
    %31 = arith.mulf %26, %3 : vector<64x48xf32>
    %32 = arith.addf %30, %31 : vector<64x48xf32>
    %33 = arith.mulf %29, %4 : vector<64x48xf32>
    %34 = arith.addf %32, %33 : vector<64x48xf32>
    %35 = arith.truncf %34 : vector<64x48xf32> to vector<64x48xbf16>
    %36 = vector.extract_strided_slice %22 {offsets = [64, 0], sizes = [32, 48], strides = [1, 1]} : vector<96x48xf32> to vector<32x48xf32>
    %37 = arith.truncf %36 : vector<32x48xf32> to vector<32x48xbf16>
    %38 = vector.extract_strided_slice %35 {offsets = [0, 0], sizes = [8, 48], strides = [1, 1]} : vector<64x48xbf16> to vector<8x48xbf16>
    %39 = vector.extract_strided_slice %35 {offsets = [32, 0], sizes = [8, 48], strides = [1, 1]} : vector<64x48xbf16> to vector<8x48xbf16>
    %40 = vector.extract_strided_slice %37 {offsets = [0, 0], sizes = [8, 48], strides = [1, 1]} : vector<32x48xbf16> to vector<8x48xbf16>
    %cst_18 = arith.constant dense<0.000000e+00> : vector<48x48xf32>
    %41 = tpu.matmul %38, %39, %cst_18 {dimension_numbers = #tpu.dot_dimension_numbers<[0], [0], [1], [1], [0, 1, 1, 1], [], []>} : vector<8x48xbf16>, vector<8x48xbf16>, vector<48x48xf32> -> vector<48x48xf32>
    %42 = arith.addf %41, %1 : vector<48x48xf32>
    %cst_19 = arith.constant dense<0xFF800000> : vector<48xf32>
    %43 = vector.multi_reduction <maximumf>, %42, %cst_19 [1] : vector<48x48xf32> to vector<48xf32>
    %44 = vector.shape_cast %43 : vector<48xf32> to vector<48x1xf32>
    %45 = vector.broadcast %44 : vector<48x1xf32> to vector<48x48xf32>
    %46 = arith.subf %42, %45 : vector<48x48xf32>
    %47 = math.exp %46 : vector<48x48xf32>
    %cst_20 = arith.constant dense<0.000000e+00> : vector<48xf32>
    %48 = vector.multi_reduction <add>, %47, %cst_20 [1] : vector<48x48xf32> to vector<48xf32>
    %49 = vector.shape_cast %48 : vector<48xf32> to vector<48x1xf32>
    %50 = tpu.reciprocal %49 {approx = true} : vector<48x1xf32> -> vector<48x1xf32>
    %51 = vector.broadcast %50 : vector<48x1xf32> to vector<48x48xf32>
    %52 = arith.mulf %47, %51 : vector<48x48xf32>
    %53 = arith.truncf %52 : vector<48x48xf32> to vector<48x48xbf16>
    %cst_21 = arith.constant dense<0.000000e+00> : vector<8x48xf32>
    %54 = tpu.matmul %40, %53, %cst_21 {dimension_numbers = #tpu.dot_dimension_numbers<[1], [1], [0], [0], [0, 0, 1, 0], [], []>} : vector<8x48xbf16>, vector<48x48xbf16>, vector<8x48xf32> -> vector<8x48xf32>
    %55 = vector.extract_strided_slice %35 {offsets = [8, 0], sizes = [8, 48], strides = [1, 1]} : vector<64x48xbf16> to vector<8x48xbf16>
    %56 = vector.extract_strided_slice %35 {offsets = [40, 0], sizes = [8, 48], strides = [1, 1]} : vector<64x48xbf16> to vector<8x48xbf16>
    %57 = vector.extract_strided_slice %37 {offsets = [8, 0], sizes = [8, 48], strides = [1, 1]} : vector<32x48xbf16> to vector<8x48xbf16>
    %cst_22 = arith.constant dense<0.000000e+00> : vector<48x48xf32>
    %58 = tpu.matmul %55, %56, %cst_22 {dimension_numbers = #tpu.dot_dimension_numbers<[0], [0], [1], [1], [0, 1, 1, 1], [], []>} : vector<8x48xbf16>, vector<8x48xbf16>, vector<48x48xf32> -> vector<48x48xf32>
    %59 = arith.addf %58, %1 : vector<48x48xf32>
    %cst_23 = arith.constant dense<0xFF800000> : vector<48xf32>
    %60 = vector.multi_reduction <maximumf>, %59, %cst_23 [1] : vector<48x48xf32> to vector<48xf32>
    %61 = vector.shape_cast %60 : vector<48xf32> to vector<48x1xf32>
    %62 = vector.broadcast %61 : vector<48x1xf32> to vector<48x48xf32>
    %63 = arith.subf %59, %62 : vector<48x48xf32>
    %64 = math.exp %63 : vector<48x48xf32>
    %cst_24 = arith.constant dense<0.000000e+00> : vector<48xf32>
    %65 = vector.multi_reduction <add>, %64, %cst_24 [1] : vector<48x48xf32> to vector<48xf32>
    %66 = vector.shape_cast %65 : vector<48xf32> to vector<48x1xf32>
    %67 = tpu.reciprocal %66 {approx = true} : vector<48x1xf32> -> vector<48x1xf32>
    %68 = vector.broadcast %67 : vector<48x1xf32> to vector<48x48xf32>
    %69 = arith.mulf %64, %68 : vector<48x48xf32>
    %70 = arith.truncf %69 : vector<48x48xf32> to vector<48x48xbf16>
    %cst_25 = arith.constant dense<0.000000e+00> : vector<8x48xf32>
    %71 = tpu.matmul %57, %70, %cst_25 {dimension_numbers = #tpu.dot_dimension_numbers<[1], [1], [0], [0], [0, 0, 1, 0], [], []>} : vector<8x48xbf16>, vector<48x48xbf16>, vector<8x48xf32> -> vector<8x48xf32>
    %72 = vector.extract_strided_slice %35 {offsets = [16, 0], sizes = [8, 48], strides = [1, 1]} : vector<64x48xbf16> to vector<8x48xbf16>
    %73 = vector.extract_strided_slice %35 {offsets = [48, 0], sizes = [8, 48], strides = [1, 1]} : vector<64x48xbf16> to vector<8x48xbf16>
    %74 = vector.extract_strided_slice %37 {offsets = [16, 0], sizes = [8, 48], strides = [1, 1]} : vector<32x48xbf16> to vector<8x48xbf16>
    %cst_26 = arith.constant dense<0.000000e+00> : vector<48x48xf32>
    %75 = tpu.matmul %72, %73, %cst_26 {dimension_numbers = #tpu.dot_dimension_numbers<[0], [0], [1], [1], [0, 1, 1, 1], [], []>} : vector<8x48xbf16>, vector<8x48xbf16>, vector<48x48xf32> -> vector<48x48xf32>
    %76 = arith.addf %75, %1 : vector<48x48xf32>
    %cst_27 = arith.constant dense<0xFF800000> : vector<48xf32>
    %77 = vector.multi_reduction <maximumf>, %76, %cst_27 [1] : vector<48x48xf32> to vector<48xf32>
    %78 = vector.shape_cast %77 : vector<48xf32> to vector<48x1xf32>
    %79 = vector.broadcast %78 : vector<48x1xf32> to vector<48x48xf32>
    %80 = arith.subf %76, %79 : vector<48x48xf32>
    %81 = math.exp %80 : vector<48x48xf32>
    %cst_28 = arith.constant dense<0.000000e+00> : vector<48xf32>
    %82 = vector.multi_reduction <add>, %81, %cst_28 [1] : vector<48x48xf32> to vector<48xf32>
    %83 = vector.shape_cast %82 : vector<48xf32> to vector<48x1xf32>
    %84 = tpu.reciprocal %83 {approx = true} : vector<48x1xf32> -> vector<48x1xf32>
    %85 = vector.broadcast %84 : vector<48x1xf32> to vector<48x48xf32>
    %86 = arith.mulf %81, %85 : vector<48x48xf32>
    %87 = arith.truncf %86 : vector<48x48xf32> to vector<48x48xbf16>
    %cst_29 = arith.constant dense<0.000000e+00> : vector<8x48xf32>
    %88 = tpu.matmul %74, %87, %cst_29 {dimension_numbers = #tpu.dot_dimension_numbers<[1], [1], [0], [0], [0, 0, 1, 0], [], []>} : vector<8x48xbf16>, vector<48x48xbf16>, vector<8x48xf32> -> vector<8x48xf32>
    %89 = vector.extract_strided_slice %35 {offsets = [24, 0], sizes = [8, 48], strides = [1, 1]} : vector<64x48xbf16> to vector<8x48xbf16>
    %90 = vector.extract_strided_slice %35 {offsets = [56, 0], sizes = [8, 48], strides = [1, 1]} : vector<64x48xbf16> to vector<8x48xbf16>
    %91 = vector.extract_strided_slice %37 {offsets = [24, 0], sizes = [8, 48], strides = [1, 1]} : vector<32x48xbf16> to vector<8x48xbf16>
    %cst_30 = arith.constant dense<0.000000e+00> : vector<48x48xf32>
    %92 = tpu.matmul %89, %90, %cst_30 {dimension_numbers = #tpu.dot_dimension_numbers<[0], [0], [1], [1], [0, 1, 1, 1], [], []>} : vector<8x48xbf16>, vector<8x48xbf16>, vector<48x48xf32> -> vector<48x48xf32>
    %93 = arith.addf %92, %1 : vector<48x48xf32>
    %cst_31 = arith.constant dense<0xFF800000> : vector<48xf32>
    %94 = vector.multi_reduction <maximumf>, %93, %cst_31 [1] : vector<48x48xf32> to vector<48xf32>
    %95 = vector.shape_cast %94 : vector<48xf32> to vector<48x1xf32>
    %96 = vector.broadcast %95 : vector<48x1xf32> to vector<48x48xf32>
    %97 = arith.subf %93, %96 : vector<48x48xf32>
    %98 = math.exp %97 : vector<48x48xf32>
    %cst_32 = arith.constant dense<0.000000e+00> : vector<48xf32>
    %99 = vector.multi_reduction <add>, %98, %cst_32 [1] : vector<48x48xf32> to vector<48xf32>
    %100 = vector.shape_cast %99 : vector<48xf32> to vector<48x1xf32>
    %101 = tpu.reciprocal %100 {approx = true} : vector<48x1xf32> -> vector<48x1xf32>
    %102 = vector.broadcast %101 : vector<48x1xf32> to vector<48x48xf32>
    %103 = arith.mulf %98, %102 : vector<48x48xf32>
    %104 = arith.truncf %103 : vector<48x48xf32> to vector<48x48xbf16>
    %cst_33 = arith.constant dense<0.000000e+00> : vector<8x48xf32>
    %105 = tpu.matmul %91, %104, %cst_33 {dimension_numbers = #tpu.dot_dimension_numbers<[1], [1], [0], [0], [0, 0, 1, 0], [], []>} : vector<8x48xbf16>, vector<48x48xbf16>, vector<8x48xf32> -> vector<8x48xf32>
    %106 = tpu.concatenate %54, %71, %88, %105 in 0 : vector<8x48xf32>, vector<8x48xf32>, vector<8x48xf32>, vector<8x48xf32> -> vector<32x48xf32>
    %107 = arith.truncf %106 : vector<32x48xf32> to vector<32x48xbf16>
    %c0_34 = arith.constant 0 : index
    %c0_35 = arith.constant 0 : index
    %c0_36 = arith.constant 0 : index
    %108 = vector.load %arg8[%c0_34, %c0_35, %c0_36] : memref<2x32x32xbf16, #tpu.memory_space<vmem>>, vector<1x32x32xbf16>
    %109 = vector.shape_cast %108 : vector<1x32x32xbf16> to vector<32x32xbf16>
    %cst_37 = arith.constant dense<0.000000e+00> : vector<32x48xf32>
    %110 = tpu.matmul %109, %107, %cst_37 {dimension_numbers = #tpu.dot_dimension_numbers<[0], [0], [1], [1], [0, 1, 1, 1], [], []>} : vector<32x32xbf16>, vector<32x48xbf16>, vector<32x48xf32> -> vector<32x48xf32>
    %111 = arith.addf %0, %110 : vector<32x48xf32>
    %c0_38 = arith.constant 0 : index
    %c0_39 = arith.constant 0 : index
    %c0_40 = arith.constant 0 : index
    %112 = vector.load %arg9[%c0_38, %c0_39, %c0_40] : memref<2x32x1xf32, #tpu.memory_space<vmem>>, vector<1x32x1xf32>
    %113 = vector.shape_cast %112 : vector<1x32x1xf32> to vector<32x1xf32>
    %114 = arith.mulf %111, %111 : vector<32x48xf32>
    %cst_41 = arith.constant dense<0.000000e+00> : vector<48xf32>
    %115 = vector.multi_reduction <add>, %114, %cst_41 [0] : vector<32x48xf32> to vector<48xf32>
    %116 = vector.shape_cast %115 : vector<48xf32> to vector<1x48xf32>
    %cst_42 = arith.constant 3.200000e+01 : f32
    %117 = vector.broadcast %cst_42 : f32 to vector<1x48xf32>
    %118 = arith.divf %116, %117 : vector<1x48xf32>
    %cst_43 = arith.constant 9.99999997E-7 : f32
    %119 = vector.broadcast %cst_43 : f32 to vector<1x48xf32>
    %120 = arith.addf %118, %119 : vector<1x48xf32>
    %121 = math.rsqrt %120 : vector<1x48xf32>
    %122 = vector.broadcast %121 : vector<1x48xf32> to vector<32x48xf32>
    %123 = arith.mulf %111, %122 : vector<32x48xf32>
    %124 = vector.broadcast %113 : vector<32x1xf32> to vector<32x48xf32>
    %125 = arith.mulf %123, %124 : vector<32x48xf32>
    %126 = arith.truncf %125 : vector<32x48xf32> to vector<32x48xbf16>
    %c0_44 = arith.constant 0 : index
    %c0_45 = arith.constant 0 : index
    %c0_46 = arith.constant 0 : index
    %127 = vector.load %arg10[%c0_44, %c0_45, %c0_46] : memref<2x32x128xbf16, #tpu.memory_space<vmem>>, vector<1x32x128xbf16>
    %128 = vector.shape_cast %127 : vector<1x32x128xbf16> to vector<32x128xbf16>
    %cst_47 = arith.constant dense<0.000000e+00> : vector<128x48xf32>
    %129 = tpu.matmul %128, %126, %cst_47 {dimension_numbers = #tpu.dot_dimension_numbers<[0], [0], [1], [1], [0, 1, 1, 1], [], []>} : vector<32x128xbf16>, vector<32x48xbf16>, vector<128x48xf32> -> vector<128x48xf32>
    %130 = vector.extract_strided_slice %129 {offsets = [0, 0], sizes = [64, 48], strides = [1, 1]} : vector<128x48xf32> to vector<64x48xf32>
    %131 = vector.extract_strided_slice %129 {offsets = [64, 0], sizes = [64, 48], strides = [1, 1]} : vector<128x48xf32> to vector<64x48xf32>
    %132 = arith.negf %130 : vector<64x48xf32>
    %133 = math.exp %132 : vector<64x48xf32>
    %cst_48 = arith.constant 1.000000e+00 : f32
    %134 = vector.broadcast %cst_48 : f32 to vector<64x48xf32>
    %135 = arith.addf %134, %133 : vector<64x48xf32>
    %136 = arith.divf %134, %135 : vector<64x48xf32>
    %137 = arith.mulf %130, %136 : vector<64x48xf32>
    %138 = arith.mulf %137, %131 : vector<64x48xf32>
    %139 = arith.truncf %138 : vector<64x48xf32> to vector<64x48xbf16>
    %c0_49 = arith.constant 0 : index
    %c0_50 = arith.constant 0 : index
    %c0_51 = arith.constant 0 : index
    %140 = vector.load %arg11[%c0_49, %c0_50, %c0_51] : memref<2x64x32xbf16, #tpu.memory_space<vmem>>, vector<1x64x32xbf16>
    %141 = vector.shape_cast %140 : vector<1x64x32xbf16> to vector<64x32xbf16>
    %cst_52 = arith.constant dense<0.000000e+00> : vector<32x48xf32>
    %142 = tpu.matmul %141, %139, %cst_52 {dimension_numbers = #tpu.dot_dimension_numbers<[0], [0], [1], [1], [0, 1, 1, 1], [], []>} : vector<64x32xbf16>, vector<64x48xbf16>, vector<32x48xf32> -> vector<32x48xf32>
    %143 = arith.addf %111, %142 : vector<32x48xf32>
    %c1 = arith.constant 1 : index
    %c0_53 = arith.constant 0 : index
    %c0_54 = arith.constant 0 : index
    %144 = vector.load %arg6[%c1, %c0_53, %c0_54] : memref<2x32x1xf32, #tpu.memory_space<vmem>>, vector<1x32x1xf32>
    %145 = vector.shape_cast %144 : vector<1x32x1xf32> to vector<32x1xf32>
    %146 = arith.mulf %143, %143 : vector<32x48xf32>
    %cst_55 = arith.constant dense<0.000000e+00> : vector<48xf32>
    %147 = vector.multi_reduction <add>, %146, %cst_55 [0] : vector<32x48xf32> to vector<48xf32>
    %148 = vector.shape_cast %147 : vector<48xf32> to vector<1x48xf32>
    %cst_56 = arith.constant 3.200000e+01 : f32
    %149 = vector.broadcast %cst_56 : f32 to vector<1x48xf32>
    %150 = arith.divf %148, %149 : vector<1x48xf32>
    %cst_57 = arith.constant 9.99999997E-7 : f32
    %151 = vector.broadcast %cst_57 : f32 to vector<1x48xf32>
    %152 = arith.addf %150, %151 : vector<1x48xf32>
    %153 = math.rsqrt %152 : vector<1x48xf32>
    %154 = vector.broadcast %153 : vector<1x48xf32> to vector<32x48xf32>
    %155 = arith.mulf %143, %154 : vector<32x48xf32>
    %156 = vector.broadcast %145 : vector<32x1xf32> to vector<32x48xf32>
    %157 = arith.mulf %155, %156 : vector<32x48xf32>
    %158 = arith.truncf %157 : vector<32x48xf32> to vector<32x48xbf16>
    %c1_58 = arith.constant 1 : index
    %c0_59 = arith.constant 0 : index
    %c0_60 = arith.constant 0 : index
    %159 = vector.load %arg7[%c1_58, %c0_59, %c0_60] : memref<2x32x96xbf16, #tpu.memory_space<vmem>>, vector<1x32x96xbf16>
    %160 = vector.shape_cast %159 : vector<1x32x96xbf16> to vector<32x96xbf16>
    %cst_61 = arith.constant dense<0.000000e+00> : vector<96x48xf32>
    %161 = tpu.matmul %160, %158, %cst_61 {dimension_numbers = #tpu.dot_dimension_numbers<[0], [0], [1], [1], [0, 1, 1, 1], [], []>} : vector<32x96xbf16>, vector<32x48xbf16>, vector<96x48xf32> -> vector<96x48xf32>
    %162 = vector.extract_strided_slice %161 {offsets = [0, 0], sizes = [64, 48], strides = [1, 1]} : vector<96x48xf32> to vector<64x48xf32>
    %163 = vector.extract_strided_slice %162 {offsets = [4, 0], sizes = [60, 48], strides = [1, 1]} : vector<64x48xf32> to vector<60x48xf32>
    %164 = vector.extract_strided_slice %162 {offsets = [0, 0], sizes = [4, 48], strides = [1, 1]} : vector<64x48xf32> to vector<4x48xf32>
    %165 = tpu.concatenate %163, %164 in 0 : vector<60x48xf32>, vector<4x48xf32> -> vector<64x48xf32>
    %166 = vector.extract_strided_slice %162 {offsets = [60, 0], sizes = [4, 48], strides = [1, 1]} : vector<64x48xf32> to vector<4x48xf32>
    %167 = vector.extract_strided_slice %162 {offsets = [0, 0], sizes = [60, 48], strides = [1, 1]} : vector<64x48xf32> to vector<60x48xf32>
    %168 = tpu.concatenate %166, %167 in 0 : vector<4x48xf32>, vector<60x48xf32> -> vector<64x48xf32>
    %169 = arith.mulf %162, %2 : vector<64x48xf32>
    %170 = arith.mulf %165, %3 : vector<64x48xf32>
    %171 = arith.addf %169, %170 : vector<64x48xf32>
    %172 = arith.mulf %168, %4 : vector<64x48xf32>
    %173 = arith.addf %171, %172 : vector<64x48xf32>
    %174 = arith.truncf %173 : vector<64x48xf32> to vector<64x48xbf16>
    %175 = vector.extract_strided_slice %161 {offsets = [64, 0], sizes = [32, 48], strides = [1, 1]} : vector<96x48xf32> to vector<32x48xf32>
    %176 = arith.truncf %175 : vector<32x48xf32> to vector<32x48xbf16>
    %177 = vector.extract_strided_slice %174 {offsets = [0, 0], sizes = [8, 48], strides = [1, 1]} : vector<64x48xbf16> to vector<8x48xbf16>
    %178 = vector.extract_strided_slice %174 {offsets = [32, 0], sizes = [8, 48], strides = [1, 1]} : vector<64x48xbf16> to vector<8x48xbf16>
    %179 = vector.extract_strided_slice %176 {offsets = [0, 0], sizes = [8, 48], strides = [1, 1]} : vector<32x48xbf16> to vector<8x48xbf16>
    %cst_62 = arith.constant dense<0.000000e+00> : vector<48x48xf32>
    %180 = tpu.matmul %177, %178, %cst_62 {dimension_numbers = #tpu.dot_dimension_numbers<[0], [0], [1], [1], [0, 1, 1, 1], [], []>} : vector<8x48xbf16>, vector<8x48xbf16>, vector<48x48xf32> -> vector<48x48xf32>
    %181 = arith.addf %180, %1 : vector<48x48xf32>
    %cst_63 = arith.constant dense<0xFF800000> : vector<48xf32>
    %182 = vector.multi_reduction <maximumf>, %181, %cst_63 [1] : vector<48x48xf32> to vector<48xf32>
    %183 = vector.shape_cast %182 : vector<48xf32> to vector<48x1xf32>
    %184 = vector.broadcast %183 : vector<48x1xf32> to vector<48x48xf32>
    %185 = arith.subf %181, %184 : vector<48x48xf32>
    %186 = math.exp %185 : vector<48x48xf32>
    %cst_64 = arith.constant dense<0.000000e+00> : vector<48xf32>
    %187 = vector.multi_reduction <add>, %186, %cst_64 [1] : vector<48x48xf32> to vector<48xf32>
    %188 = vector.shape_cast %187 : vector<48xf32> to vector<48x1xf32>
    %189 = tpu.reciprocal %188 {approx = true} : vector<48x1xf32> -> vector<48x1xf32>
    %190 = vector.broadcast %189 : vector<48x1xf32> to vector<48x48xf32>
    %191 = arith.mulf %186, %190 : vector<48x48xf32>
    %192 = arith.truncf %191 : vector<48x48xf32> to vector<48x48xbf16>
    %cst_65 = arith.constant dense<0.000000e+00> : vector<8x48xf32>
    %193 = tpu.matmul %179, %192, %cst_65 {dimension_numbers = #tpu.dot_dimension_numbers<[1], [1], [0], [0], [0, 0, 1, 0], [], []>} : vector<8x48xbf16>, vector<48x48xbf16>, vector<8x48xf32> -> vector<8x48xf32>
    %194 = vector.extract_strided_slice %174 {offsets = [8, 0], sizes = [8, 48], strides = [1, 1]} : vector<64x48xbf16> to vector<8x48xbf16>
    %195 = vector.extract_strided_slice %174 {offsets = [40, 0], sizes = [8, 48], strides = [1, 1]} : vector<64x48xbf16> to vector<8x48xbf16>
    %196 = vector.extract_strided_slice %176 {offsets = [8, 0], sizes = [8, 48], strides = [1, 1]} : vector<32x48xbf16> to vector<8x48xbf16>
    %cst_66 = arith.constant dense<0.000000e+00> : vector<48x48xf32>
    %197 = tpu.matmul %194, %195, %cst_66 {dimension_numbers = #tpu.dot_dimension_numbers<[0], [0], [1], [1], [0, 1, 1, 1], [], []>} : vector<8x48xbf16>, vector<8x48xbf16>, vector<48x48xf32> -> vector<48x48xf32>
    %198 = arith.addf %197, %1 : vector<48x48xf32>
    %cst_67 = arith.constant dense<0xFF800000> : vector<48xf32>
    %199 = vector.multi_reduction <maximumf>, %198, %cst_67 [1] : vector<48x48xf32> to vector<48xf32>
    %200 = vector.shape_cast %199 : vector<48xf32> to vector<48x1xf32>
    %201 = vector.broadcast %200 : vector<48x1xf32> to vector<48x48xf32>
    %202 = arith.subf %198, %201 : vector<48x48xf32>
    %203 = math.exp %202 : vector<48x48xf32>
    %cst_68 = arith.constant dense<0.000000e+00> : vector<48xf32>
    %204 = vector.multi_reduction <add>, %203, %cst_68 [1] : vector<48x48xf32> to vector<48xf32>
    %205 = vector.shape_cast %204 : vector<48xf32> to vector<48x1xf32>
    %206 = tpu.reciprocal %205 {approx = true} : vector<48x1xf32> -> vector<48x1xf32>
    %207 = vector.broadcast %206 : vector<48x1xf32> to vector<48x48xf32>
    %208 = arith.mulf %203, %207 : vector<48x48xf32>
    %209 = arith.truncf %208 : vector<48x48xf32> to vector<48x48xbf16>
    %cst_69 = arith.constant dense<0.000000e+00> : vector<8x48xf32>
    %210 = tpu.matmul %196, %209, %cst_69 {dimension_numbers = #tpu.dot_dimension_numbers<[1], [1], [0], [0], [0, 0, 1, 0], [], []>} : vector<8x48xbf16>, vector<48x48xbf16>, vector<8x48xf32> -> vector<8x48xf32>
    %211 = vector.extract_strided_slice %174 {offsets = [16, 0], sizes = [8, 48], strides = [1, 1]} : vector<64x48xbf16> to vector<8x48xbf16>
    %212 = vector.extract_strided_slice %174 {offsets = [48, 0], sizes = [8, 48], strides = [1, 1]} : vector<64x48xbf16> to vector<8x48xbf16>
    %213 = vector.extract_strided_slice %176 {offsets = [16, 0], sizes = [8, 48], strides = [1, 1]} : vector<32x48xbf16> to vector<8x48xbf16>
    %cst_70 = arith.constant dense<0.000000e+00> : vector<48x48xf32>
    %214 = tpu.matmul %211, %212, %cst_70 {dimension_numbers = #tpu.dot_dimension_numbers<[0], [0], [1], [1], [0, 1, 1, 1], [], []>} : vector<8x48xbf16>, vector<8x48xbf16>, vector<48x48xf32> -> vector<48x48xf32>
    %215 = arith.addf %214, %1 : vector<48x48xf32>
    %cst_71 = arith.constant dense<0xFF800000> : vector<48xf32>
    %216 = vector.multi_reduction <maximumf>, %215, %cst_71 [1] : vector<48x48xf32> to vector<48xf32>
    %217 = vector.shape_cast %216 : vector<48xf32> to vector<48x1xf32>
    %218 = vector.broadcast %217 : vector<48x1xf32> to vector<48x48xf32>
    %219 = arith.subf %215, %218 : vector<48x48xf32>
    %220 = math.exp %219 : vector<48x48xf32>
    %cst_72 = arith.constant dense<0.000000e+00> : vector<48xf32>
    %221 = vector.multi_reduction <add>, %220, %cst_72 [1] : vector<48x48xf32> to vector<48xf32>
    %222 = vector.shape_cast %221 : vector<48xf32> to vector<48x1xf32>
    %223 = tpu.reciprocal %222 {approx = true} : vector<48x1xf32> -> vector<48x1xf32>
    %224 = vector.broadcast %223 : vector<48x1xf32> to vector<48x48xf32>
    %225 = arith.mulf %220, %224 : vector<48x48xf32>
    %226 = arith.truncf %225 : vector<48x48xf32> to vector<48x48xbf16>
    %cst_73 = arith.constant dense<0.000000e+00> : vector<8x48xf32>
    %227 = tpu.matmul %213, %226, %cst_73 {dimension_numbers = #tpu.dot_dimension_numbers<[1], [1], [0], [0], [0, 0, 1, 0], [], []>} : vector<8x48xbf16>, vector<48x48xbf16>, vector<8x48xf32> -> vector<8x48xf32>
    %228 = vector.extract_strided_slice %174 {offsets = [24, 0], sizes = [8, 48], strides = [1, 1]} : vector<64x48xbf16> to vector<8x48xbf16>
    %229 = vector.extract_strided_slice %174 {offsets = [56, 0], sizes = [8, 48], strides = [1, 1]} : vector<64x48xbf16> to vector<8x48xbf16>
    %230 = vector.extract_strided_slice %176 {offsets = [24, 0], sizes = [8, 48], strides = [1, 1]} : vector<32x48xbf16> to vector<8x48xbf16>
    %cst_74 = arith.constant dense<0.000000e+00> : vector<48x48xf32>
    %231 = tpu.matmul %228, %229, %cst_74 {dimension_numbers = #tpu.dot_dimension_numbers<[0], [0], [1], [1], [0, 1, 1, 1], [], []>} : vector<8x48xbf16>, vector<8x48xbf16>, vector<48x48xf32> -> vector<48x48xf32>
    %232 = arith.addf %231, %1 : vector<48x48xf32>
    %cst_75 = arith.constant dense<0xFF800000> : vector<48xf32>
    %233 = vector.multi_reduction <maximumf>, %232, %cst_75 [1] : vector<48x48xf32> to vector<48xf32>
    %234 = vector.shape_cast %233 : vector<48xf32> to vector<48x1xf32>
    %235 = vector.broadcast %234 : vector<48x1xf32> to vector<48x48xf32>
    %236 = arith.subf %232, %235 : vector<48x48xf32>
    %237 = math.exp %236 : vector<48x48xf32>
    %cst_76 = arith.constant dense<0.000000e+00> : vector<48xf32>
    %238 = vector.multi_reduction <add>, %237, %cst_76 [1] : vector<48x48xf32> to vector<48xf32>
    %239 = vector.shape_cast %238 : vector<48xf32> to vector<48x1xf32>
    %240 = tpu.reciprocal %239 {approx = true} : vector<48x1xf32> -> vector<48x1xf32>
    %241 = vector.broadcast %240 : vector<48x1xf32> to vector<48x48xf32>
    %242 = arith.mulf %237, %241 : vector<48x48xf32>
    %243 = arith.truncf %242 : vector<48x48xf32> to vector<48x48xbf16>
    %cst_77 = arith.constant dense<0.000000e+00> : vector<8x48xf32>
    %244 = tpu.matmul %230, %243, %cst_77 {dimension_numbers = #tpu.dot_dimension_numbers<[1], [1], [0], [0], [0, 0, 1, 0], [], []>} : vector<8x48xbf16>, vector<48x48xbf16>, vector<8x48xf32> -> vector<8x48xf32>
    %245 = tpu.concatenate %193, %210, %227, %244 in 0 : vector<8x48xf32>, vector<8x48xf32>, vector<8x48xf32>, vector<8x48xf32> -> vector<32x48xf32>
    %246 = arith.truncf %245 : vector<32x48xf32> to vector<32x48xbf16>
    %c1_78 = arith.constant 1 : index
    %c0_79 = arith.constant 0 : index
    %c0_80 = arith.constant 0 : index
    %247 = vector.load %arg8[%c1_78, %c0_79, %c0_80] : memref<2x32x32xbf16, #tpu.memory_space<vmem>>, vector<1x32x32xbf16>
    %248 = vector.shape_cast %247 : vector<1x32x32xbf16> to vector<32x32xbf16>
    %cst_81 = arith.constant dense<0.000000e+00> : vector<32x48xf32>
    %249 = tpu.matmul %248, %246, %cst_81 {dimension_numbers = #tpu.dot_dimension_numbers<[0], [0], [1], [1], [0, 1, 1, 1], [], []>} : vector<32x32xbf16>, vector<32x48xbf16>, vector<32x48xf32> -> vector<32x48xf32>
    %250 = arith.addf %143, %249 : vector<32x48xf32>
    %c1_82 = arith.constant 1 : index
    %c0_83 = arith.constant 0 : index
    %c0_84 = arith.constant 0 : index
    %251 = vector.load %arg9[%c1_82, %c0_83, %c0_84] : memref<2x32x1xf32, #tpu.memory_space<vmem>>, vector<1x32x1xf32>
    %252 = vector.shape_cast %251 : vector<1x32x1xf32> to vector<32x1xf32>
    %253 = arith.mulf %250, %250 : vector<32x48xf32>
    %cst_85 = arith.constant dense<0.000000e+00> : vector<48xf32>
    %254 = vector.multi_reduction <add>, %253, %cst_85 [0] : vector<32x48xf32> to vector<48xf32>
    %255 = vector.shape_cast %254 : vector<48xf32> to vector<1x48xf32>
    %cst_86 = arith.constant 3.200000e+01 : f32
    %256 = vector.broadcast %cst_86 : f32 to vector<1x48xf32>
    %257 = arith.divf %255, %256 : vector<1x48xf32>
    %cst_87 = arith.constant 9.99999997E-7 : f32
    %258 = vector.broadcast %cst_87 : f32 to vector<1x48xf32>
    %259 = arith.addf %257, %258 : vector<1x48xf32>
    %260 = math.rsqrt %259 : vector<1x48xf32>
    %261 = vector.broadcast %260 : vector<1x48xf32> to vector<32x48xf32>
    %262 = arith.mulf %250, %261 : vector<32x48xf32>
    %263 = vector.broadcast %252 : vector<32x1xf32> to vector<32x48xf32>
    %264 = arith.mulf %262, %263 : vector<32x48xf32>
    %265 = arith.truncf %264 : vector<32x48xf32> to vector<32x48xbf16>
    %c1_88 = arith.constant 1 : index
    %c0_89 = arith.constant 0 : index
    %c0_90 = arith.constant 0 : index
    %266 = vector.load %arg10[%c1_88, %c0_89, %c0_90] : memref<2x32x128xbf16, #tpu.memory_space<vmem>>, vector<1x32x128xbf16>
    %267 = vector.shape_cast %266 : vector<1x32x128xbf16> to vector<32x128xbf16>
    %cst_91 = arith.constant dense<0.000000e+00> : vector<128x48xf32>
    %268 = tpu.matmul %267, %265, %cst_91 {dimension_numbers = #tpu.dot_dimension_numbers<[0], [0], [1], [1], [0, 1, 1, 1], [], []>} : vector<32x128xbf16>, vector<32x48xbf16>, vector<128x48xf32> -> vector<128x48xf32>
    %269 = vector.extract_strided_slice %268 {offsets = [0, 0], sizes = [64, 48], strides = [1, 1]} : vector<128x48xf32> to vector<64x48xf32>
    %270 = vector.extract_strided_slice %268 {offsets = [64, 0], sizes = [64, 48], strides = [1, 1]} : vector<128x48xf32> to vector<64x48xf32>
    %271 = arith.negf %269 : vector<64x48xf32>
    %272 = math.exp %271 : vector<64x48xf32>
    %cst_92 = arith.constant 1.000000e+00 : f32
    %273 = vector.broadcast %cst_92 : f32 to vector<64x48xf32>
    %274 = arith.addf %273, %272 : vector<64x48xf32>
    %275 = arith.divf %273, %274 : vector<64x48xf32>
    %276 = arith.mulf %269, %275 : vector<64x48xf32>
    %277 = arith.mulf %276, %270 : vector<64x48xf32>
    %278 = arith.truncf %277 : vector<64x48xf32> to vector<64x48xbf16>
    %c1_93 = arith.constant 1 : index
    %c0_94 = arith.constant 0 : index
    %c0_95 = arith.constant 0 : index
    %279 = vector.load %arg11[%c1_93, %c0_94, %c0_95] : memref<2x64x32xbf16, #tpu.memory_space<vmem>>, vector<1x64x32xbf16>
    %280 = vector.shape_cast %279 : vector<1x64x32xbf16> to vector<64x32xbf16>
    %cst_96 = arith.constant dense<0.000000e+00> : vector<32x48xf32>
    %281 = tpu.matmul %280, %278, %cst_96 {dimension_numbers = #tpu.dot_dimension_numbers<[0], [0], [1], [1], [0, 1, 1, 1], [], []>} : vector<64x32xbf16>, vector<64x48xbf16>, vector<32x48xf32> -> vector<32x48xf32>
    %282 = arith.addf %250, %281 : vector<32x48xf32>
    %283 = vector.extract_strided_slice %282 {offsets = [0, 8], sizes = [32, 4], strides = [1, 1]} : vector<32x48xf32> to vector<32x4xf32>
    %284 = vector.extract_strided_slice %282 {offsets = [0, 20], sizes = [32, 4], strides = [1, 1]} : vector<32x48xf32> to vector<32x4xf32>
    %285 = vector.extract_strided_slice %282 {offsets = [0, 32], sizes = [32, 4], strides = [1, 1]} : vector<32x48xf32> to vector<32x4xf32>
    %286 = vector.extract_strided_slice %282 {offsets = [0, 44], sizes = [32, 4], strides = [1, 1]} : vector<32x48xf32> to vector<32x4xf32>
    %287 = tpu.concatenate %283, %284, %285, %286 in 1 : vector<32x4xf32>, vector<32x4xf32>, vector<32x4xf32>, vector<32x4xf32> -> vector<32x16xf32>
    %c0_97 = arith.constant 0 : index
    %c0_98 = arith.constant 0 : index
    %288 = vector.load %arg12[%c0_97, %c0_98] : memref<32x1xf32, #tpu.memory_space<vmem>>, vector<32x1xf32>
    %289 = arith.mulf %287, %287 : vector<32x16xf32>
    %cst_99 = arith.constant dense<0.000000e+00> : vector<16xf32>
    %290 = vector.multi_reduction <add>, %289, %cst_99 [0] : vector<32x16xf32> to vector<16xf32>
    %291 = vector.shape_cast %290 : vector<16xf32> to vector<1x16xf32>
    %cst_100 = arith.constant 3.200000e+01 : f32
    %292 = vector.broadcast %cst_100 : f32 to vector<1x16xf32>
    %293 = arith.divf %291, %292 : vector<1x16xf32>
    %cst_101 = arith.constant 9.99999997E-7 : f32
    %294 = vector.broadcast %cst_101 : f32 to vector<1x16xf32>
    %295 = arith.addf %293, %294 : vector<1x16xf32>
    %296 = math.rsqrt %295 : vector<1x16xf32>
    %297 = vector.broadcast %296 : vector<1x16xf32> to vector<32x16xf32>
    %298 = arith.mulf %287, %297 : vector<32x16xf32>
    %299 = vector.broadcast %288 : vector<32x1xf32> to vector<32x16xf32>
    %300 = arith.mulf %298, %299 : vector<32x16xf32>
    %c0_102 = arith.constant 0 : index
    %c0_103 = arith.constant 0 : index
    %301 = vector.load %arg13[%c0_102, %c0_103] : memref<32x16xf32, #tpu.memory_space<vmem>>, vector<32x16xf32>
    tpu.vector_store %arg13[%c0_102, %c0_103], %300 {strides = array<i32>} : memref<32x16xf32, #tpu.memory_space<vmem>>, vector<32x16xf32>,
    return
  }
  func.func @transform_0(%arg0: i32) -> (i32, i32) {
    %c0_i32 = arith.constant 0 : i32
    %c0_i32_0 = arith.constant 0 : i32
    %c0_i32_1 = arith.constant 0 : i32
    return %c0_i32, %c0_i32_0 : i32, i32
  }
  func.func @transform_1(%arg0: i32) -> (i32, i32) {
    %c0_i32 = arith.constant 0 : i32
    %c0_i32_0 = arith.constant 0 : i32
    %c0_i32_1 = arith.constant 0 : i32
    return %c0_i32, %c0_i32_0 : i32, i32
  }
  func.func @transform_2(%arg0: i32) -> (i32, i32) {
    %c0_i32 = arith.constant 0 : i32
    %c0_i32_0 = arith.constant 0 : i32
    %c0_i32_1 = arith.constant 0 : i32
    return %c0_i32, %c0_i32_0 : i32, i32
  }
  func.func @transform_3(%arg0: i32) -> (i32, i32) {
    %c0_i32 = arith.constant 0 : i32
    %c0_i32_0 = arith.constant 0 : i32
    %c0_i32_1 = arith.constant 0 : i32
    return %c0_i32, %c0_i32_0 : i32, i32
  }
  func.func @transform_4(%arg0: i32) -> (i32, i32) {
    %c0_i32 = arith.constant 0 : i32
    %c0_i32_0 = arith.constant 0 : i32
    %c0_i32_1 = arith.constant 0 : i32
    return %c0_i32, %c0_i32_0 : i32, i32
  }
  func.func @transform_5(%arg0: i32) -> (i32, i32, i32) {
    %c0_i32 = arith.constant 0 : i32
    %c0_i32_0 = arith.constant 0 : i32
    %c0_i32_1 = arith.constant 0 : i32
    %c0_i32_2 = arith.constant 0 : i32
    return %c0_i32, %c0_i32_0, %c0_i32_1 : i32, i32, i32
  }
  func.func @transform_6(%arg0: i32) -> (i32, i32, i32) {
    %c0_i32 = arith.constant 0 : i32
    %c0_i32_0 = arith.constant 0 : i32
    %c0_i32_1 = arith.constant 0 : i32
    %c0_i32_2 = arith.constant 0 : i32
    return %c0_i32, %c0_i32_0, %c0_i32_1 : i32, i32, i32
  }
  func.func @transform_7(%arg0: i32) -> (i32, i32, i32) {
    %c0_i32 = arith.constant 0 : i32
    %c0_i32_0 = arith.constant 0 : i32
    %c0_i32_1 = arith.constant 0 : i32
    %c0_i32_2 = arith.constant 0 : i32
    return %c0_i32, %c0_i32_0, %c0_i32_1 : i32, i32, i32
  }
  func.func @transform_8(%arg0: i32) -> (i32, i32, i32) {
    %c0_i32 = arith.constant 0 : i32
    %c0_i32_0 = arith.constant 0 : i32
    %c0_i32_1 = arith.constant 0 : i32
    %c0_i32_2 = arith.constant 0 : i32
    return %c0_i32, %c0_i32_0, %c0_i32_1 : i32, i32, i32
  }
  func.func @transform_9(%arg0: i32) -> (i32, i32, i32) {
    %c0_i32 = arith.constant 0 : i32
    %c0_i32_0 = arith.constant 0 : i32
    %c0_i32_1 = arith.constant 0 : i32
    %c0_i32_2 = arith.constant 0 : i32
    return %c0_i32, %c0_i32_0, %c0_i32_1 : i32, i32, i32
  }
  func.func @transform_10(%arg0: i32) -> (i32, i32, i32) {
    %c0_i32 = arith.constant 0 : i32
    %c0_i32_0 = arith.constant 0 : i32
    %c0_i32_1 = arith.constant 0 : i32
    %c0_i32_2 = arith.constant 0 : i32
    return %c0_i32, %c0_i32_0, %c0_i32_1 : i32, i32, i32
  }
  func.func @transform_11(%arg0: i32) -> (i32, i32) {
    %c0_i32 = arith.constant 0 : i32
    %c0_i32_0 = arith.constant 0 : i32
    %c0_i32_1 = arith.constant 0 : i32
    return %c0_i32, %c0_i32_0 : i32, i32
  }
  func.func @transform_12(%arg0: i32) -> (i32, i32) {
    %c0_i32 = arith.constant 0 : i32
    %c0_i32_0 = arith.constant 0 : i32
    %c0_i32_1 = arith.constant 0 : i32
    return %c0_i32, %c0_i32_0 : i32, i32
  }
}

</mosaic_0001>

<bundles_post_ra>
// kernel: tile.23
= control target key start
LH: loop header
LB: loop body
LE: loop exit
PB: predicated region body
PF: predicated region fallthrough
CT: control target
= control target key end

     0   :  { %s22_s0 = inlined_call_operand.vmem [shape: f32[12], index: 0, kind: input, shape index: {}]   ;;  %s23_s1 = inlined_call_operand.vmem [shape: f32[4,12], index: 1, kind: output, shape index: {}]  }
   0x1   :  { %v4_v0 = vld [vmem:[%s22_s0] ss:$0 sm:$0xff] }
   0x2   :  { %5 = vst [vmem:[%s23_s1] sm:$0xf] %v4_v0 }

// kernel: mul.18
= control target key start
LH: loop header
LB: loop body
LE: loop exit
PB: predicated region body
PF: predicated region fallthrough
CT: control target
= control target key end

     0   :  { %vm8_vm0 = vcmask 97280   ;;  %s40_s8 = smov 12   ;;  %s41_s9 = smov 24   ;;  %vm14_vm1 = vcmask 392480   ;;  %vm20_vm2 = vcmask 294080   ;;  %vm26_vm3 = vcmask 195680   ;;  %s58_s0 = inlined_call_operand.vmem [shape: f32[4,12], index: 0, kind: input, shape index: {}]   ;;  %s59_s1 = inlined_call_operand.vmem [shape: f32[48], index: 1, kind: output, shape index: {}]  }
   0x1   :  { %v5_v0 = vld [vmem:[%s58_s0] sm:$0xf]  ;;  %s39_s0 = smov 36  }
   0x2   :  { %6 = vst [vmem:[#allocation1] sm:$0xf] %v5_v0 }
   0x9   :  { %v11_v1 = vld [vmem:[#allocation1 + $0x3] sm:$0x1]   ;;  %v23_v2 = vld [vmem:[#allocation1 + $0x1] sm:$0x1]   ;;  %v7_v3 = vld [vmem:[#allocation1] sm:$0x1]  }
   0xa   :  { %12 = vrot.lane.b32.xlu0 %v11_v1, %s39_s0  ;;  %24 = vrot.lane.b32.xlu1 %v23_v2, %s40_s8  ;;  %v17_v4 = vld [vmem:[#allocation1 + $0x2] sm:$0x1]   ;;  %9 = vst.msk [vmem:[#allocation0] sm:$0x1] %vm8_vm0, %v7_v3  }
   0xe   :  { %18 = vrot.lane.b32.xlu0 %v17_v4, %s41_s9 }
  0x7c   :  { %v13_v5 = vpop.permute.xlu0 %12   ;;  %v25_v6 = vpop.permute.xlu1 %24  }
  0x7d   :  { %15 = vst.msk [vmem:[#allocation0] sm:$0x1] %vm14_vm1, %v13_v5  }
  0x80   :  { %v19_v7 = vpop.permute.xlu0 %18  }
  0x81   :  { %21 = vst.msk [vmem:[#allocation0] sm:$0x1] %vm20_vm2, %v19_v7  }
  0x82   :  { %27 = vst.msk [vmem:[#allocation0] sm:$0x1] %vm26_vm3, %v25_v6  }
  0x89   :  { %v32_v8 = vld [vmem:[#allocation0] sm:$0x1] }
  0x8a   :  { %35 = vst [vmem:[%s59_s1] sm:$0x1] %v32_v8 }

// kernel: multi_span_gist_forward.1
= control target key start
LH: loop header
LB: loop body
LE: loop exit
PB: predicated region body
PF: predicated region fallthrough
CT: control target
= control target key end

     0   :  { %v4254_v0 = vmov 0   ;;  %vm84_vm0 = vcmask 392192   ;;  %vm164_vm1 = vcmask 261120   ;;  %v4255_v49 = vmov 0.0   ;;  %s4258_s26 = smov 120   ;;  %s4259_s27 = smov 96   ;;  %s5264_s5 = inlined_call_operand.vmem [shape: f32[2,32,1], index: 5, kind: input, shape index: {}]   ;;  %s5265_s6 = inlined_call_operand.vmem [shape: bf16[2,32,96], index: 6, kind: input, shape index: {}]   ;;  %s5266_s0 = inlined_call_operand.vmem [shape: f32[32,48], index: 0, kind: input, shape index: {}]   ;;  %s5267_s2 = inlined_call_operand.vmem [shape: f32[64,48], index: 2, kind: input, shape index: {}]   ;;  %s5268_s3 = inlined_call_operand.vmem [shape: f32[64,48], index: 3, kind: input, shape index: {}]   ;;  %s5269_s4 = inlined_call_operand.vmem [shape: f32[64,48], index: 4, kind: input, shape index: {}]   ;;  %s5270_s1 = inlined_call_operand.vmem [shape: f32[48,48], index: 1, kind: input, shape index: {}]   ;;  %s5271_s7 = inlined_call_operand.vmem [shape: bf16[2,32,32], index: 7, kind: input, shape index: {}]   ;;  %s5272_s9 = inlined_call_operand.vmem [shape: bf16[2,32,128], index: 9, kind: input, shape index: {}]   ;;  %s5273_s10 = inlined_call_operand.vmem [shape: bf16[2,64,32], index: 10, kind: input, shape index: {}]   ;;  %s5274_s8 = inlined_call_operand.vmem [shape: f32[2,32,1], index: 8, kind: input, shape index: {}]   ;;  %s5275_s11 = inlined_call_operand.vmem [shape: f32[32,1], index: 11, kind: input, shape index: {}]   ;;  %s5276_s12 = inlined_call_operand.vmem [shape: f32[32,16], index: 12, kind: output, shape index: {}]  }
   0x1   :  { %3933 = vset.pattern.permute.xlu1 %v4254_v0  ;;  %3932 = vset.pattern.permute.xlu0 %v4254_v0  ;;  %v78_v1 = vld [vmem:[%s5264_s5 + $0x10] sm:$0xff]  ;;  %v76_v2 = vld [vmem:[%s5264_s5] sm:$0xff]  ;;  %v79_v3 = vld [vmem:[%s5264_s5 + $0x18] sm:$0xff]  ;;  %vm4256_vm2 = vmmov 0   ;;  %vm272_vm3 = vcmask 1043456   ;;  %vm360_vm4 = vcmask 64512  }
   0x2   :  { %118 = vperm.xlu0 %3932, %v78_v1   ;;  %108 = vperm.xlu1 %3933, %v76_v2   ;;  %v77_v4 = vld [vmem:[%s5264_s5 + $0x8] sm:$0xff]  ;;  %v3934_v5 = vld [vmem:[%s5265_s6] sm:$0xff]   ;;  %v44_v11 = vld [vmem:[%s5266_s0 + $0x10] sm:$0xff]  ;;  %vm1599_vm5 = vcmask 523264   ;;  %s4260_s28 = smov 104   ;;  %vm3294_vm6 = vcmask 31744  }
   0x3   :  { %v3935_v6 = vld [vmem:[%s5265_s6 + $0x8] sm:$0xff]   ;;  %v42_v7 = vld [vmem:[%s5266_s0] sm:$0xff]  ;;  %v82_v12 = vmul.f32 %v44_v11, %v44_v11  ;;  %v45_v15 = vld [vmem:[%s5266_s0 + $0x18] sm:$0xff]  ;;  %3637 = vmatprep.subr.bf16.mxu1 %v4255_v49  ;;  %3639 = vmatprep.mubr.msk.bf16.mxu1 %vm4256_vm2, %v4255_v49  ;;  %vm3303_vm7 = vcmask 97280   ;;  %vm3316_vm8 = vcmask 130048  }
   0x4   :  { %v43_v8 = vld [vmem:[%s5266_s0 + $0x8] sm:$0xff]  ;;  %v80_v9 = vmul.f32 %v42_v7, %v42_v7  ;;  %v83_v17 = vmul.f32 %v45_v15, %v45_v15  ;;  %v54_v53 = vld [vmem:[%s5267_s2 + $0x10] sm:$0xff]  ;;  %v60_v61 = vld [vmem:[%s5268_s3] sm:$0xff] }
   0x5   :  { %v81_v10 = vmul.f32 %v43_v8, %v43_v8  ;;  %v88_v18 = vsel %vm84_vm0, %v82_v12, 0.0  ;;  %v62_v55 = vld [vmem:[%s5268_s3 + $0x10] sm:$0xff]  ;;  %v53_v60 = vld [vmem:[%s5267_s2 + $0x8] sm:$0xff]  ;;  %v52_v1 = vld [vmem:[%s5267_s2] sm:$0xff] }
   0x6   :  { %123 = vperm.xlu0 %3932, %v79_v3   ;;  %113 = vperm.xlu1 %3933, %v77_v4   ;;  %v85_v13 = vsel %vm84_vm0, %v80_v9, 0.0  ;;  %v90_v20 = vsel %vm84_vm0, %v83_v17, 0.0  ;;  %v61_v62 = vld [vmem:[%s5268_s3 + $0x8] sm:$0xff]  ;;  %v55_v2 = vld [vmem:[%s5267_s2 + $0x18] sm:$0xff]  ;;  %v70_v4 = vld [vmem:[%s5269_s4 + $0x10] sm:$0xff] }
   0x7   :  { %v86_v14 = vsel %vm84_vm0, %v81_v10, 0.0  ;;  %v58_v9 = vld [vmem:[%s5267_s2 + $0x30] sm:$0xff] }
   0x8   :  { %v87_v16 = vadd.f32 %v86_v14, %v85_v13 }
   0xa   :  { %v89_v19 = vadd.f32 %v88_v18, %v87_v16 }
   0xc   :  { %v91_v21 = vadd.f32 %v90_v20, %v89_v19  ;;  %v56_v19 = vld [vmem:[%s5267_s2 + $0x20] sm:$0xff]  ;;  %v63_v20 = vld [vmem:[%s5268_s3 + $0x18] sm:$0xff] }
   0xe   :  { %v92_v22 = vrot.slane %v91_v21, 4 }
  0x10   :  { %v93_v23 = vadd.f32 %v92_v22, %v91_v21  ;;  %v59_v22 = vld [vmem:[%s5267_s2 + $0x38] sm:$0xff] }
  0x12   :  { %v94_v24 = vrot.slane %v93_v23, 2 }
  0x14   :  { %v95_v25 = vadd.f32 %v94_v24, %v93_v23 }
  0x16   :  { %v96_v26 = vrot.slane %v95_v25, 1 }
  0x18   :  { %v97_v27 = vadd.f32 %v96_v26, %v95_v25 }
  0x1a   :  { %v99_v28 = vmul.f32 0.03125, %v97_v27 }
  0x1c   :  { %v100_v29 = vadd.f32 1e-06, %v99_v28 }
  0x1e   :  { %3954 = vrsqrt.f32 %v100_v29 }
  0x24   :  { %148 = vxpose.xlu0.c.b16.start [1/2] (short) (narrow) %v3934_v5, 96 }
  0x28   :  { %149 = vxpose.xlu0.c.b16.end [2/2] (short) (narrow) %v3935_v6, 96  ;;  %v71_v6 = vld [vmem:[%s5269_s4 + $0x18] sm:$0xff] }
  0x2b   :  { %v3955_v30 = vpop.eup %3954 }
  0x2c   :  { %v104_v33 = vmul.f32 %v3955_v30, %v44_v11  ;;  %v102_v34 = vmul.f32 %v3955_v30, %v42_v7  ;;  %v105_v35 = vmul.f32 %v3955_v30, %v45_v15  ;;  %v103_v36 = vmul.f32 %v3955_v30, %v43_v8  ;;  %v69_v11 = vld [vmem:[%s5269_s4 + $0x8] sm:$0xff] }
  0x7d   :  { %v119_v31 = vpop.permute.xlu0 %118  ;;  %v109_v32 = vpop.permute.xlu1 %108 }
  0x7e   :  { %v128_v39 = vmul.f32 %v119_v31, %v104_v33  ;;  %v126_v40 = vmul.f32 %v109_v32, %v102_v34  ;;  %v66_v31 = vld [vmem:[%s5268_s3 + $0x30] sm:$0xff]  ;;  %v67_v32 = vld [vmem:[%s5268_s3 + $0x38] sm:$0xff]  ;;  %v68_v33 = vld [vmem:[%s5269_s4] sm:$0xff] }
  0x81   :  { %v124_v37 = vpop.permute.xlu0 %123  ;;  %v114_v38 = vpop.permute.xlu1 %113 }
  0x82   :  { %v129_v41 = vmul.f32 %v124_v37, %v105_v35  ;;  %v127_v42 = vmul.f32 %v114_v38, %v103_v36  ;;  %v75_v37 = vld [vmem:[%s5269_s4 + $0x38] sm:$0xff] }
  0x84   :  { %v131_v43 = vpack.c.bf16 %v129_v41, %v128_v39  ;;  %v130_v44 = vpack.c.bf16 %v127_v42, %v126_v40  ;;  %v57_v39 = vld [vmem:[%s5267_s2 + $0x28] sm:$0xff] }
  0x86   :  { %3621 = vmatprep.subr.bf16.mxu0 %v131_v43  ;;  %v156_v45 = vpop.trf.xlu0 }
  0x87   :  { %3622 = vmatpush3.bf16.msra.mxu0 %v131_v43  ;;  %3625 = vmatprep.mubr.msk.bf16.mxu0 %vm164_vm1, %v156_v45  ;;  %v64_v45 = vld [vmem:[%s5268_s3 + $0x20] sm:$0xff] }
  0x88   :  { %3623 = vmatprep.subr.bf16.mxu0 %v130_v44 }
  0x8a   :  { %v157_v46 = vpop.trf.xlu0 }
  0x8b   :  { %3624 = vmatpush3.bf16.msra.mxu0 %v130_v44 }
  0x8c   :  { %3651 = vmatprep.subr.bf16.mxu0 %v4255_v49 }
  0x8e   :  { %3626 = vmatmul.mubr.msk.bf16.vlgmr.msra.gmra.mxu0 %vm164_vm1, %v157_v46  ;;  %v158_v47 = vpop.trf.xlu0  ;;  %v65_v46 = vld [vmem:[%s5268_s3 + $0x28] sm:$0xff] }
  0x8f   :  { %3629 = vmatprep.mubr.msk.bf16.mxu0 %vm164_vm1, %v158_v47 }
  0x92   :  { %v159_v48 = vpop.trf.xlu0 }
  0x96   :  { %3630 = vmatmul.mubr.msk.bf16.gmra.mxu0 %vm164_vm1, %v159_v48 }
 0x14e   :  { %v3627_v50 = vpop.f32.mrf.mxu0 }
 0x14f   :  { %v276_v54 = vrot.slane %v3627_v50, 4  ;;  %v300_v0 = vmul.f32 %v3627_v50, %v54_v53  ;;  %v74_v53 = vld [vmem:[%s5269_s4 + $0x30] sm:$0xff] }
 0x150   :  { %v217_v51 = vpop.f32.mrf.mxu0 }
 0x151   :  { %v273_v58 = vrot.slane %v217_v51, 4  ;;  %v298_v16 = vmul.f32 %v217_v51, %v52_v1 }
 0x152   :  { %v3628_v52 = vpop.f32.mrf.mxu0 }
 0x153   :  { %v278_v56 = vrot.slane %v3628_v52, 4  ;;  %v301_v17 = vmul.f32 %v3628_v52, %v55_v2 }
 0x154   :  { %v220_v57 = vpop.f32.mrf.mxu0 }
 0x155   :  { %v279_v59 = vsel %vm272_vm3, %v276_v54, %v278_v56  ;;  %v274_v63 = vrot.slane %v220_v57, 4  ;;  %v299_v12 = vmul.f32 %v220_v57, %v53_v60 }
 0x156   :  { %v308_v3 = vmul.f32 %v279_v59, %v62_v55  ;;  %v3631_v5 = vpop.f32.mrf.mxu0  ;;  %v325_v23 = vmul.f32 %v279_v59, %v71_v6  ;;  %v73_v59 = vld [vmem:[%s5269_s4 + $0x28] sm:$0xff] }
 0x157   :  { %v275_v7 = vsel %vm272_vm3, %v273_v58, %v274_v63  ;;  %v277_v8 = vsel %vm272_vm3, %v274_v63, %v276_v54  ;;  %v284_v25 = vrot.slane %v3631_v5, 4  ;;  %v304_v26 = vmul.f32 %v3631_v5, %v58_v9  ;;  %v72_v54 = vld [vmem:[%s5269_s4 + $0x20] sm:$0xff] }
 0x158   :  { %v316_v10 = vadd.f32 %v308_v3, %v300_v0  ;;  %v306_v13 = vmul.f32 %v275_v7, %v60_v61  ;;  %v307_v14 = vmul.f32 %v277_v8, %v61_v62  ;;  %v233_v15 = vpop.f32.mrf.mxu0  ;;  %v324_v18 = vmul.f32 %v277_v8, %v70_v4 }
 0x159   :  { %v280_v21 = vrot.slane %v233_v15, 4  ;;  %v323_v28 = vmul.f32 %v275_v7, %v69_v11  ;;  %v302_v35 = vmul.f32 %v233_v15, %v56_v19  ;;  %v160_v19 = vpop.trf.xlu0 }
 0x15a   :  { %v315_v24 = vadd.f32 %v307_v14, %v299_v12  ;;  %v3632_v27 = vpop.f32.mrf.mxu0  ;;  %v332_v29 = vadd.f32 %v324_v18, %v316_v10  ;;  %v314_v41 = vadd.f32 %v306_v13, %v298_v16  ;;  %3633 = vmatprep.mubr.msk.bf16.mxu0 %vm164_vm1, %v160_v19 }
 0x15b   :  { %v281_v30 = vsel %vm272_vm3, %v278_v56, %v280_v21  ;;  %v286_v34 = vrot.slane %v3632_v27, 4  ;;  %v305_v38 = vmul.f32 %v3632_v27, %v59_v22 }
 0x15c   :  { %v309_v36 = vmul.f32 %v281_v30, %v63_v20  ;;  %v236_v40 = vpop.f32.mrf.mxu0  ;;  %v331_v42 = vadd.f32 %v323_v28, %v315_v24  ;;  %v326_v2 = vmul.f32 %v281_v30, %v72_v54  ;;  %v4481_v30 = vld [vmem:[%s5270_s1] sm:$0xff] }
 0x15d   :  { %v287_v43 = vsel %vm272_vm3, %v284_v25, %v286_v34  ;;  %v297_v44 = vsel %vm272_vm3, %v286_v34, %v273_v58  ;;  %v282_v47 = vrot.slane %v236_v40, 4  ;;  %v303_v58 = vmul.f32 %v236_v40, %v57_v39  ;;  %v161_v20 = vpop.trf.xlu0  ;;  %v4487_v34 = vld [vmem:[%s5270_s1 + $0x28] sm:$0xff] }
 0x15e   :  { %v317_v48 = vadd.f32 %v309_v36, %v301_v17  ;;  %v312_v50 = vmul.f32 %v287_v43, %v66_v31  ;;  %v313_v51 = vmul.f32 %v297_v44, %v67_v32  ;;  %v322_v52 = vmul.f32 %v297_v44, %v68_v33  ;;  %3634 = vmatmul.mubr.msk.bf16.gmra.mxu0 %vm164_vm1, %v161_v20  ;;  %v4503_v44 = vld [vmem:[%s5270_s1 + $0x18] sm:$0xff] }
 0x15f   :  { %v329_v55 = vmul.f32 %v287_v43, %v75_v37  ;;  %v283_v56 = vsel %vm272_vm3, %v280_v21, %v282_v47  ;;  %v285_v57 = vsel %vm272_vm3, %v282_v47, %v284_v25  ;;  %3657 = vmatprep.mubr.msk.bf16.mxu0 %vm4256_vm2, %v4255_v49  ;;  %v4494_v37 = vld [vmem:[%s5270_s1 + $0x10] sm:$0xff]  ;;  %v4510_v47 = vld [vmem:[%s5270_s1 + $0x8] sm:$0xff] }
 0x160   :  { %v320_v60 = vadd.f32 %v312_v50, %v304_v26  ;;  %v321_v61 = vadd.f32 %v313_v51, %v305_v38  ;;  %v310_v62 = vmul.f32 %v283_v56, %v64_v45  ;;  %v311_v63 = vmul.f32 %v285_v57, %v65_v46 }
 0x161   :  { %v328_v0 = vmul.f32 %v285_v57, %v74_v53  ;;  %v330_v1 = vadd.f32 %v322_v52, %v314_v41  ;;  %v333_v3 = vadd.f32 %v325_v23, %v317_v48  ;;  %v327_v7 = vmul.f32 %v283_v56, %v73_v59 }
 0x162   :  { %v337_v4 = vadd.f32 %v329_v55, %v321_v61  ;;  %v319_v5 = vadd.f32 %v311_v63, %v303_v58  ;;  %v318_v6 = vadd.f32 %v310_v62, %v302_v35 }
 0x163   :  { %v4448_v8 = vpack.c.bf16 %v331_v42, %v330_v1  ;;  %v4450_v9 = vpack.c.bf16 %v333_v3, %v332_v29  ;;  %v336_v10 = vadd.f32 %v328_v0, %v320_v60  ;;  %v4476_v29 = vld [vmem:[%s5270_s1 + $0x20] sm:$0xff] }
 0x164   :  { %v334_v11 = vadd.f32 %v326_v2, %v318_v6  ;;  %v335_v12 = vadd.f32 %v327_v7, %v319_v5 }
 0x165   :  { %344 = vxpose.xlu1.c.b16.start.end [1/1] (short) (narrow) %v4448_v8, 48  ;;  %v4453_v13 = vpack.c.bf16 %v337_v4, %v336_v10 }
 0x166   :  { %v4455_v14 = vpack.c.bf16 %v335_v12, %v334_v11 }
 0x168   :  { %v371_v15 = vsel %vm272_vm3, %v4455_v14, 0 }
 0x169   :  { %3638 = vmatpush3.bf16.msra.mxu1 %v371_v15 }
 0x16a   :  { %3675 = vmatprep.subr.bf16.mxu1 %v4255_v49 }
 0x1c7   :  { %v352_v16 = vpop.trf.xlu1 }
 0x1c8   :  { %3640 = vmatmul.mubr.msk.bf16.vlgmr.msra.gmra.mxu1 %vm360_vm4, %v352_v16 }
 0x1c9   :  { %3643 = vmatprep.mubr.msk.bf16.mxu1 %vm4256_vm2, %v4255_v49 }
 0x1cb   :  { %v353_v17 = vpop.trf.xlu1 }
 0x1cf   :  { %v354_v18 = vpop.trf.xlu1 }
 0x1d0   :  { %3644 = vmatmul.mubr.msk.bf16.gmra.mxu1 %vm360_vm4, %v353_v17 }
 0x1d1   :  { %3647 = vmatprep.mubr.msk.bf16.mxu1 %vm4256_vm2, %v4255_v49 }
 0x1d8   :  { %3648 = vmatmul.mubr.msk.bf16.gmra.mxu1 %vm360_vm4, %v354_v18 }
 0x1d9   :  { %3681 = vmatprep.mubr.msk.bf16.mxu1 %vm4256_vm2, %v4255_v49 }
 0x288   :  { %v407_v21 = vpop.f32.mrf.mxu1 }
 0x289   :  { %v408_v35 = vadd.f32 %v407_v21, %v4481_v30 }
 0x28a   :  { %v3641_v22 = vpop.f32.mrf.mxu1 }
 0x28b   :  { %v430_v42 = vsel %vm84_vm0, %v408_v35, -inf  ;;  %v3635_v22 = vpop.f32.mrf.mxu0 }
 0x28c   :  { %v410_v23 = vpop.f32.mrf.mxu1 }
 0x28d   :  { %v411_v48 = vadd.f32 %v410_v23, %v4510_v47  ;;  %v249_v23 = vpop.f32.mrf.mxu0 }
 0x28e   :  { %v3642_v24 = vpop.f32.mrf.mxu1 }
 0x28f   :  { %v433_v51 = vsel %vm84_vm0, %v411_v48, -inf  ;;  %v3636_v24 = vpop.f32.mrf.mxu0 }
 0x290   :  { %v415_v25 = vpop.f32.mrf.mxu1 }
 0x291   :  { %v416_v41 = vadd.f32 %v415_v25, %v4494_v37  ;;  %v4521_v25 = vpack.c.bf16 %v3636_v24, %v3635_v22 }
 0x292   :  { %v3645_v26 = vpop.f32.mrf.mxu1 }
 0x293   :  { %v436_v46 = vsel %vm84_vm0, %v416_v41, -inf  ;;  %v552_v26 = vrot.slane %v4448_v8, 4 }
 0x294   :  { %v418_v27 = vpop.f32.mrf.mxu1 }
 0x295   :  { %v419_v45 = vadd.f32 %v418_v27, %v4503_v44 }
 0x296   :  { %v3646_v28 = vpop.f32.mrf.mxu1 }
 0x297   :  { %v439_v50 = vsel %vm84_vm0, %v419_v45, -inf }
 0x298   :  { %v423_v31 = vpop.f32.mrf.mxu1 }
 0x299   :  { %v424_v32 = vadd.f32 %v423_v31, %v4476_v29 }
 0x29a   :  { %v3649_v33 = vpop.f32.mrf.mxu1 }
 0x29b   :  { %v442_v36 = vsel %vm84_vm0, %v424_v32, -inf }
 0x29c   :  { %443 = vmax.xlane.f32.xlu0 %v442_v36  ;;  %v426_v38 = vpop.f32.mrf.mxu1 }
 0x29d   :  { %v427_v39 = vadd.f32 %v426_v38, %v4487_v34 }
 0x29e   :  { %v3650_v40 = vpop.f32.mrf.mxu1 }
 0x29f   :  { %v445_v43 = vsel %vm84_vm0, %v427_v39, -inf }
 0x2a0   :  { %431 = vmax.xlane.f32.xlu0 %v430_v42  ;;  %446 = vmax.xlane.f32.xlu1 %v445_v43 }
 0x2a4   :  { %437 = vmax.xlane.f32.xlu1 %v436_v46 }
 0x2a8   :  { %440 = vmax.xlane.f32.xlu1 %v439_v50 }
 0x2ac   :  { %434 = vmax.xlane.f32.xlu1 %v433_v51 }
 0x325   :  { %v444_v52 = vpop.xlane.xlu0 %443 }
 0x326   :  { %v452_v53 = vsub.f32 %v424_v32, %v444_v52 }
 0x328   :  { %v462_v54 = vmul.f32 1.442695, %v452_v53 }
 0x329   :  { %v432_v55 = vpop.xlane.xlu0 %431  ;;  %v447_v56 = vpop.xlane.xlu1 %446 }
 0x32a   :  { %3956 = vpow2.f32 %v462_v54  ;;  %v453_v57 = vsub.f32 %v427_v39, %v447_v56  ;;  %v448_v58 = vsub.f32 %v408_v35, %v432_v55 }
 0x32c   :  { %v464_v59 = vmul.f32 1.442695, %v453_v57  ;;  %v454_v62 = vmul.f32 1.442695, %v448_v58  ;;  %v252_v57 = vpop.f32.mrf.mxu0  ;;  %v571_v58 = vrot.slane %v4455_v14, 4 }
 0x32d   :  { %v438_v60 = vpop.xlane.xlu1 %437 }
 0x32e   :  { %v450_v61 = vsub.f32 %v416_v41, %v438_v60  ;;  %3958 = vpow2.f32 %v464_v59  ;;  %v4531_v59 = vpack.c.bf16 %v252_v57, %v249_v23  ;;  %v582_v60 = vsel %vm272_vm3, %v571_v58, 0 }
 0x330   :  { %v458_v63 = vmul.f32 1.442695, %v450_v61 }
 0x331   :  { %v441_v0 = vpop.xlane.xlu1 %440 }
 0x332   :  { %3960 = vpow2.f32 %v458_v63  ;;  %v451_v1 = vsub.f32 %v419_v45, %v441_v0 }
 0x333   :  { %3962 = vpow2.f32 %v454_v62 }
 0x334   :  { %v460_v2 = vmul.f32 1.442695, %v451_v1 }
 0x335   :  { %v435_v3 = vpop.xlane.xlu1 %434 }
 0x336   :  { %3964 = vpow2.f32 %v460_v2  ;;  %v449_v4 = vsub.f32 %v411_v48, %v435_v3 }
 0x337   :  { %v3957_v5 = vpop.eup %3956 }
 0x338   :  { %v456_v6 = vmul.f32 1.442695, %v449_v4  ;;  %v478_v7 = vsel %vm84_vm0, %v3957_v5, 0.0 }
 0x339   :  { %479 = vadd.xlane.f32.xlu0 %v478_v7 }
 0x33a   :  { %3966 = vpow2.f32 %v456_v6 }
 0x33b   :  { %v3959_v10 = vpop.eup %3958 }
 0x33c   :  { %v481_v11 = vsel %vm84_vm0, %v3959_v10, 0.0 }
 0x33d   :  { %482 = vadd.xlane.f32.xlu1 %v481_v11 }
 0x33f   :  { %v3961_v12 = vpop.eup %3960 }
 0x340   :  { %v472_v15 = vsel %vm84_vm0, %v3961_v12, 0.0  ;;  %v3963_v16 = vpop.eup %3962 }
 0x341   :  { %473 = vadd.xlane.f32.xlu0 %v472_v15  ;;  %v466_v18 = vsel %vm84_vm0, %v3963_v16, 0.0 }
 0x343   :  { %v3965_v17 = vpop.eup %3964 }
 0x344   :  { %v475_v19 = vsel %vm84_vm0, %v3965_v17, 0.0 }
 0x345   :  { %467 = vadd.xlane.f32.xlu0 %v466_v18  ;;  %476 = vadd.xlane.f32.xlu1 %v475_v19 }
 0x347   :  { %v3967_v20 = vpop.eup %3966 }
 0x348   :  { %v469_v21 = vsel %vm84_vm0, %v3967_v20, 0.0 }
 0x349   :  { %470 = vadd.xlane.f32.xlu1 %v469_v21 }
 0x372   :  { %554 = vxpose.xlu0.c.b16.start.end [1/1] (short) (narrow) %v552_v26, 48 }
 0x3c2   :  { %v480_v27 = vpop.xlane.xlu0 %479 }
 0x3c3   :  { %3968 = vrcp.f32 %v480_v27 }
 0x3c6   :  { %v483_v28 = vpop.xlane.xlu1 %482 }
 0x3c7   :  { %3970 = vrcp.f32 %v483_v28 }
 0x3ca   :  { %v474_v31 = vpop.xlane.xlu0 %473 }
 0x3cb   :  { %3972 = vrcp.f32 %v474_v31 }
 0x3ce   :  { %v477_v32 = vpop.xlane.xlu1 %476  ;;  %v468_v33 = vpop.xlane.xlu0 %467 }
 0x3cf   :  { %3974 = vrcp.f32 %v477_v32 }
 0x3d0   :  { %v3969_v36 = vpop.eup %3968 }
 0x3d1   :  { %v494_v39 = vmul.f32 %v3969_v36, %v3957_v5 }
 0x3d2   :  { %v471_v35 = vpop.xlane.xlu1 %470 }
 0x3d3   :  { %3976 = vrcp.f32 %v471_v35 }
 0x3d4   :  { %3978 = vrcp.f32 %v468_v33  ;;  %v3971_v38 = vpop.eup %3970  ;;  %v562_v61 = vpop.trf.xlu0 }
 0x3d5   :  { %v495_v40 = vmul.f32 %v3971_v38, %v3959_v10 }
 0x3d7   :  { %v498_v41 = vpack.c.bf16 %v495_v40, %v494_v39 }
 0x3d8   :  { %v3973_v42 = vpop.eup %3972  ;;  %v563_v14 = vpop.trf.xlu0 }
 0x3d9   :  { %v509_v8 = vsel %vm84_vm0, %v498_v41, 0  ;;  %v492_v45 = vmul.f32 %v3973_v42, %v3961_v12 }
 0x3da   :  { %3652 = vmatpush3.bf16.xpose.msra.mxu0 %v509_v8 }
 0x3db   :  { %3653 = vmatprep.subr.bf16.mxu0 %v4255_v49 }
 0x3dc   :  { %v3975_v43 = vpop.eup %3974  ;;  %v564_v62 = vpop.trf.xlu0 }
 0x3dd   :  { %v493_v46 = vmul.f32 %v3975_v43, %v3965_v17 }
 0x3df   :  { %v497_v50 = vpack.c.bf16 %v493_v46, %v492_v45 }
 0x3e0   :  { %v3977_v48 = vpop.eup %3976 }
 0x3e1   :  { %v3979_v51 = vpop.eup %3978  ;;  %v506_v52 = vsel %vm84_vm0, %v497_v50, 0  ;;  %v491_v53 = vmul.f32 %v3977_v48, %v3967_v20 }
 0x3e2   :  { %3654 = vmatpush3.bf16.xpose.msra.mxu0 %v506_v52  ;;  %v490_v54 = vmul.f32 %v3979_v51, %v3963_v16 }
 0x3e3   :  { %3655 = vmatprep.subr.bf16.mxu0 %v4255_v49 }
 0x3e4   :  { %v496_v55 = vpack.c.bf16 %v491_v53, %v490_v54 }
 0x3e6   :  { %v503_v56 = vsel %vm84_vm0, %v496_v55, 0 }
 0x3ea   :  { %3656 = vmatpush3.bf16.xpose.msra.mxu0 %v503_v56 }
 0x3eb   :  { %3661 = vmatprep.subr.bf16.mxu0 %v4255_v49 }
 0x3f1   :  { %3658 = vmatmul.mubr.msk.bf16.vlgmr.msra.gmra.mxu0 %vm84_vm0, %v4531_v59 }
 0x3f2   :  { %3662 = vmatpush3.bf16.msra.mxu0 %v582_v60  ;;  %3663 = vmatprep.mubr.msk.bf16.mxu0 %vm4256_vm2, %v4255_v49 }
 0x3f3   :  { %3699 = vmatprep.subr.bf16.mxu0 %v4255_v49 }
 0x3f9   :  { %3664 = vmatmul.mubr.msk.bf16.vlgmr.msra.gmra.mxu0 %vm360_vm4, %v562_v61 }
 0x3fa   :  { %3667 = vmatprep.mubr.msk.bf16.mxu0 %vm4256_vm2, %v4255_v49 }
 0x401   :  { %3668 = vmatmul.mubr.msk.bf16.gmra.mxu0 %vm360_vm4, %v563_v14 }
 0x402   :  { %3671 = vmatprep.mubr.msk.bf16.mxu0 %vm4256_vm2, %v4255_v49 }
 0x409   :  { %3672 = vmatmul.mubr.msk.bf16.gmra.mxu0 %vm360_vm4, %v564_v62 }
 0x40a   :  { %3705 = vmatprep.mubr.msk.bf16.mxu0 %vm4256_vm2, %v4255_v49 }
 0x4b1   :  { %v4548_v63 = vpop.f32.mrf.mxu0 }
 0x4b3   :  { %v3659_v0 = vpop.f32.mrf.mxu0 }
 0x4b5   :  { %v548_v1 = vpop.f32.mrf.mxu0 }
 0x4b7   :  { %v3660_v2 = vpop.f32.mrf.mxu0 }
 0x4b9   :  { %v618_v3 = vpop.f32.mrf.mxu0 }
 0x4ba   :  { %v619_v27 = vadd.f32 %v618_v3, %v4481_v30 }
 0x4bb   :  { %v3665_v4 = vpop.f32.mrf.mxu0 }
 0x4bc   :  { %v641_v32 = vsel %vm84_vm0, %v619_v27, -inf }
 0x4bd   :  { %v621_v5 = vpop.f32.mrf.mxu0 }
 0x4be   :  { %v622_v31 = vadd.f32 %v621_v5, %v4510_v47 }
 0x4bf   :  { %v3666_v6 = vpop.f32.mrf.mxu0 }
 0x4c0   :  { %v644_v33 = vsel %vm84_vm0, %v622_v31, -inf }
 0x4c1   :  { %v626_v7 = vpop.f32.mrf.mxu0 }
 0x4c2   :  { %v627_v22 = vadd.f32 %v626_v7, %v4494_v37 }
 0x4c3   :  { %v3669_v10 = vpop.f32.mrf.mxu0 }
 0x4c4   :  { %v647_v26 = vsel %vm84_vm0, %v627_v22, -inf }
 0x4c5   :  { %v629_v11 = vpop.f32.mrf.mxu0 }
 0x4c6   :  { %v630_v24 = vadd.f32 %v629_v11, %v4503_v44 }
 0x4c7   :  { %v3670_v12 = vpop.f32.mrf.mxu0 }
 0x4c8   :  { %v650_v28 = vsel %vm84_vm0, %v630_v24, -inf }
 0x4c9   :  { %v634_v15 = vpop.f32.mrf.mxu0 }
 0x4ca   :  { %v635_v16 = vadd.f32 %v634_v15, %v4476_v29 }
 0x4cb   :  { %v3673_v17 = vpop.f32.mrf.mxu0 }
 0x4cc   :  { %v653_v18 = vsel %vm84_vm0, %v635_v16, -inf }
 0x4cd   :  { %654 = vmax.xlane.f32.xlu1 %v653_v18  ;;  %v637_v19 = vpop.f32.mrf.mxu0 }
 0x4ce   :  { %v638_v20 = vadd.f32 %v637_v19, %v4487_v34 }
 0x4cf   :  { %v3674_v21 = vpop.f32.mrf.mxu0 }
 0x4d0   :  { %v656_v23 = vsel %vm84_vm0, %v638_v20, -inf }
 0x4d1   :  { %657 = vmax.xlane.f32.xlu1 %v656_v23 }
 0x4d5   :  { %648 = vmax.xlane.f32.xlu1 %v647_v26 }
 0x4d9   :  { %651 = vmax.xlane.f32.xlu1 %v650_v28 }
 0x4dd   :  { %642 = vmax.xlane.f32.xlu1 %v641_v32 }
 0x4e1   :  { %645 = vmax.xlane.f32.xlu1 %v644_v33 }
 0x556   :  { %v655_v35 = vpop.xlane.xlu1 %654 }
 0x557   :  { %v663_v36 = vsub.f32 %v635_v16, %v655_v35 }
 0x559   :  { %v673_v38 = vmul.f32 1.442695, %v663_v36 }
 0x55a   :  { %v658_v39 = vpop.xlane.xlu1 %657 }
 0x55b   :  { %3980 = vpow2.f32 %v673_v38  ;;  %v664_v40 = vsub.f32 %v638_v20, %v658_v39  ;;  %v711_v38 = vrot.slane %v4531_v59, 4  ;;  %v790_v39 = vsel %vm272_vm3, %v4453_v13, 0 }
 0x55d   :  { %v675_v41 = vmul.f32 1.442695, %v664_v40 }
 0x55e   :  { %v649_v8 = vpop.xlane.xlu1 %648 }
 0x55f   :  { %3982 = vpow2.f32 %v675_v41  ;;  %v661_v42 = vsub.f32 %v627_v22, %v649_v8 }
 0x561   :  { %v669_v43 = vmul.f32 1.442695, %v661_v42 }
 0x562   :  { %v652_v45 = vpop.xlane.xlu1 %651 }
 0x563   :  { %3984 = vpow2.f32 %v669_v43  ;;  %v662_v46 = vsub.f32 %v630_v24, %v652_v45 }
 0x565   :  { %v671_v48 = vmul.f32 1.442695, %v662_v46 }
 0x566   :  { %v643_v50 = vpop.xlane.xlu1 %642 }
 0x567   :  { %3986 = vpow2.f32 %v671_v48  ;;  %v659_v51 = vsub.f32 %v619_v27, %v643_v50 }
 0x568   :  { %v3981_v52 = vpop.eup %3980 }
 0x569   :  { %v665_v53 = vmul.f32 1.442695, %v659_v51  ;;  %v689_v54 = vsel %vm84_vm0, %v3981_v52, 0.0 }
 0x56a   :  { %690 = vadd.xlane.f32.xlu1 %v689_v54  ;;  %v646_v55 = vpop.xlane.xlu1 %645 }
 0x56b   :  { %3988 = vpow2.f32 %v665_v53  ;;  %v660_v56 = vsub.f32 %v622_v31, %v646_v55 }
 0x56c   :  { %v3983_v57 = vpop.eup %3982 }
 0x56d   :  { %v667_v58 = vmul.f32 1.442695, %v660_v56  ;;  %v692_v60 = vsel %vm84_vm0, %v3983_v57, 0.0 }
 0x56e   :  { %693 = vadd.xlane.f32.xlu1 %v692_v60 }
 0x56f   :  { %3990 = vpow2.f32 %v667_v58 }
 0x570   :  { %v3985_v61 = vpop.eup %3984 }
 0x571   :  { %v683_v14 = vsel %vm84_vm0, %v3985_v61, 0.0 }
 0x572   :  { %684 = vadd.xlane.f32.xlu1 %v683_v14 }
 0x574   :  { %v3987_v62 = vpop.eup %3986 }
 0x575   :  { %v686_v0 = vsel %vm84_vm0, %v3987_v62, 0.0 }
 0x576   :  { %687 = vadd.xlane.f32.xlu1 %v686_v0 }
 0x578   :  { %v3989_v1 = vpop.eup %3988 }
 0x579   :  { %v677_v2 = vsel %vm84_vm0, %v3989_v1, 0.0 }
 0x57a   :  { %678 = vadd.xlane.f32.xlu1 %v677_v2 }
 0x57c   :  { %v3991_v3 = vpop.eup %3990 }
 0x57d   :  { %v680_v4 = vsel %vm84_vm0, %v3991_v3, 0.0 }
 0x57e   :  { %681 = vadd.xlane.f32.xlu0 %v680_v4 }
 0x5a7   :  { %764 = vxpose.xlu1.c.b16.start.end [1/1] (short) (narrow) %v4450_v9, 48 }
 0x5f3   :  { %v691_v5 = vpop.xlane.xlu1 %690 }
 0x5f4   :  { %3992 = vrcp.f32 %v691_v5 }
 0x5f7   :  { %v694_v6 = vpop.xlane.xlu1 %693 }
 0x5f8   :  { %3994 = vrcp.f32 %v694_v6 }
 0x5fb   :  { %v685_v7 = vpop.xlane.xlu1 %684 }
 0x5fc   :  { %3996 = vrcp.f32 %v685_v7 }
 0x5ff   :  { %v688_v10 = vpop.xlane.xlu1 %687 }
 0x600   :  { %3998 = vrcp.f32 %v688_v10 }
 0x601   :  { %v3993_v11 = vpop.eup %3992 }
 0x602   :  { %v705_v16 = vmul.f32 %v3993_v11, %v3981_v52 }
 0x603   :  { %v679_v12 = vpop.xlane.xlu1 %678 }
 0x604   :  { %4000 = vrcp.f32 %v679_v12 }
 0x605   :  { %v3995_v15 = vpop.eup %3994 }
 0x606   :  { %v706_v17 = vmul.f32 %v3995_v15, %v3983_v57 }
 0x607   :  { %v682_v18 = vpop.xlane.xlu0 %681 }
 0x608   :  { %4002 = vrcp.f32 %v682_v18  ;;  %v709_v19 = vpack.c.bf16 %v706_v17, %v705_v16 }
 0x609   :  { %v3997_v21 = vpop.eup %3996  ;;  %v772_v40 = vpop.trf.xlu1 }
 0x60a   :  { %v722_v20 = vsel %vm84_vm0, %v709_v19, 0  ;;  %v703_v23 = vmul.f32 %v3997_v21, %v3985_v61 }
 0x60b   :  { %3676 = vmatpush3.bf16.xpose.msra.mxu1 %v722_v20 }
 0x60c   :  { %3677 = vmatprep.subr.bf16.mxu1 %v4255_v49 }
 0x60d   :  { %v3999_v22 = vpop.eup %3998  ;;  %v773_v41 = vpop.trf.xlu1 }
 0x60e   :  { %v704_v24 = vmul.f32 %v3999_v22, %v3987_v62 }
 0x610   :  { %v708_v26 = vpack.c.bf16 %v704_v24, %v703_v23 }
 0x611   :  { %v4001_v28 = vpop.eup %4000  ;;  %v774_v59 = vpop.trf.xlu1 }
 0x612   :  { %v719_v27 = vsel %vm84_vm0, %v708_v26, 0  ;;  %v701_v32 = vmul.f32 %v4001_v28, %v3989_v1 }
 0x613   :  { %3678 = vmatpush3.bf16.xpose.msra.mxu1 %v719_v27 }
 0x614   :  { %3679 = vmatprep.subr.bf16.mxu1 %v4255_v49 }
 0x615   :  { %v4003_v31 = vpop.eup %4002 }
 0x616   :  { %v702_v33 = vmul.f32 %v4003_v31, %v3991_v3 }
 0x618   :  { %v707_v35 = vpack.c.bf16 %v702_v33, %v701_v32 }
 0x61a   :  { %v716_v36 = vsel %vm84_vm0, %v707_v35, 0 }
 0x61b   :  { %3680 = vmatpush3.bf16.xpose.msra.mxu1 %v716_v36 }
 0x61c   :  { %3685 = vmatprep.subr.bf16.mxu1 %v4255_v49 }
 0x622   :  { %3682 = vmatmul.mubr.msk.bf16.vlgmr.msra.gmra.mxu1 %vm84_vm0, %v711_v38 }
 0x623   :  { %3686 = vmatpush3.bf16.msra.mxu1 %v790_v39  ;;  %3687 = vmatprep.mubr.msk.bf16.mxu1 %vm4256_vm2, %v4255_v49 }
 0x624   :  { %3723 = vmatprep.subr.bf16.mxu1 %v4255_v49 }
 0x62a   :  { %3688 = vmatmul.mubr.msk.bf16.vlgmr.msra.gmra.mxu1 %vm360_vm4, %v772_v40 }
 0x62b   :  { %3691 = vmatprep.mubr.msk.bf16.mxu1 %vm4256_vm2, %v4255_v49 }
 0x632   :  { %3692 = vmatmul.mubr.msk.bf16.gmra.mxu1 %vm360_vm4, %v773_v41 }
 0x633   :  { %3695 = vmatprep.mubr.msk.bf16.mxu1 %vm4256_vm2, %v4255_v49 }
 0x63a   :  { %3696 = vmatmul.mubr.msk.bf16.gmra.mxu1 %vm360_vm4, %v774_v59 }
 0x63b   :  { %3729 = vmatprep.mubr.msk.bf16.mxu1 %vm4256_vm2, %v4255_v49 }
 0x6e2   :  { %v4591_v8 = vpop.f32.mrf.mxu1 }
 0x6e4   :  { %v3683_v42 = vpop.f32.mrf.mxu1 }
 0x6e6   :  { %v761_v43 = vpop.f32.mrf.mxu1 }
 0x6e8   :  { %v3684_v45 = vpop.f32.mrf.mxu1 }
 0x6ea   :  { %v826_v46 = vpop.f32.mrf.mxu1 }
 0x6eb   :  { %v827_v4 = vadd.f32 %v826_v46, %v4481_v30 }
 0x6ec   :  { %v3689_v48 = vpop.f32.mrf.mxu1 }
 0x6ed   :  { %v849_v7 = vsel %vm84_vm0, %v827_v4, -inf }
 0x6ee   :  { %v829_v50 = vpop.f32.mrf.mxu1 }
 0x6ef   :  { %v830_v6 = vadd.f32 %v829_v50, %v4510_v47  ;;  %v971_v50 = vrot.slane %v4450_v9, 4 }
 0x6f0   :  { %v3690_v51 = vpop.f32.mrf.mxu1 }
 0x6f1   :  { %v852_v10 = vsel %vm84_vm0, %v830_v6, -inf }
 0x6f2   :  { %v834_v52 = vpop.f32.mrf.mxu1 }
 0x6f3   :  { %v835_v0 = vadd.f32 %v834_v52, %v4494_v37 }
 0x6f4   :  { %v3693_v53 = vpop.f32.mrf.mxu1 }
 0x6f5   :  { %v855_v3 = vsel %vm84_vm0, %v835_v0, -inf }
 0x6f6   :  { %v837_v54 = vpop.f32.mrf.mxu1 }
 0x6f7   :  { %v838_v2 = vadd.f32 %v837_v54, %v4503_v44 }
 0x6f8   :  { %v3694_v55 = vpop.f32.mrf.mxu1 }
 0x6f9   :  { %v858_v5 = vsel %vm84_vm0, %v838_v2, -inf }
 0x6fa   :  { %v842_v56 = vpop.f32.mrf.mxu1 }
 0x6fb   :  { %v843_v57 = vadd.f32 %v842_v56, %v4476_v29 }
 0x6fc   :  { %v3697_v58 = vpop.f32.mrf.mxu1 }
 0x6fd   :  { %v861_v60 = vsel %vm84_vm0, %v843_v57, -inf }
 0x6fe   :  { %862 = vmax.xlane.f32.xlu0 %v861_v60  ;;  %v845_v61 = vpop.f32.mrf.mxu1 }
 0x6ff   :  { %v846_v14 = vadd.f32 %v845_v61, %v4487_v34 }
 0x700   :  { %v3698_v62 = vpop.f32.mrf.mxu1 }
 0x701   :  { %v864_v1 = vsel %vm84_vm0, %v846_v14, -inf }
 0x702   :  { %865 = vmax.xlane.f32.xlu0 %v864_v1 }
 0x706   :  { %856 = vmax.xlane.f32.xlu0 %v855_v3 }
 0x70a   :  { %859 = vmax.xlane.f32.xlu0 %v858_v5 }
 0x70e   :  { %850 = vmax.xlane.f32.xlu0 %v849_v7 }
 0x712   :  { %853 = vmax.xlane.f32.xlu0 %v852_v10 }
 0x787   :  { %v863_v11 = vpop.xlane.xlu0 %862 }
 0x788   :  { %v871_v12 = vsub.f32 %v843_v57, %v863_v11 }
 0x78a   :  { %v881_v15 = vmul.f32 1.442695, %v871_v12 }
 0x78b   :  { %v866_v16 = vpop.xlane.xlu0 %865 }
 0x78c   :  { %4004 = vpow2.f32 %v881_v15  ;;  %v872_v17 = vsub.f32 %v846_v14, %v866_v16  ;;  %v990_v15 = vrot.slane %v4453_v13, 4 }
 0x78e   :  { %v883_v18 = vmul.f32 1.442695, %v872_v17  ;;  %v1001_v16 = vsel %vm272_vm3, %v990_v15, 0 }
 0x78f   :  { %v857_v19 = vpop.xlane.xlu0 %856 }
 0x790   :  { %4006 = vpow2.f32 %v883_v18  ;;  %v869_v20 = vsub.f32 %v835_v0, %v857_v19 }
 0x792   :  { %v877_v21 = vmul.f32 1.442695, %v869_v20 }
 0x793   :  { %v860_v22 = vpop.xlane.xlu0 %859 }
 0x794   :  { %4008 = vpow2.f32 %v877_v21  ;;  %v870_v23 = vsub.f32 %v838_v2, %v860_v22 }
 0x796   :  { %v879_v24 = vmul.f32 1.442695, %v870_v23 }
 0x797   :  { %v851_v26 = vpop.xlane.xlu0 %850 }
 0x798   :  { %4010 = vpow2.f32 %v879_v24  ;;  %v867_v27 = vsub.f32 %v827_v4, %v851_v26 }
 0x799   :  { %v4005_v28 = vpop.eup %4004 }
 0x79a   :  { %v873_v31 = vmul.f32 1.442695, %v867_v27  ;;  %v897_v32 = vsel %vm84_vm0, %v4005_v28, 0.0 }
 0x79b   :  { %898 = vadd.xlane.f32.xlu0 %v897_v32  ;;  %v854_v33 = vpop.xlane.xlu0 %853 }
 0x79c   :  { %4012 = vpow2.f32 %v873_v31  ;;  %v868_v35 = vsub.f32 %v830_v6, %v854_v33 }
 0x79d   :  { %v4007_v36 = vpop.eup %4006 }
 0x79e   :  { %v875_v38 = vmul.f32 1.442695, %v868_v35  ;;  %v900_v39 = vsel %vm84_vm0, %v4007_v36, 0.0 }
 0x79f   :  { %901 = vadd.xlane.f32.xlu1 %v900_v39 }
 0x7a0   :  { %4014 = vpow2.f32 %v875_v38 }
 0x7a1   :  { %v4009_v40 = vpop.eup %4008 }
 0x7a2   :  { %v891_v41 = vsel %vm84_vm0, %v4009_v40, 0.0 }
 0x7a3   :  { %892 = vadd.xlane.f32.xlu0 %v891_v41 }
 0x7a5   :  { %v4011_v59 = vpop.eup %4010 }
 0x7a6   :  { %v894_v42 = vsel %vm84_vm0, %v4011_v59, 0.0 }
 0x7a7   :  { %895 = vadd.xlane.f32.xlu0 %v894_v42 }
 0x7a9   :  { %v4013_v43 = vpop.eup %4012 }
 0x7aa   :  { %v885_v45 = vsel %vm84_vm0, %v4013_v43, 0.0 }
 0x7ab   :  { %886 = vadd.xlane.f32.xlu0 %v885_v45 }
 0x7ad   :  { %v4015_v46 = vpop.eup %4014 }
 0x7ae   :  { %v888_v48 = vsel %vm84_vm0, %v4015_v46, 0.0 }
 0x7af   :  { %889 = vadd.xlane.f32.xlu0 %v888_v48 }
 0x7dc   :  { %973 = vxpose.xlu0.c.b16.start.end [1/1] (short) (narrow) %v971_v50, 48 }
 0x824   :  { %v899_v51 = vpop.xlane.xlu0 %898 }
 0x825   :  { %4016 = vrcp.f32 %v899_v51 }
 0x828   :  { %v902_v52 = vpop.xlane.xlu1 %901 }
 0x829   :  { %4018 = vrcp.f32 %v902_v52 }
 0x82c   :  { %v893_v53 = vpop.xlane.xlu0 %892 }
 0x82d   :  { %4020 = vrcp.f32 %v893_v53 }
 0x830   :  { %v896_v54 = vpop.xlane.xlu0 %895 }
 0x831   :  { %4022 = vrcp.f32 %v896_v54 }
 0x832   :  { %v4017_v55 = vpop.eup %4016 }
 0x833   :  { %v913_v58 = vmul.f32 %v4017_v55, %v4005_v28 }
 0x834   :  { %v887_v56 = vpop.xlane.xlu0 %886 }
 0x835   :  { %4024 = vrcp.f32 %v887_v56 }
 0x836   :  { %v4019_v57 = vpop.eup %4018 }
 0x837   :  { %v914_v60 = vmul.f32 %v4019_v57, %v4007_v36 }
 0x838   :  { %v890_v61 = vpop.xlane.xlu0 %889 }
 0x839   :  { %4026 = vrcp.f32 %v890_v61  ;;  %v917_v14 = vpack.c.bf16 %v914_v60, %v913_v58 }
 0x83a   :  { %v4021_v62 = vpop.eup %4020 }
 0x83b   :  { %v928_v9 = vsel %vm84_vm0, %v917_v14, 0  ;;  %v911_v1 = vmul.f32 %v4021_v62, %v4009_v40 }
 0x83c   :  { %3700 = vmatpush3.bf16.xpose.msra.mxu0 %v928_v9 }
 0x83d   :  { %3701 = vmatprep.subr.bf16.mxu0 %v4255_v49 }
 0x83e   :  { %v4023_v0 = vpop.eup %4022  ;;  %v981_v17 = vpop.trf.xlu0 }
 0x83f   :  { %v912_v2 = vmul.f32 %v4023_v0, %v4011_v59 }
 0x841   :  { %v916_v3 = vpack.c.bf16 %v912_v2, %v911_v1 }
 0x842   :  { %v4025_v5 = vpop.eup %4024  ;;  %v982_v18 = vpop.trf.xlu0 }
 0x843   :  { %v925_v4 = vsel %vm84_vm0, %v916_v3, 0  ;;  %v909_v7 = vmul.f32 %v4025_v5, %v4013_v43 }
 0x844   :  { %3702 = vmatpush3.bf16.xpose.msra.mxu0 %v925_v4 }
 0x845   :  { %3703 = vmatprep.subr.bf16.mxu0 %v4255_v49 }
 0x846   :  { %v4027_v6 = vpop.eup %4026  ;;  %v983_v13 = vpop.trf.xlu0 }
 0x847   :  { %v910_v10 = vmul.f32 %v4027_v6, %v4015_v46 }
 0x849   :  { %v915_v11 = vpack.c.bf16 %v910_v10, %v909_v7 }
 0x84b   :  { %v922_v12 = vsel %vm84_vm0, %v915_v11, 0 }
 0x84c   :  { %3704 = vmatpush3.bf16.xpose.msra.mxu0 %v922_v12 }
 0x84d   :  { %3709 = vmatprep.subr.bf16.mxu0 %v4255_v49 }
 0x853   :  { %3706 = vmatmul.mubr.msk.bf16.vlgmr.msra.gmra.mxu0 %vm84_vm0, %v4521_v25 }
 0x854   :  { %3710 = vmatpush3.bf16.msra.mxu0 %v1001_v16  ;;  %3711 = vmatprep.mubr.msk.bf16.mxu0 %vm4256_vm2, %v4255_v49 }
 0x85b   :  { %3712 = vmatmul.mubr.msk.bf16.vlgmr.msra.gmra.mxu0 %vm360_vm4, %v981_v17 }
 0x85c   :  { %3715 = vmatprep.mubr.msk.bf16.mxu0 %vm4256_vm2, %v4255_v49 }
 0x863   :  { %3716 = vmatmul.mubr.msk.bf16.gmra.mxu0 %vm360_vm4, %v982_v18  ;;  %v1278_v18 = vld [vmem:[%s5274_s8 + $0x10] sm:$0xff] }
 0x864   :  { %3719 = vmatprep.mubr.msk.bf16.mxu0 %vm4256_vm2, %v4255_v49 }
 0x86b   :  { %3720 = vmatmul.mubr.msk.bf16.gmra.mxu0 %vm360_vm4, %v983_v13  ;;  %v1279_v13 = vld [vmem:[%s5274_s8 + $0x18] sm:$0xff] }
 0x913   :  { %v4631_v19 = vpop.f32.mrf.mxu0 }
 0x915   :  { %v3707_v20 = vpop.f32.mrf.mxu0 }
 0x916   :  { %v1276_v20 = vld [vmem:[%s5274_s8] sm:$0xff] }
 0x917   :  { %v967_v21 = vpop.f32.mrf.mxu0 }
 0x918   :  { %v3936_v21 = vld [vmem:[%s5271_s7] sm:$0xff]  }
 0x919   :  { %v3708_v22 = vpop.f32.mrf.mxu0 }
 0x91a   :  { %v3937_v22 = vld [vmem:[%s5271_s7 + $0x8] sm:$0xff]  }
 0x91b   :  { %v1037_v23 = vpop.f32.mrf.mxu0 }
 0x91d   :  { %v3713_v24 = vpop.f32.mrf.mxu0 }
 0x91e   :  { %v3938_v24 = vld [vmem:[%s5272_s9] sm:$0xff]  }
 0x91f   :  { %v1040_v26 = vpop.f32.mrf.mxu0 }
 0x920   :  { %v1041_v50 = vadd.f32 %v1040_v26, %v4510_v47  ;;  %v3939_v26 = vld [vmem:[%s5272_s9 + $0x8] sm:$0xff]  }
 0x921   :  { %v3714_v27 = vpop.f32.mrf.mxu0 }
 0x922   :  { %v3940_v27 = vld [vmem:[%s5273_s10] sm:$0xff]  }
 0x923   :  { %v1045_v28 = vpop.f32.mrf.mxu0 }
 0x924   :  { %v1046_v42 = vadd.f32 %v1045_v28, %v4494_v37  ;;  %v1063_v37 = vsel %vm84_vm0, %v1041_v50, -inf  ;;  %v3941_v28 = vld [vmem:[%s5273_s10 + $0x8] sm:$0xff]  }
 0x925   :  { %v3717_v31 = vpop.f32.mrf.mxu0 }
 0x926   :  { %v1066_v46 = vsel %vm84_vm0, %v1046_v42, -inf  ;;  %v3942_v31 = vld [vmem:[%s5273_s10 + $0x10] sm:$0xff]  }
 0x927   :  { %v1048_v32 = vpop.f32.mrf.mxu0 }
 0x928   :  { %v1049_v45 = vadd.f32 %v1048_v32, %v4503_v44  ;;  %v3943_v32 = vld [vmem:[%s5273_s10 + $0x18] sm:$0xff]  }
 0x929   :  { %v3718_v33 = vpop.f32.mrf.mxu0 }
 0x92a   :  { %v1069_v48 = vsel %vm84_vm0, %v1049_v45, -inf  ;;  %v3423_v33 = vld [vmem:[%s5264_s5 + $0x30] sm:$0xff] }
 0x92b   :  { %v1053_v35 = vpop.f32.mrf.mxu0 }
 0x92c   :  { %v1054_v36 = vadd.f32 %v1053_v35, %v4476_v29  ;;  %v1038_v29 = vadd.f32 %v1037_v23, %v4481_v30  ;;  %v1277_v23 = vld [vmem:[%s5274_s8 + $0x8] sm:$0xff]  ;;  %v3424_v35 = vld [vmem:[%s5264_s5 + $0x38] sm:$0xff] }
 0x92d   :  { %v3721_v38 = vpop.f32.mrf.mxu0 }
 0x92e   :  { %v1072_v39 = vsel %vm84_vm0, %v1054_v36, -inf  ;;  %v3422_v38 = vld [vmem:[%s5264_s5 + $0x28] sm:$0xff] }
 0x92f   :  { %1073 = vmax.xlane.f32.xlu1 %v1072_v39  ;;  %v1056_v40 = vpop.f32.mrf.mxu0 }
 0x930   :  { %v1057_v41 = vadd.f32 %v1056_v40, %v4487_v34  ;;  %v1060_v34 = vsel %vm84_vm0, %v1038_v29, -inf }
 0x931   :  { %v3722_v59 = vpop.f32.mrf.mxu0 }
 0x932   :  { %v1075_v43 = vsel %vm84_vm0, %v1057_v41, -inf }
 0x933   :  { %1076 = vmax.xlane.f32.xlu1 %v1075_v43 }
 0x937   :  { %1067 = vmax.xlane.f32.xlu1 %v1066_v46 }
 0x93b   :  { %1070 = vmax.xlane.f32.xlu1 %v1069_v48 }
 0x93f   :  { %1061 = vmax.xlane.f32.xlu1 %v1060_v34 }
 0x943   :  { %1064 = vmax.xlane.f32.xlu1 %v1063_v37 }
 0x9b8   :  { %v1074_v51 = vpop.xlane.xlu1 %1073 }
 0x9b9   :  { %v1082_v52 = vsub.f32 %v1054_v36, %v1074_v51  ;;  %v3421_v36 = vld [vmem:[%s5264_s5 + $0x20] sm:$0xff] }
 0x9bb   :  { %v1092_v53 = vmul.f32 1.442695, %v1082_v52 }
 0x9bc   :  { %v1077_v44 = vpop.xlane.xlu1 %1076 }
 0x9bd   :  { %4028 = vpow2.f32 %v1092_v53  ;;  %v1083_v54 = vsub.f32 %v1057_v41, %v1077_v44 }
 0x9bf   :  { %v1094_v55 = vmul.f32 1.442695, %v1083_v54 }
 0x9c0   :  { %v1068_v56 = vpop.xlane.xlu1 %1067 }
 0x9c1   :  { %4030 = vpow2.f32 %v1094_v55  ;;  %v1080_v30 = vsub.f32 %v1046_v42, %v1068_v56 }
 0x9c3   :  { %v1088_v57 = vmul.f32 1.442695, %v1080_v30 }
 0x9c4   :  { %v1071_v58 = vpop.xlane.xlu1 %1070 }
 0x9c5   :  { %4032 = vpow2.f32 %v1088_v57  ;;  %v1081_v47 = vsub.f32 %v1049_v45, %v1071_v58 }
 0x9c7   :  { %v1090_v60 = vmul.f32 1.442695, %v1081_v47 }
 0x9c8   :  { %v1062_v61 = vpop.xlane.xlu1 %1061 }
 0x9c9   :  { %4034 = vpow2.f32 %v1090_v60  ;;  %v1078_v14 = vsub.f32 %v1038_v29, %v1062_v61  ;;  %v1130_v60 = vrot.slane %v4521_v25, 4 }
 0x9ca   :  { %v4645_v9 = vpop.eup %4028 }
 0x9cb   :  { %v1084_v62 = vmul.f32 1.442695, %v1078_v14  ;;  %v1108_v0 = vsel %vm84_vm0, %v4645_v9, 0.0 }
 0x9cc   :  { %1109 = vadd.xlane.f32.xlu1 %v1108_v0  ;;  %v1065_v1 = vpop.xlane.xlu1 %1064 }
 0x9cd   :  { %4036 = vpow2.f32 %v1084_v62  ;;  %v1079_v2 = vsub.f32 %v1041_v50, %v1065_v1 }
 0x9ce   :  { %v4649_v3 = vpop.eup %4030 }
 0x9cf   :  { %v1086_v4 = vmul.f32 1.442695, %v1079_v2  ;;  %v1111_v5 = vsel %vm84_vm0, %v4649_v3, 0.0  ;;  %v1183_v2 = vpack.c.bf16 %v4591_v8, %v4548_v63 }
 0x9d0   :  { %1112 = vadd.xlane.f32.xlu1 %v1111_v5 }
 0x9d1   :  { %4038 = vpow2.f32 %v1086_v4 }
 0x9d2   :  { %v4653_v6 = vpop.eup %4032 }
 0x9d3   :  { %v1102_v7 = vsel %vm84_vm0, %v4653_v6, 0.0 }
 0x9d4   :  { %1103 = vadd.xlane.f32.xlu1 %v1102_v7 }
 0x9d6   :  { %v4657_v10 = vpop.eup %4034 }
 0x9d7   :  { %v1105_v11 = vsel %vm84_vm0, %v4657_v10, 0.0 }
 0x9d8   :  { %1106 = vadd.xlane.f32.xlu1 %v1105_v11  ;;  %v4221_v11 = vld [vmem:[%s5266_s0 + $0x10] sm:$0xff] }
 0x9da   :  { %v4661_v12 = vpop.eup %4036 }
 0x9db   :  { %v1096_v15 = vsel %vm84_vm0, %v4661_v12, 0.0 }
 0x9dc   :  { %1097 = vadd.xlane.f32.xlu1 %v1096_v15 }
 0x9de   :  { %v4665_v16 = vpop.eup %4038 }
 0x9df   :  { %v1099_v17 = vsel %vm84_vm0, %v4665_v16, 0.0 }
 0x9e0   :  { %1100 = vadd.xlane.f32.xlu0 %v1099_v17  ;;  %v4222_v17 = vld [vmem:[%s5266_s0 + $0x18] sm:$0xff] }
 0x9f6   :  { %1316 = vperm.xlu0 %3932, %v1278_v18  }
 0x9fa   :  { %1321 = vperm.xlu0 %3932, %v1279_v13   ;;  %v4223_v13 = vld [vmem:[%s5266_s0 + $0x8] sm:$0xff] }
 0x9fe   :  { %1306 = vperm.xlu0 %3932, %v1276_v20  }
 0xa09   :  { %1201 = vxpose.xlu1.c.b16.start [1/2] (short) (narrow) %v3936_v21, 32 }
 0xa0d   :  { %1202 = vxpose.xlu1.c.b16.end [2/2] (short) (narrow) %v3937_v22, 32 }
 0xa11   :  { %1311 = vperm.xlu1 %3933, %v1277_v23  }
 0xa1c   :  { %1346 = vxpose.xlu0.c.b16.start [1/2] (short) %v3938_v24, 128 }
 0xa20   :  { %1347 = vxpose.xlu0.c.b16.end [2/2] (short) %v3939_v26, 128 }
 0xa34   :  { %1583 = vxpose.xlu1.c.b16.start [1/4] (short) (narrow) %v3940_v27, 32 }
 0xa38   :  { %1584 = vxpose.xlu1.c.b16.cont [2/4] (short) (narrow) %v3941_v28, 32 }
 0xa3c   :  { %1585 = vxpose.xlu1.c.b16.cont [3/4] (short) (narrow) %v3942_v31, 32 }
 0xa40   :  { %1586 = vxpose.xlu1.c.b16.end [4/4] (short) (narrow) %v3943_v32, 32 }
 0xa41   :  { %1700 = vperm.xlu0 %3932, %v3423_v33  }
 0xa44   :  { %1705 = vperm.xlu1 %3933, %v3424_v35  }
 0xa48   :  { %1690 = vperm.xlu1 %3933, %v3421_v36  }
 0xa4c   :  { %1695 = vperm.xlu1 %3933, %v3422_v38  }
 0xa55   :  { %v1110_v39 = vpop.xlane.xlu1 %1109 }
 0xa56   :  { %4040 = vrcp.f32 %v1110_v39 }
 0xa59   :  { %v1113_v40 = vpop.xlane.xlu1 %1112 }
 0xa5a   :  { %4042 = vrcp.f32 %v1113_v40 }
 0xa5d   :  { %v1104_v41 = vpop.xlane.xlu1 %1103 }
 0xa5e   :  { %4044 = vrcp.f32 %v1104_v41 }
 0xa61   :  { %v1107_v59 = vpop.xlane.xlu1 %1106 }
 0xa62   :  { %4046 = vrcp.f32 %v1107_v59 }
 0xa63   :  { %v4041_v42 = vpop.eup %4040 }
 0xa64   :  { %v1124_v46 = vmul.f32 %v4041_v42, %v4645_v9 }
 0xa65   :  { %v1098_v43 = vpop.xlane.xlu1 %1097 }
 0xa66   :  { %4048 = vrcp.f32 %v1098_v43 }
 0xa67   :  { %v4043_v45 = vpop.eup %4042 }
 0xa68   :  { %v1125_v29 = vmul.f32 %v4043_v45, %v4649_v3 }
 0xa69   :  { %v1101_v48 = vpop.xlane.xlu0 %1100 }
 0xa6a   :  { %4050 = vrcp.f32 %v1101_v48  ;;  %v1128_v50 = vpack.c.bf16 %v1125_v29, %v1124_v46 }
 0xa6b   :  { %v4045_v37 = vpop.eup %4044  ;;  %v1209_v61 = vpop.trf.xlu1 }
 0xa6c   :  { %v1141_v34 = vsel %vm84_vm0, %v1128_v50, 0  ;;  %v1122_v52 = vmul.f32 %v4045_v37, %v4653_v6 }
 0xa6d   :  { %3724 = vmatpush3.bf16.xpose.msra.mxu1 %v1141_v34 }
 0xa6e   :  { %3725 = vmatprep.subr.bf16.mxu1 %v4255_v49 }
 0xa6f   :  { %v4047_v51 = vpop.eup %4046  ;;  %v1210_v5 = vpop.trf.xlu1 }
 0xa70   :  { %v1123_v53 = vmul.f32 %v4047_v51, %v4657_v10 }
 0xa71   :  { %v1317_v14 = vpop.permute.xlu0 %1316 }
 0xa72   :  { %v1127_v44 = vpack.c.bf16 %v1123_v53, %v1122_v52 }
 0xa73   :  { %v4049_v55 = vpop.eup %4048 }
 0xa74   :  { %v1138_v54 = vsel %vm84_vm0, %v1127_v44, 0  ;;  %v1120_v30 = vmul.f32 %v4049_v55, %v4661_v12 }
 0xa75   :  { %3726 = vmatpush3.bf16.xpose.msra.mxu1 %v1138_v54  ;;  %v1322_v62 = vpop.permute.xlu0 %1321 }
 0xa76   :  { %3727 = vmatprep.subr.bf16.mxu1 %v4255_v49 }
 0xa77   :  { %v4051_v56 = vpop.eup %4050 }
 0xa78   :  { %v1121_v57 = vmul.f32 %v4051_v56, %v4665_v16 }
 0xa79   :  { %v1307_v25 = vpop.permute.xlu0 %1306 }
 0xa7a   :  { %v1126_v58 = vpack.c.bf16 %v1121_v57, %v1120_v30 }
 0xa7c   :  { %v1135_v47 = vsel %vm84_vm0, %v1126_v58, 0 }
 0xa7d   :  { %3728 = vmatpush3.bf16.xpose.msra.mxu1 %v1135_v47 }
 0xa7e   :  { %v1354_v6 = vpop.trf.xlu0 }
 0xa82   :  { %v1355_v45 = vpop.trf.xlu0 }
 0xa84   :  { %3730 = vmatmul.mubr.msk.bf16.vlgmr.msra.gmra.mxu1 %vm84_vm0, %v1130_v60 }
 0xa85   :  { %3737 = vmatprep.mubr.msk.bf16.mxu1 %vm164_vm1, %v1209_v61  ;;  %v3944_v61 = vld [vmem:[%s5265_s6 + $0x10] sm:$0xff]  }
 0xa86   :  { %v1356_v54 = vpop.trf.xlu0  ;;  %1731 = vxpose.xlu1.c.b16.start [1/2] (short) (narrow) %v3944_v61, 96 }
 0xa8a   :  { %v1357_v56 = vpop.trf.xlu0 }
 0xa8c   :  { %v1312_v34 = vpop.permute.xlu1 %1311 }
 0xa8e   :  { %v1358_v30 = vpop.trf.xlu0 }
 0xa92   :  { %v1359_v57 = vpop.trf.xlu0 }
 0xa96   :  { %v1360_v58 = vpop.trf.xlu0  ;;  %v1591_v60 = vpop.trf.xlu1 }
 0xa97   :  { %3769 = vmatprep.mubr.msk.bf16.mxu0 %vm1599_vm5, %v1591_v60 }
 0xa9a   :  { %v1361_v47 = vpop.trf.xlu0 }
 0xb44   :  { %v1177_v9 = vpop.f32.mrf.mxu1 }
 0xb45   :  { %v1184_v0 = vpack.c.bf16 %v1177_v9, %v4631_v19  ;;  %v4220_v19 = vld [vmem:[%s5266_s0] sm:$0xff] }
 0xb46   :  { %v3731_v1 = vpop.f32.mrf.mxu1 }
 0xb47   :  { %3733 = vmatprep.subr.bf16.mxu1 %v1184_v0 }
 0xb48   :  { %v1180_v3 = vpop.f32.mrf.mxu1  ;;  %3734 = vmatpush3.bf16.msra.mxu1 %v1184_v0 }
 0xb49   :  { %3735 = vmatprep.subr.bf16.mxu1 %v1183_v2 }
 0xb4a   :  { %v3732_v4 = vpop.f32.mrf.mxu1 }
 0xb4c   :  { %3736 = vmatpush3.bf16.msra.mxu1 %v1183_v2 }
 0xb4f   :  { %3738 = vmatmul.mubr.msk.bf16.vlgmr.msra.gmra.mxu1 %vm164_vm1, %v1210_v5 }
 0xb50   :  { %3745 = vmatprep.mubr.msk.bf16.mxu1 %vm164_vm1, %v1354_v6 }
 0xc0f   :  { %v3739_v7 = vpop.f32.mrf.mxu1 }
 0xc10   :  { %v4744_v12 = vadd.f32 %v4221_v11, %v3739_v7 }
 0xc11   :  { %v1257_v10 = vpop.f32.mrf.mxu1 }
 0xc12   :  { %v4739_v63 = vadd.f32 %v4220_v19, %v1257_v10  ;;  %v1282_v21 = vmul.f32 %v4744_v12, %v4744_v12 }
 0xc13   :  { %v3740_v8 = vpop.f32.mrf.mxu1 }
 0xc14   :  { %v1280_v16 = vmul.f32 %v4739_v63, %v4739_v63  ;;  %v4751_v18 = vadd.f32 %v4222_v17, %v3740_v8  ;;  %v1287_v28 = vsel %vm84_vm0, %v1282_v21, 0.0 }
 0xc15   :  { %v1260_v15 = vpop.f32.mrf.mxu1 }
 0xc16   :  { %v4756_v20 = vadd.f32 %v4223_v13, %v1260_v15  ;;  %v1284_v23 = vsel %vm84_vm0, %v1280_v16, 0.0  ;;  %v1283_v24 = vmul.f32 %v4751_v18, %v4751_v18 }
 0xc18   :  { %v1281_v22 = vmul.f32 %v4756_v20, %v4756_v20  ;;  %v1289_v32 = vsel %vm84_vm0, %v1283_v24, 0.0 }
 0xc1a   :  { %v1285_v26 = vsel %vm84_vm0, %v1281_v22, 0.0 }
 0xc1b   :  { %v1286_v27 = vadd.f32 %v1285_v26, %v1284_v23 }
 0xc1d   :  { %v1288_v31 = vadd.f32 %v1287_v28, %v1286_v27 }
 0xc1f   :  { %v1290_v33 = vadd.f32 %v1289_v32, %v1288_v31 }
 0xc21   :  { %v1291_v35 = vrot.slane %v1290_v33, 4 }
 0xc23   :  { %v1292_v36 = vadd.f32 %v1291_v35, %v1290_v33 }
 0xc25   :  { %v1293_v38 = vrot.slane %v1292_v36, 2 }
 0xc27   :  { %v1294_v39 = vadd.f32 %v1293_v38, %v1292_v36 }
 0xc29   :  { %v1295_v40 = vrot.slane %v1294_v39, 1 }
 0xc2b   :  { %v1296_v41 = vadd.f32 %v1295_v40, %v1294_v39 }
 0xc2d   :  { %v1297_v59 = vmul.f32 0.03125, %v1296_v41 }
 0xc2f   :  { %v1298_v42 = vadd.f32 1e-06, %v1297_v59 }
 0xc31   :  { %4052 = vrsqrt.f32 %v1298_v42 }
 0xc3e   :  { %v4053_v43 = vpop.eup %4052 }
 0xc3f   :  { %v1301_v46 = vmul.f32 %v4053_v43, %v4756_v20  ;;  %v1302_v29 = vmul.f32 %v4053_v43, %v4744_v12  ;;  %v1303_v48 = vmul.f32 %v4053_v43, %v4751_v18  ;;  %v1300_v50 = vmul.f32 %v4053_v43, %v4739_v63 }
 0xc41   :  { %v1326_v37 = vmul.f32 %v1317_v14, %v1302_v29  ;;  %v1327_v51 = vmul.f32 %v1322_v62, %v1303_v48  ;;  %v1324_v52 = vmul.f32 %v1307_v25, %v1300_v50  ;;  %v1325_v53 = vmul.f32 %v1312_v34, %v1301_v46  ;;  %v3945_v14 = vld [vmem:[%s5265_s6 + $0x18] sm:$0xff]  }
 0xc42   :  { %1732 = vxpose.xlu1.c.b16.end [2/2] (short) (narrow) %v3945_v14, 96 }
 0xc43   :  { %v1329_v44 = vpack.c.bf16 %v1327_v51, %v1326_v37  ;;  %v1328_v55 = vpack.c.bf16 %v1325_v53, %v1324_v52 }
 0xc45   :  { %3741 = vmatprep.subr.bf16.mxu1 %v1329_v44 }
 0xc46   :  { %3742 = vmatpush3.bf16.msra.mxu1 %v1329_v44 }
 0xc47   :  { %3743 = vmatprep.subr.bf16.mxu1 %v1328_v55 }
 0xc4a   :  { %3744 = vmatpush3.bf16.msra.mxu1 %v1328_v55 }
 0xc4b   :  { %3789 = vmatprep.subr.bf16.mxu1 %v4255_v49 }
 0xc4d   :  { %3746 = vmatmul.mubr.msk.bf16.vlgmr.msra.gmra.mxu1 %vm164_vm1, %v1355_v45 }
 0xc4e   :  { %3749 = vmatprep.mubr.msk.bf16.mxu1 %vm164_vm1, %v1356_v54 }
 0xc55   :  { %3750 = vmatmul.mubr.msk.bf16.gmra.mxu1 %vm164_vm1, %v1357_v56 }
 0xc56   :  { %3753 = vmatprep.mubr.msk.bf16.mxu1 %vm164_vm1, %v1358_v30 }
 0xc5d   :  { %3754 = vmatmul.mubr.msk.bf16.gmra.mxu1 %vm164_vm1, %v1359_v57 }
 0xc5e   :  { %3757 = vmatprep.mubr.msk.bf16.mxu1 %vm164_vm1, %v1360_v58 }
 0xc65   :  { %3758 = vmatmul.mubr.msk.bf16.gmra.mxu1 %vm164_vm1, %v1361_v47 }
 0xc66   :  { %3791 = vmatprep.mubr.msk.bf16.mxu1 %vm4256_vm2, %v4255_v49 }
 0xd0d   :  { %v4789_v9 = vpop.f32.mrf.mxu1 }
 0xd0e   :  { %v3409_v3 = vmul.f32 -1.442695, %v4789_v9 }
 0xd0f   :  { %v4791_v62 = vpop.f32.mrf.mxu1 }
 0xd10   :  { %v3407_v10 = vmul.f32 -1.442695, %v4791_v62 }
 0xd11   :  { %v3748_v0 = vpop.f32.mrf.mxu1 }
 0xd12   :  { %v3410_v1 = vmul.f32 -1.442695, %v3748_v0 }
 0xd13   :  { %v4793_v2 = vpop.f32.mrf.mxu1 }
 0xd14   :  { %4054 = vpow2.f32 %v3410_v1  ;;  %v3408_v5 = vmul.f32 -1.442695, %v4793_v2 }
 0xd15   :  { %v3751_v4 = vpop.f32.mrf.mxu1 }
 0xd16   :  { %v3413_v25 = vmul.f32 -1.442695, %v3751_v4 }
 0xd17   :  { %v1436_v6 = vpop.f32.mrf.mxu1 }
 0xd18   :  { %4056 = vpow2.f32 %v3413_v25  ;;  %v3411_v7 = vmul.f32 -1.442695, %v1436_v6 }
 0xd19   :  { %4058 = vpow2.f32 %v3409_v3  ;;  %v3752_v19 = vpop.f32.mrf.mxu1 }
 0xd1a   :  { %4060 = vpow2.f32 %v3411_v7  ;;  %v3414_v8 = vmul.f32 -1.442695, %v3752_v19 }
 0xd1b   :  { %4062 = vpow2.f32 %v3408_v5  ;;  %v1439_v11 = vpop.f32.mrf.mxu1 }
 0xd1c   :  { %4064 = vpow2.f32 %v3414_v8  ;;  %v3412_v15 = vmul.f32 -1.442695, %v1439_v11 }
 0xd1d   :  { %4066 = vpow2.f32 %v3407_v10  ;;  %v3755_v16 = vpop.f32.mrf.mxu1  ;;  %v1592_v10 = vpop.trf.xlu1 }
 0xd1e   :  { %4068 = vpow2.f32 %v3412_v15 }
 0xd1f   :  { %v1452_v21 = vpop.f32.mrf.mxu1 }
 0xd21   :  { %v4055_v17 = vpop.eup %4054  ;;  %v3756_v33 = vpop.f32.mrf.mxu1 }
 0xd22   :  { %v1510_v26 = vadd.f32 1.0, %v4055_v17 }
 0xd23   :  { %v1455_v41 = vpop.f32.mrf.mxu1 }
 0xd25   :  { %v4057_v13 = vpop.eup %4056  ;;  %v3759_v42 = vpop.f32.mrf.mxu1 }
 0xd26   :  { %v4059_v22 = vpop.eup %4058  ;;  %v1513_v23 = vadd.f32 1.0, %v4057_v13 }
 0xd27   :  { %v4061_v24 = vpop.eup %4060  ;;  %v1509_v32 = vadd.f32 1.0, %v4059_v22  ;;  %v1468_v45 = vpop.f32.mrf.mxu1 }
 0xd28   :  { %v4063_v27 = vpop.eup %4062  ;;  %4070 = vrcp.f32 %v1513_v23  ;;  %v1511_v28 = vadd.f32 1.0, %v4061_v24 }
 0xd29   :  { %v4065_v31 = vpop.eup %4064  ;;  %v1508_v39 = vadd.f32 1.0, %v4063_v27  ;;  %v3760_v34 = vpop.f32.mrf.mxu1 }
 0xd2a   :  { %v4067_v35 = vpop.eup %4066  ;;  %4072 = vrcp.f32 %v1511_v28  ;;  %v1514_v36 = vadd.f32 1.0, %v4065_v31 }
 0xd2b   :  { %v4069_v38 = vpop.eup %4068  ;;  %4074 = vrcp.f32 %v1510_v26  ;;  %v1507_v59 = vadd.f32 1.0, %v4067_v35  ;;  %v1471_v57 = vpop.f32.mrf.mxu1 }
 0xd2c   :  { %4076 = vrcp.f32 %v1514_v36  ;;  %v1512_v40 = vadd.f32 1.0, %v4069_v38 }
 0xd2d   :  { %4078 = vrcp.f32 %v1509_v32 }
 0xd2e   :  { %4080 = vrcp.f32 %v1512_v40 }
 0xd2f   :  { %4082 = vrcp.f32 %v1508_v39 }
 0xd30   :  { %4084 = vrcp.f32 %v1507_v59 }
 0xd35   :  { %v4071_v43 = vpop.eup %4070 }
 0xd36   :  { %v1537_v48 = vmul.f32 %v4071_v43, %v3751_v4 }
 0xd37   :  { %v4073_v46 = vpop.eup %4072 }
 0xd38   :  { %v4075_v29 = vpop.eup %4074  ;;  %v1535_v51 = vmul.f32 %v4073_v46, %v1436_v6  ;;  %v1545_v55 = vmul.f32 %v3759_v42, %v1537_v48 }
 0xd39   :  { %v4077_v50 = vpop.eup %4076  ;;  %v1534_v44 = vmul.f32 %v4075_v29, %v3748_v0 }
 0xd3a   :  { %v4079_v37 = vpop.eup %4078  ;;  %v1538_v52 = vmul.f32 %v4077_v50, %v3752_v19  ;;  %v1543_v47 = vmul.f32 %v1535_v51, %v1468_v45  ;;  %v1701_v50 = vpop.permute.xlu0 %1700 }
 0xd3b   :  { %v4081_v53 = vpop.eup %4080  ;;  %v1533_v58 = vmul.f32 %v4079_v37, %v4789_v9  ;;  %v1542_v3 = vmul.f32 %v3756_v33, %v1534_v44 }
 0xd3c   :  { %v1536_v54 = vmul.f32 %v4081_v53, %v1439_v11  ;;  %v1546_v56 = vmul.f32 %v3760_v34, %v1538_v52  ;;  %v4083_v30 = vpop.eup %4082 }
 0xd3d   :  { %v4085_v14 = vpop.eup %4084  ;;  %v1532_v1 = vmul.f32 %v4083_v30, %v4793_v2  ;;  %v1541_v0 = vmul.f32 %v3755_v16, %v1533_v58  ;;  %v1706_v2 = vpop.permute.xlu1 %1705 }
 0xd3e   :  { %v1550_v60 = vpack.c.bf16 %v1546_v56, %v1545_v55  ;;  %v1544_v61 = vmul.f32 %v1536_v54, %v1471_v57  ;;  %v1531_v25 = vmul.f32 %v4085_v14, %v4791_v62 }
 0xd3f   :  { %v1548_v5 = vpack.c.bf16 %v1542_v3, %v1541_v0  ;;  %v1540_v6 = vmul.f32 %v1532_v1, %v1455_v41  ;;  %v4225_v0 = vld [vmem:[%s5268_s3 + $0x10] sm:$0xff] }
 0xd40   :  { %v1549_v4 = vpack.c.bf16 %v1544_v61, %v1543_v47  ;;  %3761 = vmatprep.subr.bf16.mxu0 %v1550_v60  ;;  %v1539_v7 = vmul.f32 %v1531_v25, %v1452_v21 }
 0xd41   :  { %3762 = vmatpush3.bf16.msra.mxu0 %v1550_v60  ;;  %v1691_v19 = vpop.permute.xlu1 %1690 }
 0xd42   :  { %3763 = vmatprep.subr.bf16.mxu0 %v1549_v4  ;;  %v1547_v9 = vpack.c.bf16 %v1540_v6, %v1539_v7 }
 0xd45   :  { %3764 = vmatpush3.bf16.msra.mxu0 %v1549_v4  ;;  %v1696_v8 = vpop.permute.xlu1 %1695  ;;  %v4224_v4 = vld [vmem:[%s5267_s2 + $0x10] sm:$0xff] }
 0xd46   :  { %3765 = vmatprep.subr.bf16.mxu0 %v1548_v5 }
 0xd49   :  { %3766 = vmatpush3.bf16.msra.mxu0 %v1548_v5  ;;  %v1739_v11 = vpop.trf.xlu1 }
 0xd4a   :  { %3767 = vmatprep.subr.bf16.mxu0 %v1547_v9 }
 0xd4d   :  { %3768 = vmatpush3.bf16.msra.mxu0 %v1547_v9  ;;  %v1740_v54 = vpop.trf.xlu1 }
 0xd50   :  { %3770 = vmatmul.mubr.msk.bf16.vlgmr.msra.gmra.mxu0 %vm1599_vm5, %v1592_v10 }
 0xd51   :  { %3777 = vmatprep.mubr.msk.bf16.mxu0 %vm164_vm1, %v1739_v11  ;;  %v1741_v55 = vpop.trf.xlu1 }
 0xd55   :  { %v1742_v56 = vpop.trf.xlu1 }
 0xe10   :  { %v3771_v62 = vpop.f32.mrf.mxu0 }
 0xe11   :  { %v4807_v13 = vadd.f32 %v3771_v62, %v4744_v12 }
 0xe12   :  { %v1640_v15 = vpop.f32.mrf.mxu0 }
 0xe13   :  { %v4804_v16 = vadd.f32 %v1640_v15, %v4739_v63  ;;  %v1666_v26 = vmul.f32 %v4807_v13, %v4807_v13  ;;  %v4228_v15 = vld [vmem:[%s5267_s2] sm:$0xff] }
 0xe14   :  { %v3772_v17 = vpop.f32.mrf.mxu0 }
 0xe15   :  { %v1664_v22 = vmul.f32 %v4804_v16, %v4804_v16  ;;  %v4812_v23 = vadd.f32 %v3772_v17, %v4751_v18  ;;  %v1671_v18 = vsel %vm84_vm0, %v1666_v26, 0.0  ;;  %v4230_v26 = vld [vmem:[%s5269_s4 + $0x10] sm:$0xff] }
 0xe16   :  { %v1643_v21 = vpop.f32.mrf.mxu0 }
 0xe17   :  { %v4815_v24 = vadd.f32 %v1643_v21, %v4756_v20  ;;  %v1668_v27 = vsel %vm84_vm0, %v1664_v22, 0.0  ;;  %v1667_v12 = vmul.f32 %v4812_v23, %v4812_v23  ;;  %v4229_v21 = vld [vmem:[%s5267_s2 + $0x8] sm:$0xff] }
 0xe19   :  { %v1665_v63 = vmul.f32 %v4815_v24, %v4815_v24  ;;  %v1673_v20 = vsel %vm84_vm0, %v1667_v12, 0.0  ;;  %v4231_v12 = vld [vmem:[%s5267_s2 + $0x18] sm:$0xff] }
 0xe1b   :  { %v1669_v28 = vsel %vm84_vm0, %v1665_v63, 0.0 }
 0xe1c   :  { %v1670_v31 = vadd.f32 %v1669_v28, %v1668_v27 }
 0xe1e   :  { %v1672_v32 = vadd.f32 %v1671_v18, %v1670_v31  ;;  %v4232_v31 = vld [vmem:[%s5269_s4 + $0x18] sm:$0xff] }
 0xe20   :  { %v1674_v33 = vadd.f32 %v1673_v20, %v1672_v32  ;;  %v4233_v20 = vld [vmem:[%s5267_s2 + $0x30] sm:$0xff] }
 0xe22   :  { %v1675_v35 = vrot.slane %v1674_v33, 4 }
 0xe24   :  { %v1676_v36 = vadd.f32 %v1675_v35, %v1674_v33 }
 0xe26   :  { %v1677_v38 = vrot.slane %v1676_v36, 2 }
 0xe28   :  { %v1678_v39 = vadd.f32 %v1677_v38, %v1676_v36 }
 0xe2a   :  { %v1679_v40 = vrot.slane %v1678_v39, 1 }
 0xe2c   :  { %v1680_v41 = vadd.f32 %v1679_v40, %v1678_v39 }
 0xe2e   :  { %v1681_v59 = vmul.f32 0.03125, %v1680_v41 }
 0xe30   :  { %v1682_v42 = vadd.f32 1e-06, %v1681_v59  ;;  %v4234_v59 = vld [vmem:[%s5269_s4 + $0x8] sm:$0xff] }
 0xe32   :  { %4086 = vrsqrt.f32 %v1682_v42 }
 0xe3f   :  { %v4087_v43 = vpop.eup %4086 }
 0xe40   :  { %v1685_v45 = vmul.f32 %v4087_v43, %v4815_v24  ;;  %v1686_v46 = vmul.f32 %v4087_v43, %v4807_v13  ;;  %v1687_v29 = vmul.f32 %v4087_v43, %v4812_v23  ;;  %v1684_v48 = vmul.f32 %v4087_v43, %v4804_v16  ;;  %v4235_v43 = vld [vmem:[%s5267_s2 + $0x20] sm:$0xff] }
 0xe42   :  { %v1710_v34 = vmul.f32 %v1701_v50, %v1686_v46  ;;  %v1711_v37 = vmul.f32 %v1706_v2, %v1687_v29  ;;  %v1708_v51 = vmul.f32 %v1691_v19, %v1684_v48  ;;  %v1709_v52 = vmul.f32 %v1696_v8, %v1685_v45  ;;  %v4226_v2 = vld [vmem:[%s5268_s3] sm:$0xff]  ;;  %v4227_v8 = vld [vmem:[%s5268_s3 + $0x8] sm:$0xff]  ;;  %v4236_v46 = vld [vmem:[%s5268_s3 + $0x18] sm:$0xff] }
 0xe44   :  { %v1713_v53 = vpack.c.bf16 %v1711_v37, %v1710_v34  ;;  %v1712_v44 = vpack.c.bf16 %v1709_v52, %v1708_v51  ;;  %v4237_v37 = vld [vmem:[%s5267_s2 + $0x38] sm:$0xff] }
 0xe46   :  { %3773 = vmatprep.subr.bf16.mxu0 %v1713_v53 }
 0xe47   :  { %3774 = vmatpush3.bf16.msra.mxu0 %v1713_v53 }
 0xe48   :  { %3775 = vmatprep.subr.bf16.mxu0 %v1712_v44 }
 0xe4b   :  { %3776 = vmatpush3.bf16.msra.mxu0 %v1712_v44  ;;  %v4238_v44 = vld [vmem:[%s5268_s3 + $0x30] sm:$0xff] }
 0xe4c   :  { %3803 = vmatprep.subr.bf16.mxu0 %v4255_v49 }
 0xe4e   :  { %3778 = vmatmul.mubr.msk.bf16.vlgmr.msra.gmra.mxu0 %vm164_vm1, %v1740_v54 }
 0xe4f   :  { %3781 = vmatprep.mubr.msk.bf16.mxu0 %vm164_vm1, %v1741_v55  ;;  %v4239_v55 = vld [vmem:[%s5268_s3 + $0x38] sm:$0xff] }
 0xe56   :  { %3782 = vmatmul.mubr.msk.bf16.gmra.mxu0 %vm164_vm1, %v1742_v56 }
 0xf0e   :  { %v3779_v30 = vpop.f32.mrf.mxu0 }
 0xf0f   :  { %v1857_v47 = vrot.slane %v3779_v30, 4  ;;  %v1881_v25 = vmul.f32 %v4224_v4, %v3779_v30  ;;  %v4240_v30 = vld [vmem:[%s5269_s4] sm:$0xff] }
 0xf10   :  { %v1799_v57 = vpop.f32.mrf.mxu0 }
 0xf11   :  { %v1854_v14 = vrot.slane %v1799_v57, 4  ;;  %v1879_v17 = vmul.f32 %v4228_v15, %v1799_v57 }
 0xf12   :  { %v3780_v58 = vpop.f32.mrf.mxu0 }
 0xf13   :  { %v1859_v60 = vrot.slane %v3780_v58, 4  ;;  %v1882_v28 = vmul.f32 %v4231_v12, %v3780_v58 }
 0xf14   :  { %v1802_v61 = vpop.f32.mrf.mxu0 }
 0xf15   :  { %v1860_v1 = vsel %vm272_vm3, %v1857_v47, %v1859_v60  ;;  %v1855_v3 = vrot.slane %v1802_v61, 4  ;;  %v1880_v22 = vmul.f32 %v4229_v21, %v1802_v61 }
 0xf16   :  { %v1889_v5 = vmul.f32 %v4225_v0, %v1860_v1  ;;  %v3783_v6 = vpop.f32.mrf.mxu0  ;;  %v1906_v18 = vmul.f32 %v4232_v31, %v1860_v1  ;;  %v4242_v0 = vld [vmem:[%s5267_s2 + $0x28] sm:$0xff] }
 0xf17   :  { %v1856_v7 = vsel %vm272_vm3, %v1854_v14, %v1855_v3  ;;  %v1858_v9 = vsel %vm272_vm3, %v1855_v3, %v1857_v47  ;;  %v1865_v32 = vrot.slane %v3783_v6, 4  ;;  %v1885_v33 = vmul.f32 %v4233_v20, %v3783_v6  ;;  %v4241_v47 = vld [vmem:[%s5269_s4 + $0x38] sm:$0xff]  ;;  %v4243_v6 = vld [vmem:[%s5268_s3 + $0x20] sm:$0xff] }
 0xf18   :  { %v1897_v10 = vadd.f32 %v1889_v5, %v1881_v25  ;;  %v1887_v19 = vmul.f32 %v4226_v2, %v1856_v7  ;;  %v1888_v11 = vmul.f32 %v4227_v8, %v1858_v9  ;;  %v1815_v62 = vpop.f32.mrf.mxu0  ;;  %v1905_v63 = vmul.f32 %v4230_v26, %v1858_v9  ;;  %v4244_v9 = vld [vmem:[%s5268_s3 + $0x28] sm:$0xff]  ;;  %v4245_v2 = vld [vmem:[%s5269_s4 + $0x30] sm:$0xff]  ;;  %v4246_v8 = vld [vmem:[%s5269_s4 + $0x20] sm:$0xff] }
 0xf19   :  { %v1861_v27 = vrot.slane %v1815_v62, 4  ;;  %v1904_v42 = vmul.f32 %v4234_v59, %v1856_v7  ;;  %v1883_v45 = vmul.f32 %v4235_v43, %v1815_v62  ;;  %v4247_v26 = vld [vmem:[%s5269_s4 + $0x28] sm:$0xff] }
 0xf1a   :  { %v3784_v35 = vpop.f32.mrf.mxu0  ;;  %v1896_v36 = vadd.f32 %v1888_v11, %v1880_v22  ;;  %v1913_v38 = vadd.f32 %v1905_v63, %v1897_v10  ;;  %v1895_v41 = vadd.f32 %v1887_v19, %v1879_v17 }
 0xf1b   :  { %v1862_v39 = vsel %vm272_vm3, %v1859_v60, %v1861_v27  ;;  %v1867_v40 = vrot.slane %v3784_v35, 4  ;;  %v1886_v51 = vmul.f32 %v4237_v37, %v3784_v35  ;;  %v4949_v37 = vld [vmem:[%s5270_s1 + $0x10] sm:$0xff] }
 0xf1c   :  { %v1890_v29 = vmul.f32 %v4236_v46, %v1862_v39  ;;  %v1818_v48 = vpop.f32.mrf.mxu0  ;;  %v1912_v58 = vadd.f32 %v1904_v42, %v1896_v36  ;;  %v1907_v11 = vmul.f32 %v4246_v8, %v1862_v39  ;;  %v1743_v36 = vpop.trf.xlu1 }
 0xf1d   :  { %v1868_v50 = vsel %vm272_vm3, %v1865_v32, %v1867_v40  ;;  %v1878_v34 = vsel %vm272_vm3, %v1867_v40, %v1854_v14  ;;  %v1863_v52 = vrot.slane %v1818_v48, 4  ;;  %v1884_v5 = vmul.f32 %v4242_v0, %v1818_v48  ;;  %3785 = vmatprep.mubr.msk.bf16.mxu0 %vm164_vm1, %v1743_v36  ;;  %v4943_v48 = vld [vmem:[%s5270_s1 + $0x20] sm:$0xff] }
 0xf1e   :  { %v1898_v53 = vadd.f32 %v1890_v29, %v1882_v28  ;;  %v1893_v54 = vmul.f32 %v4238_v44, %v1868_v50  ;;  %v1894_v56 = vmul.f32 %v4239_v55, %v1878_v34  ;;  %v1903_v57 = vmul.f32 %v4240_v30, %v1878_v34  ;;  %v4956_v44 = vld [vmem:[%s5270_s1 + $0x28] sm:$0xff] }
 0xf1f   :  { %v1910_v60 = vmul.f32 %v4241_v47, %v1868_v50  ;;  %v1864_v61 = vsel %vm272_vm3, %v1861_v27, %v1863_v52  ;;  %v1866_v14 = vsel %vm272_vm3, %v1863_v52, %v1865_v32 }
 0xf20   :  { %v1914_v1 = vadd.f32 %v1906_v18, %v1898_v53  ;;  %v1901_v3 = vadd.f32 %v1893_v54, %v1885_v33  ;;  %v1902_v4 = vadd.f32 %v1894_v56, %v1886_v51  ;;  %v1911_v25 = vadd.f32 %v1903_v57, %v1895_v41  ;;  %v4962_v56 = vld [vmem:[%s5270_s1 + $0x8] sm:$0xff]  ;;  %v4968_v57 = vld [vmem:[%s5270_s1 + $0x18] sm:$0xff] }
 0xf21   :  { %v1891_v7 = vmul.f32 %v4243_v6, %v1864_v61  ;;  %v1892_v10 = vmul.f32 %v4244_v9, %v1866_v14  ;;  %v1909_v19 = vmul.f32 %v4245_v2, %v1866_v14  ;;  %v1908_v63 = vmul.f32 %v4247_v26, %v1864_v61  ;;  %v4976_v61 = vld [vmem:[%s5270_s1] sm:$0xff] }
 0xf22   :  { %v1918_v62 = vadd.f32 %v1910_v60, %v1902_v4  ;;  %v4912_v15 = vpack.c.bf16 %v1912_v58, %v1911_v25  ;;  %v4914_v17 = vpack.c.bf16 %v1914_v1, %v1913_v38  ;;  %v1744_v38 = vpop.trf.xlu1 }
 0xf23   :  { %v1899_v21 = vadd.f32 %v1891_v7, %v1883_v45  ;;  %v1900_v22 = vadd.f32 %v1892_v10, %v1884_v5  ;;  %v1917_v27 = vadd.f32 %v1909_v19, %v1901_v3  ;;  %3786 = vmatmul.mubr.msk.bf16.gmra.mxu0 %vm164_vm1, %v1744_v38 }
 0xf24   :  { %1925 = vxpose.xlu0.c.b16.start.end [1/1] (short) (narrow) %v4912_v15, 48  ;;  %3809 = vmatprep.mubr.msk.bf16.mxu0 %vm4256_vm2, %v4255_v49 }
 0xf25   :  { %v1916_v12 = vadd.f32 %v1908_v63, %v1900_v22  ;;  %v1915_v28 = vadd.f32 %v1907_v11, %v1899_v21  ;;  %v4920_v31 = vpack.c.bf16 %v1918_v62, %v1917_v27 }
 0xf27   :  { %v4922_v18 = vpack.c.bf16 %v1916_v12, %v1915_v28 }
 0xf29   :  { %v1951_v32 = vsel %vm272_vm3, %v4922_v18, 0 }
 0xf2a   :  { %3790 = vmatpush3.bf16.msra.mxu1 %v1951_v32 }
 0xf2b   :  { %3827 = vmatprep.subr.bf16.mxu1 %v4255_v49 }
 0xf86   :  { %v1933_v20 = vpop.trf.xlu0 }
 0xf87   :  { %3792 = vmatmul.mubr.msk.bf16.vlgmr.msra.gmra.mxu1 %vm360_vm4, %v1933_v20 }
 0xf88   :  { %3795 = vmatprep.mubr.msk.bf16.mxu1 %vm4256_vm2, %v4255_v49 }
 0xf8a   :  { %v1934_v33 = vpop.trf.xlu0 }
 0xf8e   :  { %v1935_v35 = vpop.trf.xlu0 }
 0xf8f   :  { %3796 = vmatmul.mubr.msk.bf16.gmra.mxu1 %vm360_vm4, %v1934_v33 }
 0xf90   :  { %3799 = vmatprep.mubr.msk.bf16.mxu1 %vm4256_vm2, %v4255_v49 }
 0xf97   :  { %3800 = vmatmul.mubr.msk.bf16.gmra.mxu1 %vm360_vm4, %v1935_v35 }
 0xf98   :  { %3833 = vmatprep.mubr.msk.bf16.mxu1 %vm4256_vm2, %v4255_v49 }
0x1047   :  { %v1987_v39 = vpop.f32.mrf.mxu1 }
0x1048   :  { %v1988_v14 = vadd.f32 %v4976_v61, %v1987_v39 }
0x1049   :  { %v3793_v40 = vpop.f32.mrf.mxu1 }
0x104a   :  { %v2010_v4 = vsel %vm84_vm0, %v1988_v14, -inf }
0x104b   :  { %v1990_v41 = vpop.f32.mrf.mxu1 }
0x104c   :  { %v1991_v30 = vadd.f32 %v4962_v56, %v1990_v41 }
0x104d   :  { %v3794_v59 = vpop.f32.mrf.mxu1 }
0x104e   :  { %v2013_v3 = vsel %vm84_vm0, %v1991_v30, -inf }
0x104f   :  { %v1995_v42 = vpop.f32.mrf.mxu1 }
0x1050   :  { %v1996_v51 = vadd.f32 %v4949_v37, %v1995_v42 }
0x1051   :  { %v3797_v43 = vpop.f32.mrf.mxu1 }
0x1052   :  { %v2016_v47 = vsel %vm84_vm0, %v1996_v51, -inf  ;;  %v3787_v43 = vpop.f32.mrf.mxu0 }
0x1053   :  { %v1998_v45 = vpop.f32.mrf.mxu1 }
0x1054   :  { %v1999_v58 = vadd.f32 %v4968_v57, %v1998_v45  ;;  %v1831_v45 = vpop.f32.mrf.mxu0 }
0x1055   :  { %v3798_v46 = vpop.f32.mrf.mxu1 }
0x1056   :  { %v2019_v1 = vsel %vm84_vm0, %v1999_v58, -inf  ;;  %v3788_v46 = vpop.f32.mrf.mxu0 }
0x1057   :  { %v2003_v29 = vpop.f32.mrf.mxu1 }
0x1058   :  { %v2004_v50 = vadd.f32 %v4943_v48, %v2003_v29  ;;  %v4988_v29 = vpack.c.bf16 %v3788_v46, %v3787_v43 }
0x1059   :  { %v3801_v34 = vpop.f32.mrf.mxu1 }
0x105a   :  { %v2022_v52 = vsel %vm84_vm0, %v2004_v50, -inf }
0x105b   :  { %2023 = vmax.xlane.f32.xlu0 %v2022_v52  ;;  %v2006_v53 = vpop.f32.mrf.mxu1 }
0x105c   :  { %v2007_v54 = vadd.f32 %v4956_v44, %v2006_v53 }
0x105d   :  { %v3802_v55 = vpop.f32.mrf.mxu1 }
0x105e   :  { %v2025_v60 = vsel %vm84_vm0, %v2007_v54, -inf }
0x105f   :  { %2017 = vmax.xlane.f32.xlu0 %v2016_v47  ;;  %2026 = vmax.xlane.f32.xlu1 %v2025_v60 }
0x1063   :  { %2020 = vmax.xlane.f32.xlu0 %v2019_v1  ;;  %2014 = vmax.xlane.f32.xlu1 %v2013_v3 }
0x1067   :  { %2011 = vmax.xlane.f32.xlu0 %v2010_v4 }
0x10e4   :  { %v2024_v25 = vpop.xlane.xlu0 %2023 }
0x10e5   :  { %v2032_v0 = vsub.f32 %v2004_v50, %v2024_v25  ;;  %v2132_v50 = vrot.slane %v4912_v15, 4 }
0x10e7   :  { %v2042_v5 = vmul.f32 1.442695, %v2032_v0 }
0x10e8   :  { %v2018_v6 = vpop.xlane.xlu0 %2017  ;;  %v2027_v7 = vpop.xlane.xlu1 %2026 }
0x10e9   :  { %4088 = vpow2.f32 %v2042_v5  ;;  %v2030_v9 = vsub.f32 %v1996_v51, %v2018_v6  ;;  %v2033_v10 = vsub.f32 %v2007_v54, %v2027_v7 }
0x10eb   :  { %v2038_v2 = vmul.f32 1.442695, %v2030_v9  ;;  %v2044_v19 = vmul.f32 1.442695, %v2033_v10 }
0x10ec   :  { %v2021_v8 = vpop.xlane.xlu0 %2020  ;;  %v2015_v11 = vpop.xlane.xlu1 %2014 }
0x10ed   :  { %4090 = vpow2.f32 %v2038_v2  ;;  %v2031_v62 = vsub.f32 %v1999_v58, %v2021_v8  ;;  %v2029_v21 = vsub.f32 %v1991_v30, %v2015_v11  ;;  %v1834_v8 = vpop.f32.mrf.mxu0  ;;  %v2151_v11 = vrot.slane %v4922_v18, 4 }
0x10ee   :  { %4092 = vpow2.f32 %v2044_v19 }
0x10ef   :  { %v2040_v22 = vmul.f32 1.442695, %v2031_v62  ;;  %v2036_v26 = vmul.f32 1.442695, %v2029_v21  ;;  %v4998_v62 = vpack.c.bf16 %v1834_v8, %v1831_v45  ;;  %v2162_v21 = vsel %vm272_vm3, %v2151_v11, 0 }
0x10f0   :  { %v2012_v63 = vpop.xlane.xlu0 %2011 }
0x10f1   :  { %4094 = vpow2.f32 %v2040_v22  ;;  %v2028_v27 = vsub.f32 %v1988_v14, %v2012_v63 }
0x10f2   :  { %4096 = vpow2.f32 %v2036_v26 }
0x10f3   :  { %v2034_v12 = vmul.f32 1.442695, %v2028_v27 }
0x10f5   :  { %4098 = vpow2.f32 %v2034_v12 }
0x10f6   :  { %v4089_v28 = vpop.eup %4088 }
0x10f7   :  { %v2058_v32 = vsel %vm84_vm0, %v4089_v28, 0.0 }
0x10f8   :  { %2059 = vadd.xlane.f32.xlu0 %v2058_v32 }
0x10fa   :  { %v4091_v20 = vpop.eup %4090 }
0x10fb   :  { %v4093_v33 = vpop.eup %4092  ;;  %v2052_v35 = vsel %vm84_vm0, %v4091_v20, 0.0 }
0x10fc   :  { %2053 = vadd.xlane.f32.xlu0 %v2052_v35  ;;  %v2061_v36 = vsel %vm84_vm0, %v4093_v33, 0.0 }
0x10fd   :  { %2062 = vadd.xlane.f32.xlu1 %v2061_v36 }
0x10fe   :  { %v4095_v38 = vpop.eup %4094 }
0x10ff   :  { %v2055_v39 = vsel %vm84_vm0, %v4095_v38, 0.0  ;;  %v4097_v40 = vpop.eup %4096 }
0x1100   :  { %v2049_v42 = vsel %vm84_vm0, %v4097_v40, 0.0 }
0x1101   :  { %2056 = vadd.xlane.f32.xlu1 %v2055_v39 }
0x1102   :  { %v4099_v41 = vpop.eup %4098 }
0x1103   :  { %v2046_v59 = vsel %vm84_vm0, %v4099_v41, 0.0 }
0x1104   :  { %2047 = vadd.xlane.f32.xlu0 %v2046_v59 }
0x1105   :  { %2050 = vadd.xlane.f32.xlu1 %v2049_v42 }
0x1131   :  { %2134 = vxpose.xlu0.c.b16.start.end [1/1] (short) (narrow) %v2132_v50, 48 }
0x1181   :  { %v2060_v34 = vpop.xlane.xlu0 %2059 }
0x1182   :  { %4100 = vrcp.f32 %v2060_v34 }
0x1185   :  { %v2054_v52 = vpop.xlane.xlu0 %2053 }
0x1186   :  { %v2063_v51 = vpop.xlane.xlu1 %2062 }
0x1187   :  { %4102 = vrcp.f32 %v2063_v51 }
0x1188   :  { %4104 = vrcp.f32 %v2054_v52 }
0x118a   :  { %v2057_v53 = vpop.xlane.xlu1 %2056 }
0x118b   :  { %4106 = vrcp.f32 %v2057_v53 }
0x118d   :  { %v2048_v54 = vpop.xlane.xlu0 %2047 }
0x118e   :  { %v2051_v55 = vpop.xlane.xlu1 %2050  ;;  %4108 = vrcp.f32 %v2048_v54 }
0x118f   :  { %4110 = vrcp.f32 %v2051_v55  ;;  %v4101_v30 = vpop.eup %4100 }
0x1190   :  { %v2074_v47 = vmul.f32 %v4101_v30, %v4089_v28 }
0x1193   :  { %v2142_v22 = vpop.trf.xlu0 }
0x1194   :  { %v4103_v58 = vpop.eup %4102 }
0x1195   :  { %v2075_v60 = vmul.f32 %v4103_v58, %v4093_v33  ;;  %v4105_v14 = vpop.eup %4104 }
0x1196   :  { %v2072_v25 = vmul.f32 %v4105_v14, %v4091_v20 }
0x1197   :  { %v2078_v1 = vpack.c.bf16 %v2075_v60, %v2074_v47  ;;  %v2143_v18 = vpop.trf.xlu0 }
0x1198   :  { %v4107_v15 = vpop.eup %4106 }
0x1199   :  { %v2089_v3 = vsel %vm84_vm0, %v2078_v1, 0  ;;  %v2073_v4 = vmul.f32 %v4107_v15, %v4095_v38 }
0x119a   :  { %3804 = vmatpush3.bf16.xpose.msra.mxu0 %v2089_v3 }
0x119b   :  { %3805 = vmatprep.subr.bf16.mxu0 %v4255_v49  ;;  %v4109_v0 = vpop.eup %4108  ;;  %v2077_v5 = vpack.c.bf16 %v2073_v4, %v2072_v25  ;;  %v2144_v26 = vpop.trf.xlu0 }
0x119c   :  { %v4111_v6 = vpop.eup %4110  ;;  %v2070_v9 = vmul.f32 %v4109_v0, %v4099_v41 }
0x119d   :  { %v2086_v7 = vsel %vm84_vm0, %v2077_v5, 0  ;;  %v2071_v10 = vmul.f32 %v4111_v6, %v4097_v40 }
0x119f   :  { %v2076_v2 = vpack.c.bf16 %v2071_v10, %v2070_v9 }
0x11a1   :  { %v2083_v19 = vsel %vm84_vm0, %v2076_v2, 0 }
0x11a2   :  { %3806 = vmatpush3.bf16.xpose.msra.mxu0 %v2086_v7 }
0x11a3   :  { %3807 = vmatprep.subr.bf16.mxu0 %v4255_v49 }
0x11aa   :  { %3808 = vmatpush3.bf16.xpose.msra.mxu0 %v2083_v19 }
0x11ab   :  { %3813 = vmatprep.subr.bf16.mxu0 %v4255_v49 }
0x11b1   :  { %3810 = vmatmul.mubr.msk.bf16.vlgmr.msra.gmra.mxu0 %vm84_vm0, %v4998_v62 }
0x11b2   :  { %3814 = vmatpush3.bf16.msra.mxu0 %v2162_v21  ;;  %3815 = vmatprep.mubr.msk.bf16.mxu0 %vm4256_vm2, %v4255_v49 }
0x11b3   :  { %3851 = vmatprep.subr.bf16.mxu0 %v4255_v49 }
0x11b9   :  { %3816 = vmatmul.mubr.msk.bf16.vlgmr.msra.gmra.mxu0 %vm360_vm4, %v2142_v22 }
0x11ba   :  { %3819 = vmatprep.mubr.msk.bf16.mxu0 %vm4256_vm2, %v4255_v49 }
0x11c1   :  { %3820 = vmatmul.mubr.msk.bf16.gmra.mxu0 %vm360_vm4, %v2143_v18 }
0x11c2   :  { %3823 = vmatprep.mubr.msk.bf16.mxu0 %vm4256_vm2, %v4255_v49 }
0x11c9   :  { %3824 = vmatmul.mubr.msk.bf16.gmra.mxu0 %vm360_vm4, %v2144_v26 }
0x11ca   :  { %3857 = vmatprep.mubr.msk.bf16.mxu0 %vm4256_vm2, %v4255_v49 }
0x1271   :  { %v5015_v63 = vpop.f32.mrf.mxu0 }
0x1273   :  { %v3811_v27 = vpop.f32.mrf.mxu0 }
0x1275   :  { %v2128_v12 = vpop.f32.mrf.mxu0 }
0x1277   :  { %v3812_v28 = vpop.f32.mrf.mxu0 }
0x1279   :  { %v2198_v32 = vpop.f32.mrf.mxu0 }
0x127a   :  { %v2199_v54 = vadd.f32 %v4976_v61, %v2198_v32 }
0x127b   :  { %v3817_v20 = vpop.f32.mrf.mxu0 }
0x127c   :  { %v2221_v58 = vsel %vm84_vm0, %v2199_v54, -inf }
0x127d   :  { %v2201_v33 = vpop.f32.mrf.mxu0 }
0x127e   :  { %v2202_v30 = vadd.f32 %v4962_v56, %v2201_v33 }
0x127f   :  { %v3818_v35 = vpop.f32.mrf.mxu0 }
0x1280   :  { %v2224_v47 = vsel %vm84_vm0, %v2202_v30, -inf }
0x1281   :  { %v2206_v36 = vpop.f32.mrf.mxu0 }
0x1282   :  { %v2207_v34 = vadd.f32 %v4949_v37, %v2206_v36 }
0x1283   :  { %v3821_v38 = vpop.f32.mrf.mxu0 }
0x1284   :  { %v2227_v53 = vsel %vm84_vm0, %v2207_v34, -inf }
0x1285   :  { %v2209_v39 = vpop.f32.mrf.mxu0 }
0x1286   :  { %v2210_v52 = vadd.f32 %v4968_v57, %v2209_v39 }
0x1287   :  { %v3822_v40 = vpop.f32.mrf.mxu0 }
0x1288   :  { %v2230_v55 = vsel %vm84_vm0, %v2210_v52, -inf }
0x1289   :  { %v2214_v41 = vpop.f32.mrf.mxu0 }
0x128a   :  { %v2215_v59 = vadd.f32 %v4943_v48, %v2214_v41 }
0x128b   :  { %v3825_v42 = vpop.f32.mrf.mxu0 }
0x128c   :  { %v2233_v43 = vsel %vm84_vm0, %v2215_v59, -inf }
0x128d   :  { %2234 = vmax.xlane.f32.xlu1 %v2233_v43  ;;  %v2217_v45 = vpop.f32.mrf.mxu0 }
0x128e   :  { %v2218_v46 = vadd.f32 %v4956_v44, %v2217_v45 }
0x128f   :  { %v3826_v50 = vpop.f32.mrf.mxu0 }
0x1290   :  { %v2236_v51 = vsel %vm84_vm0, %v2218_v46, -inf }
0x1291   :  { %2237 = vmax.xlane.f32.xlu1 %v2236_v51 }
0x1295   :  { %2228 = vmax.xlane.f32.xlu1 %v2227_v53 }
0x1299   :  { %2231 = vmax.xlane.f32.xlu1 %v2230_v55 }
0x129d   :  { %2222 = vmax.xlane.f32.xlu1 %v2221_v58 }
0x12a1   :  { %2225 = vmax.xlane.f32.xlu1 %v2224_v47 }
0x1316   :  { %v2235_v60 = vpop.xlane.xlu1 %2234 }
0x1317   :  { %v2243_v14 = vsub.f32 %v2215_v59, %v2235_v60 }
0x1319   :  { %v2253_v1 = vmul.f32 1.442695, %v2243_v14 }
0x131a   :  { %v2238_v15 = vpop.xlane.xlu1 %2237 }
0x131b   :  { %4112 = vpow2.f32 %v2253_v1  ;;  %v2244_v3 = vsub.f32 %v2218_v46, %v2238_v15 }
0x131d   :  { %v2255_v4 = vmul.f32 1.442695, %v2244_v3 }
0x131e   :  { %v2229_v25 = vpop.xlane.xlu1 %2228 }
0x131f   :  { %4114 = vpow2.f32 %v2255_v4  ;;  %v2241_v0 = vsub.f32 %v2207_v34, %v2229_v25  ;;  %v2291_v25 = vrot.slane %v4998_v62, 4 }
0x1321   :  { %v2249_v5 = vmul.f32 1.442695, %v2241_v0  ;;  %v2370_v0 = vsel %vm272_vm3, %v4920_v31, 0 }
0x1322   :  { %v2232_v6 = vpop.xlane.xlu1 %2231 }
0x1323   :  { %4116 = vpow2.f32 %v2249_v5  ;;  %v2242_v7 = vsub.f32 %v2210_v52, %v2232_v6 }
0x1325   :  { %v2251_v9 = vmul.f32 1.442695, %v2242_v7 }
0x1326   :  { %v2223_v10 = vpop.xlane.xlu1 %2222 }
0x1327   :  { %4118 = vpow2.f32 %v2251_v9  ;;  %v2239_v2 = vsub.f32 %v2199_v54, %v2223_v10 }
0x1328   :  { %v4113_v19 = vpop.eup %4112 }
0x1329   :  { %v2245_v8 = vmul.f32 1.442695, %v2239_v2  ;;  %v2269_v11 = vsel %vm84_vm0, %v4113_v19, 0.0 }
0x132a   :  { %2270 = vadd.xlane.f32.xlu1 %v2269_v11  ;;  %v2226_v21 = vpop.xlane.xlu1 %2225 }
0x132b   :  { %4120 = vpow2.f32 %v2245_v8  ;;  %v2240_v22 = vsub.f32 %v2202_v30, %v2226_v21 }
0x132c   :  { %v4115_v18 = vpop.eup %4114 }
0x132d   :  { %v2247_v26 = vmul.f32 1.442695, %v2240_v22  ;;  %v2272_v27 = vsel %vm84_vm0, %v4115_v18, 0.0 }
0x132e   :  { %2273 = vadd.xlane.f32.xlu1 %v2272_v27 }
0x132f   :  { %4122 = vpow2.f32 %v2247_v26 }
0x1330   :  { %v4117_v12 = vpop.eup %4116 }
0x1331   :  { %v2263_v28 = vsel %vm84_vm0, %v4117_v12, 0.0 }
0x1332   :  { %2264 = vadd.xlane.f32.xlu1 %v2263_v28 }
0x1334   :  { %v4119_v32 = vpop.eup %4118 }
0x1335   :  { %v2266_v20 = vsel %vm84_vm0, %v4119_v32, 0.0 }
0x1336   :  { %2267 = vadd.xlane.f32.xlu1 %v2266_v20 }
0x1338   :  { %v4121_v33 = vpop.eup %4120 }
0x1339   :  { %v2257_v35 = vsel %vm84_vm0, %v4121_v33, 0.0 }
0x133a   :  { %2258 = vadd.xlane.f32.xlu1 %v2257_v35 }
0x133c   :  { %v4123_v36 = vpop.eup %4122 }
0x133d   :  { %v2260_v38 = vsel %vm84_vm0, %v4123_v36, 0.0 }
0x133e   :  { %2261 = vadd.xlane.f32.xlu0 %v2260_v38 }
0x1367   :  { %2344 = vxpose.xlu1.c.b16.start.end [1/1] (short) (narrow) %v4914_v17, 48 }
0x13b3   :  { %v2271_v39 = vpop.xlane.xlu1 %2270 }
0x13b4   :  { %4124 = vrcp.f32 %v2271_v39 }
0x13b7   :  { %v2274_v40 = vpop.xlane.xlu1 %2273 }
0x13b8   :  { %4126 = vrcp.f32 %v2274_v40 }
0x13bb   :  { %v2265_v41 = vpop.xlane.xlu1 %2264 }
0x13bc   :  { %4128 = vrcp.f32 %v2265_v41 }
0x13bf   :  { %v2268_v59 = vpop.xlane.xlu1 %2267 }
0x13c0   :  { %4130 = vrcp.f32 %v2268_v59 }
0x13c1   :  { %v4125_v42 = vpop.eup %4124 }
0x13c2   :  { %v2285_v46 = vmul.f32 %v4125_v42, %v4113_v19 }
0x13c3   :  { %v2259_v43 = vpop.xlane.xlu1 %2258 }
0x13c4   :  { %4132 = vrcp.f32 %v2259_v43 }
0x13c5   :  { %v4127_v45 = vpop.eup %4126 }
0x13c6   :  { %v2286_v50 = vmul.f32 %v4127_v45, %v4115_v18 }
0x13c7   :  { %v2262_v34 = vpop.xlane.xlu0 %2261 }
0x13c8   :  { %4134 = vrcp.f32 %v2262_v34  ;;  %v2289_v51 = vpack.c.bf16 %v2286_v50, %v2285_v46 }
0x13c9   :  { %v4129_v53 = vpop.eup %4128  ;;  %v2352_v5 = vpop.trf.xlu1 }
0x13ca   :  { %v2302_v52 = vsel %vm84_vm0, %v2289_v51, 0  ;;  %v2283_v55 = vmul.f32 %v4129_v53, %v4117_v12 }
0x13cb   :  { %3828 = vmatpush3.bf16.xpose.msra.mxu1 %v2302_v52 }
0x13cc   :  { %3829 = vmatprep.subr.bf16.mxu1 %v4255_v49 }
0x13cd   :  { %v4131_v54 = vpop.eup %4130  ;;  %v2353_v6 = vpop.trf.xlu1 }
0x13ce   :  { %v2284_v30 = vmul.f32 %v4131_v54, %v4119_v32 }
0x13d0   :  { %v2288_v58 = vpack.c.bf16 %v2284_v30, %v2283_v55 }
0x13d1   :  { %v4133_v60 = vpop.eup %4132  ;;  %v2354_v62 = vpop.trf.xlu1 }
0x13d2   :  { %v2299_v47 = vsel %vm84_vm0, %v2288_v58, 0  ;;  %v2281_v1 = vmul.f32 %v4133_v60, %v4121_v33 }
0x13d3   :  { %3830 = vmatpush3.bf16.xpose.msra.mxu1 %v2299_v47 }
0x13d4   :  { %3831 = vmatprep.subr.bf16.mxu1 %v4255_v49 }
0x13d5   :  { %v4135_v14 = vpop.eup %4134 }
0x13d6   :  { %v2282_v15 = vmul.f32 %v4135_v14, %v4123_v36 }
0x13d8   :  { %v2287_v3 = vpack.c.bf16 %v2282_v15, %v2281_v1 }
0x13da   :  { %v2296_v4 = vsel %vm84_vm0, %v2287_v3, 0 }
0x13db   :  { %3832 = vmatpush3.bf16.xpose.msra.mxu1 %v2296_v4 }
0x13dc   :  { %3837 = vmatprep.subr.bf16.mxu1 %v4255_v49 }
0x13e2   :  { %3834 = vmatmul.mubr.msk.bf16.vlgmr.msra.gmra.mxu1 %vm84_vm0, %v2291_v25 }
0x13e3   :  { %3838 = vmatpush3.bf16.msra.mxu1 %v2370_v0  ;;  %3839 = vmatprep.mubr.msk.bf16.mxu1 %vm4256_vm2, %v4255_v49 }
0x13e4   :  { %3875 = vmatprep.subr.bf16.mxu1 %v4255_v49 }
0x13ea   :  { %3840 = vmatmul.mubr.msk.bf16.vlgmr.msra.gmra.mxu1 %vm360_vm4, %v2352_v5 }
0x13eb   :  { %3843 = vmatprep.mubr.msk.bf16.mxu1 %vm4256_vm2, %v4255_v49 }
0x13f2   :  { %3844 = vmatmul.mubr.msk.bf16.gmra.mxu1 %vm360_vm4, %v2353_v6 }
0x13f3   :  { %3847 = vmatprep.mubr.msk.bf16.mxu1 %vm4256_vm2, %v4255_v49 }
0x13fa   :  { %3848 = vmatmul.mubr.msk.bf16.gmra.mxu1 %vm360_vm4, %v2354_v62 }
0x13fb   :  { %3881 = vmatprep.mubr.msk.bf16.mxu1 %vm4256_vm2, %v4255_v49 }
0x14a2   :  { %v5058_v7 = vpop.f32.mrf.mxu1 }
0x14a4   :  { %v3835_v9 = vpop.f32.mrf.mxu1 }
0x14a6   :  { %v2341_v10 = vpop.f32.mrf.mxu1 }
0x14a8   :  { %v3836_v2 = vpop.f32.mrf.mxu1 }
0x14aa   :  { %v2406_v19 = vpop.f32.mrf.mxu1 }
0x14ab   :  { %v2407_v59 = vadd.f32 %v4976_v61, %v2406_v19 }
0x14ac   :  { %v3841_v8 = vpop.f32.mrf.mxu1 }
0x14ad   :  { %v2429_v45 = vsel %vm84_vm0, %v2407_v59, -inf }
0x14ae   :  { %v2409_v11 = vpop.f32.mrf.mxu1 }
0x14af   :  { %v2410_v43 = vadd.f32 %v4962_v56, %v2409_v11 }
0x14b0   :  { %v3842_v21 = vpop.f32.mrf.mxu1 }
0x14b1   :  { %v2432_v46 = vsel %vm84_vm0, %v2410_v43, -inf }
0x14b2   :  { %v2414_v22 = vpop.f32.mrf.mxu1 }
0x14b3   :  { %v2415_v38 = vadd.f32 %v4949_v37, %v2414_v22 }
0x14b4   :  { %v3845_v18 = vpop.f32.mrf.mxu1 }
0x14b5   :  { %v2435_v41 = vsel %vm84_vm0, %v2415_v38, -inf }
0x14b6   :  { %v2417_v26 = vpop.f32.mrf.mxu1 }
0x14b7   :  { %v2418_v40 = vadd.f32 %v4968_v57, %v2417_v26  ;;  %v2551_v26 = vrot.slane %v4914_v17, 4 }
0x14b8   :  { %v3846_v27 = vpop.f32.mrf.mxu1 }
0x14b9   :  { %v2438_v42 = vsel %vm84_vm0, %v2418_v40, -inf }
0x14ba   :  { %v2422_v12 = vpop.f32.mrf.mxu1 }
0x14bb   :  { %v2423_v28 = vadd.f32 %v4943_v48, %v2422_v12 }
0x14bc   :  { %v3849_v32 = vpop.f32.mrf.mxu1 }
0x14bd   :  { %v2441_v20 = vsel %vm84_vm0, %v2423_v28, -inf }
0x14be   :  { %2442 = vmax.xlane.f32.xlu0 %v2441_v20  ;;  %v2425_v33 = vpop.f32.mrf.mxu1 }
0x14bf   :  { %v2426_v35 = vadd.f32 %v4956_v44, %v2425_v33 }
0x14c0   :  { %v3850_v36 = vpop.f32.mrf.mxu1 }
0x14c1   :  { %v2444_v39 = vsel %vm84_vm0, %v2426_v35, -inf }
0x14c2   :  { %2445 = vmax.xlane.f32.xlu0 %v2444_v39 }
0x14c6   :  { %2436 = vmax.xlane.f32.xlu0 %v2435_v41 }
0x14ca   :  { %2439 = vmax.xlane.f32.xlu0 %v2438_v42 }
0x14ce   :  { %2430 = vmax.xlane.f32.xlu0 %v2429_v45 }
0x14d2   :  { %2433 = vmax.xlane.f32.xlu0 %v2432_v46 }
0x1547   :  { %v2443_v50 = vpop.xlane.xlu0 %2442 }
0x1548   :  { %v2451_v34 = vsub.f32 %v2423_v28, %v2443_v50 }
0x154a   :  { %v2461_v51 = vmul.f32 1.442695, %v2451_v34 }
0x154b   :  { %v2446_v52 = vpop.xlane.xlu0 %2445 }
0x154c   :  { %4136 = vpow2.f32 %v2461_v51  ;;  %v2452_v53 = vsub.f32 %v2426_v35, %v2446_v52 }
0x154e   :  { %v2463_v54 = vmul.f32 1.442695, %v2452_v53 }
0x154f   :  { %v2437_v55 = vpop.xlane.xlu0 %2436 }
0x1550   :  { %4138 = vpow2.f32 %v2463_v54  ;;  %v2449_v30 = vsub.f32 %v2415_v38, %v2437_v55  ;;  %v2570_v55 = vrot.slane %v4920_v31, 4 }
0x1552   :  { %v2457_v58 = vmul.f32 1.442695, %v2449_v30  ;;  %v2581_v30 = vsel %vm272_vm3, %v2570_v55, 0 }
0x1553   :  { %v2440_v47 = vpop.xlane.xlu0 %2439 }
0x1554   :  { %4140 = vpow2.f32 %v2457_v58  ;;  %v2450_v60 = vsub.f32 %v2418_v40, %v2440_v47 }
0x1556   :  { %v2459_v14 = vmul.f32 1.442695, %v2450_v60 }
0x1557   :  { %v2431_v1 = vpop.xlane.xlu0 %2430 }
0x1558   :  { %4142 = vpow2.f32 %v2459_v14  ;;  %v2447_v15 = vsub.f32 %v2407_v59, %v2431_v1 }
0x1559   :  { %v4137_v3 = vpop.eup %4136 }
0x155a   :  { %v2453_v4 = vmul.f32 1.442695, %v2447_v15  ;;  %v2477_v25 = vsel %vm84_vm0, %v4137_v3, 0.0 }
0x155b   :  { %2478 = vadd.xlane.f32.xlu0 %v2477_v25  ;;  %v2434_v0 = vpop.xlane.xlu0 %2433 }
0x155c   :  { %4144 = vpow2.f32 %v2453_v4  ;;  %v2448_v5 = vsub.f32 %v2410_v43, %v2434_v0 }
0x155d   :  { %v4139_v6 = vpop.eup %4138 }
0x155e   :  { %v2455_v62 = vmul.f32 1.442695, %v2448_v5  ;;  %v2480_v9 = vsel %vm84_vm0, %v4139_v6, 0.0 }
0x155f   :  { %2481 = vadd.xlane.f32.xlu1 %v2480_v9 }
0x1560   :  { %4146 = vpow2.f32 %v2455_v62 }
0x1561   :  { %v4141_v10 = vpop.eup %4140 }
0x1562   :  { %v2471_v2 = vsel %vm84_vm0, %v4141_v10, 0.0 }
0x1563   :  { %2472 = vadd.xlane.f32.xlu0 %v2471_v2 }
0x1565   :  { %v4143_v19 = vpop.eup %4142 }
0x1566   :  { %v2474_v8 = vsel %vm84_vm0, %v4143_v19, 0.0 }
0x1567   :  { %2475 = vadd.xlane.f32.xlu0 %v2474_v8 }
0x1569   :  { %v4145_v11 = vpop.eup %4144 }
0x156a   :  { %v2465_v21 = vsel %vm84_vm0, %v4145_v11, 0.0 }
0x156b   :  { %2466 = vadd.xlane.f32.xlu0 %v2465_v21 }
0x156d   :  { %v4147_v22 = vpop.eup %4146 }
0x156e   :  { %v2468_v18 = vsel %vm84_vm0, %v4147_v22, 0.0 }
0x156f   :  { %2469 = vadd.xlane.f32.xlu0 %v2468_v18 }
0x159c   :  { %2553 = vxpose.xlu0.c.b16.start.end [1/1] (short) (narrow) %v2551_v26, 48 }
0x15e4   :  { %v2479_v27 = vpop.xlane.xlu0 %2478 }
0x15e5   :  { %4148 = vrcp.f32 %v2479_v27 }
0x15e8   :  { %v2482_v12 = vpop.xlane.xlu1 %2481 }
0x15e9   :  { %4150 = vrcp.f32 %v2482_v12 }
0x15ec   :  { %v2473_v28 = vpop.xlane.xlu0 %2472 }
0x15ed   :  { %4152 = vrcp.f32 %v2473_v28 }
0x15f0   :  { %v2476_v32 = vpop.xlane.xlu0 %2475 }
0x15f1   :  { %4154 = vrcp.f32 %v2476_v32 }
0x15f2   :  { %v4149_v20 = vpop.eup %4148 }
0x15f3   :  { %v2493_v36 = vmul.f32 %v4149_v20, %v4137_v3 }
0x15f4   :  { %v2467_v33 = vpop.xlane.xlu0 %2466 }
0x15f5   :  { %4156 = vrcp.f32 %v2467_v33 }
0x15f6   :  { %v4151_v35 = vpop.eup %4150 }
0x15f7   :  { %v2494_v38 = vmul.f32 %v4151_v35, %v4139_v6 }
0x15f8   :  { %v2470_v39 = vpop.xlane.xlu0 %2469 }
0x15f9   :  { %4158 = vrcp.f32 %v2470_v39  ;;  %v2497_v40 = vpack.c.bf16 %v2494_v38, %v2493_v36 }
0x15fa   :  { %v4153_v41 = vpop.eup %4152 }
0x15fb   :  { %v2508_v17 = vsel %vm84_vm0, %v2497_v40, 0  ;;  %v2491_v42 = vmul.f32 %v4153_v41, %v4141_v10 }
0x15fc   :  { %3852 = vmatpush3.bf16.xpose.msra.mxu0 %v2508_v17 }
0x15fd   :  { %3853 = vmatprep.subr.bf16.mxu0 %v4255_v49 }
0x15fe   :  { %v4155_v59 = vpop.eup %4154  ;;  %v2561_v58 = vpop.trf.xlu0 }
0x15ff   :  { %v2492_v43 = vmul.f32 %v4155_v59, %v4143_v19 }
0x1601   :  { %v2496_v45 = vpack.c.bf16 %v2492_v43, %v2491_v42 }
0x1602   :  { %v4157_v50 = vpop.eup %4156  ;;  %v2562_v47 = vpop.trf.xlu0 }
0x1603   :  { %v2505_v46 = vsel %vm84_vm0, %v2496_v45, 0  ;;  %v2489_v51 = vmul.f32 %v4157_v50, %v4145_v11 }
0x1604   :  { %3854 = vmatpush3.bf16.xpose.msra.mxu0 %v2505_v46 }
0x1605   :  { %3855 = vmatprep.subr.bf16.mxu0 %v4255_v49 }
0x1606   :  { %v4159_v34 = vpop.eup %4158  ;;  %v2563_v31 = vpop.trf.xlu0 }
0x1607   :  { %v2490_v52 = vmul.f32 %v4159_v34, %v4147_v22 }
0x1609   :  { %v2495_v53 = vpack.c.bf16 %v2490_v52, %v2489_v51 }
0x160b   :  { %v2502_v54 = vsel %vm84_vm0, %v2495_v53, 0 }
0x160c   :  { %3856 = vmatpush3.bf16.xpose.msra.mxu0 %v2502_v54 }
0x160d   :  { %3861 = vmatprep.subr.bf16.mxu0 %v4255_v49 }
0x1613   :  { %3858 = vmatmul.mubr.msk.bf16.vlgmr.msra.gmra.mxu0 %vm84_vm0, %v4988_v29 }
0x1614   :  { %3862 = vmatpush3.bf16.msra.mxu0 %v2581_v30  ;;  %3863 = vmatprep.mubr.msk.bf16.mxu0 %vm4256_vm2, %v4255_v49 }
0x161b   :  { %3864 = vmatmul.mubr.msk.bf16.vlgmr.msra.gmra.mxu0 %vm360_vm4, %v2561_v58 }
0x161c   :  { %3867 = vmatprep.mubr.msk.bf16.mxu0 %vm4256_vm2, %v4255_v49 }
0x1623   :  { %3868 = vmatmul.mubr.msk.bf16.gmra.mxu0 %vm360_vm4, %v2562_v47 }
0x1624   :  { %3871 = vmatprep.mubr.msk.bf16.mxu0 %vm4256_vm2, %v4255_v49 }
0x162b   :  { %3872 = vmatmul.mubr.msk.bf16.gmra.mxu0 %vm360_vm4, %v2563_v31 }
0x16d3   :  { %v5098_v60 = vpop.f32.mrf.mxu0 }
0x16d5   :  { %v3859_v14 = vpop.f32.mrf.mxu0 }
0x16d7   :  { %v2547_v1 = vpop.f32.mrf.mxu0 }
0x16d9   :  { %v3860_v15 = vpop.f32.mrf.mxu0 }
0x16da   :  { %v3463_v15 = vld [vmem:[%s5274_s8 + $0x30] sm:$0xff] }
0x16db   :  { %v2617_v3 = vpop.f32.mrf.mxu0 }
0x16dd   :  { %v3865_v4 = vpop.f32.mrf.mxu0 }
0x16de   :  { %v3461_v4 = vld [vmem:[%s5274_s8 + $0x20] sm:$0xff] }
0x16df   :  { %v2620_v25 = vpop.f32.mrf.mxu0 }
0x16e0   :  { %v2621_v32 = vadd.f32 %v4962_v56, %v2620_v25  ;;  %v3462_v25 = vld [vmem:[%s5274_s8 + $0x28] sm:$0xff] }
0x16e1   :  { %v3866_v0 = vpop.f32.mrf.mxu0 }
0x16e2   :  { %v3946_v0 = vld [vmem:[%s5271_s7 + $0x10] sm:$0xff]  }
0x16e3   :  { %v2625_v5 = vpop.f32.mrf.mxu0 }
0x16e4   :  { %v2626_v18 = vadd.f32 %v4949_v37, %v2625_v5  ;;  %v2643_v37 = vsel %vm84_vm0, %v2621_v32, -inf  ;;  %v3947_v5 = vld [vmem:[%s5271_s7 + $0x18] sm:$0xff]  }
0x16e5   :  { %v3869_v6 = vpop.f32.mrf.mxu0 }
0x16e6   :  { %v2646_v12 = vsel %vm84_vm0, %v2626_v18, -inf }
0x16e7   :  { %v2628_v62 = vpop.f32.mrf.mxu0 }
0x16e8   :  { %v2629_v27 = vadd.f32 %v4968_v57, %v2628_v62 }
0x16e9   :  { %v3870_v9 = vpop.f32.mrf.mxu0 }
0x16ea   :  { %v2649_v28 = vsel %vm84_vm0, %v2629_v27, -inf }
0x16eb   :  { %v2633_v10 = vpop.f32.mrf.mxu0 }
0x16ec   :  { %v2634_v2 = vadd.f32 %v4943_v48, %v2633_v10  ;;  %v2618_v48 = vadd.f32 %v4976_v61, %v2617_v3  ;;  %v3464_v3 = vld [vmem:[%s5274_s8 + $0x38] sm:$0xff] }
0x16ed   :  { %v3873_v19 = vpop.f32.mrf.mxu0 }
0x16ee   :  { %v2652_v8 = vsel %vm84_vm0, %v2634_v2, -inf }
0x16ef   :  { %2653 = vmax.xlane.f32.xlu1 %v2652_v8  ;;  %v2636_v11 = vpop.f32.mrf.mxu0 }
0x16f0   :  { %v2637_v21 = vadd.f32 %v4956_v44, %v2636_v11  ;;  %v2640_v44 = vsel %vm84_vm0, %v2618_v48, -inf }
0x16f1   :  { %v3874_v22 = vpop.f32.mrf.mxu0 }
0x16f2   :  { %v2655_v26 = vsel %vm84_vm0, %v2637_v21, -inf }
0x16f3   :  { %2656 = vmax.xlane.f32.xlu1 %v2655_v26 }
0x16f7   :  { %2647 = vmax.xlane.f32.xlu1 %v2646_v12 }
0x16fb   :  { %2650 = vmax.xlane.f32.xlu1 %v2649_v28 }
0x16ff   :  { %2641 = vmax.xlane.f32.xlu1 %v2640_v44 }
0x1703   :  { %2644 = vmax.xlane.f32.xlu1 %v2643_v37 }
0x1778   :  { %v2654_v20 = vpop.xlane.xlu1 %2653 }
0x1779   :  { %v2662_v33 = vsub.f32 %v2634_v2, %v2654_v20 }
0x177b   :  { %v2672_v35 = vmul.f32 1.442695, %v2662_v33 }
0x177c   :  { %v2657_v57 = vpop.xlane.xlu1 %2656 }
0x177d   :  { %4160 = vpow2.f32 %v2672_v35  ;;  %v2663_v36 = vsub.f32 %v2637_v21, %v2657_v57 }
0x177f   :  { %v2674_v38 = vmul.f32 1.442695, %v2663_v36 }
0x1780   :  { %v2648_v39 = vpop.xlane.xlu1 %2647 }
0x1781   :  { %4162 = vpow2.f32 %v2674_v38  ;;  %v2660_v61 = vsub.f32 %v2626_v18, %v2648_v39  ;;  %v2710_v38 = vrot.slane %v4988_v29, 4  ;;  %v2763_v29 = vpack.c.bf16 %v5058_v7, %v5015_v63  ;;  %v3951_v63 = vld [vmem:[%s5273_s10 + $0x28] sm:$0xff]   ;;  %v3952_v7 = vld [vmem:[%s5273_s10 + $0x30] sm:$0xff]  }
0x1783   :  { %v2668_v40 = vmul.f32 1.442695, %v2660_v61  ;;  %v3948_v61 = vld [vmem:[%s5272_s9 + $0x10] sm:$0xff]  }
0x1784   :  { %v2651_v17 = vpop.xlane.xlu1 %2650 }
0x1785   :  { %4164 = vpow2.f32 %v2668_v40  ;;  %v2661_v56 = vsub.f32 %v2629_v27, %v2651_v17 }
0x1787   :  { %v2670_v41 = vmul.f32 1.442695, %v2661_v56 }
0x1788   :  { %v2642_v59 = vpop.xlane.xlu1 %2641 }
0x1789   :  { %4166 = vpow2.f32 %v2670_v41  ;;  %v2658_v42 = vsub.f32 %v2618_v48, %v2642_v59 }
0x178a   :  { %v4161_v43 = vpop.eup %4160 }
0x178b   :  { %v2664_v45 = vmul.f32 1.442695, %v2658_v42  ;;  %v2688_v46 = vsel %vm84_vm0, %v4161_v43, 0.0 }
0x178c   :  { %2689 = vadd.xlane.f32.xlu1 %v2688_v46  ;;  %v2645_v50 = vpop.xlane.xlu1 %2644 }
0x178d   :  { %4168 = vpow2.f32 %v2664_v45  ;;  %v2659_v34 = vsub.f32 %v2621_v32, %v2645_v50  ;;  %v3953_v45 = vld [vmem:[%s5273_s10 + $0x38] sm:$0xff]  }
0x178e   :  { %v4163_v51 = vpop.eup %4162 }
0x178f   :  { %v2666_v52 = vmul.f32 1.442695, %v2659_v34  ;;  %v2691_v53 = vsel %vm84_vm0, %v4163_v51, 0.0 }
0x1790   :  { %2692 = vadd.xlane.f32.xlu1 %v2691_v53 }
0x1791   :  { %4170 = vpow2.f32 %v2666_v52 }
0x1792   :  { %v4165_v54 = vpop.eup %4164 }
0x1793   :  { %v2682_v55 = vsel %vm84_vm0, %v4165_v54, 0.0 }
0x1794   :  { %2683 = vadd.xlane.f32.xlu1 %v2682_v55 }
0x1796   :  { %v4167_v30 = vpop.eup %4166 }
0x1797   :  { %v2685_v58 = vsel %vm84_vm0, %v4167_v30, 0.0 }
0x1798   :  { %2686 = vadd.xlane.f32.xlu1 %v2685_v58 }
0x179a   :  { %v4169_v47 = vpop.eup %4168 }
0x179b   :  { %v2676_v31 = vsel %vm84_vm0, %v4169_v47, 0.0 }
0x179c   :  { %2677 = vadd.xlane.f32.xlu1 %v2676_v31 }
0x179e   :  { %v4171_v14 = vpop.eup %4170 }
0x179f   :  { %v2679_v1 = vsel %vm84_vm0, %v4171_v14, 0.0 }
0x17a0   :  { %2680 = vadd.xlane.f32.xlu0 %v2679_v1 }
0x17b6   :  { %2898 = vperm.xlu0 %3932, %v3463_v15  }
0x17ba   :  { %2903 = vperm.xlu0 %3932, %v3464_v3  }
0x17be   :  { %2888 = vperm.xlu0 %3932, %v3461_v4  }
0x17c2   :  { %2893 = vperm.xlu0 %3932, %v3462_v25  }
0x17c9   :  { %2782 = vxpose.xlu1.c.b16.start [1/2] (short) (narrow) %v3946_v0, 32 }
0x17cd   :  { %2783 = vxpose.xlu1.c.b16.end [2/2] (short) (narrow) %v3947_v5, 32 }
0x17d1   :  { %2929 = vxpose.xlu1.c.b16.start [1/2] (short) %v3948_v61, 128 }
0x1815   :  { %v2690_v6 = vpop.xlane.xlu1 %2689 }
0x1816   :  { %4172 = vrcp.f32 %v2690_v6 }
0x1819   :  { %v2693_v62 = vpop.xlane.xlu1 %2692 }
0x181a   :  { %4174 = vrcp.f32 %v2693_v62 }
0x181d   :  { %v2684_v9 = vpop.xlane.xlu1 %2683 }
0x181e   :  { %4176 = vrcp.f32 %v2684_v9 }
0x1821   :  { %v2687_v10 = vpop.xlane.xlu1 %2686 }
0x1822   :  { %4178 = vrcp.f32 %v2687_v10 }
0x1823   :  { %v4173_v2 = vpop.eup %4172 }
0x1824   :  { %v2704_v11 = vmul.f32 %v4173_v2, %v4161_v43 }
0x1825   :  { %v2678_v19 = vpop.xlane.xlu1 %2677 }
0x1826   :  { %4180 = vrcp.f32 %v2678_v19 }
0x1827   :  { %v4175_v8 = vpop.eup %4174 }
0x1828   :  { %v2705_v21 = vmul.f32 %v4175_v8, %v4163_v51 }
0x1829   :  { %v2681_v22 = vpop.xlane.xlu0 %2680 }
0x182a   :  { %4182 = vrcp.f32 %v2681_v22  ;;  %v2708_v18 = vpack.c.bf16 %v2705_v21, %v2704_v11 }
0x182b   :  { %v4177_v27 = vpop.eup %4176  ;;  %v2790_v39 = vpop.trf.xlu1 }
0x182c   :  { %v2721_v26 = vsel %vm84_vm0, %v2708_v18, 0  ;;  %v2702_v48 = vmul.f32 %v4177_v27, %v4165_v54 }
0x182d   :  { %3876 = vmatpush3.bf16.xpose.msra.mxu1 %v2721_v26 }
0x182e   :  { %3877 = vmatprep.subr.bf16.mxu1 %v4255_v49 }
0x182f   :  { %v4179_v12 = vpop.eup %4178  ;;  %v2791_v42 = vpop.trf.xlu1 }
0x1830   :  { %v2703_v28 = vmul.f32 %v4179_v12, %v4167_v30 }
0x1831   :  { %v2899_v9 = vpop.permute.xlu0 %2898 }
0x1832   :  { %v2707_v32 = vpack.c.bf16 %v2703_v28, %v2702_v48 }
0x1833   :  { %v4181_v37 = vpop.eup %4180 }
0x1834   :  { %v2718_v44 = vsel %vm84_vm0, %v2707_v32, 0  ;;  %v2700_v33 = vmul.f32 %v4181_v37, %v4169_v47 }
0x1835   :  { %3878 = vmatpush3.bf16.xpose.msra.mxu1 %v2718_v44  ;;  %v2904_v2 = vpop.permute.xlu0 %2903 }
0x1836   :  { %3879 = vmatprep.subr.bf16.mxu1 %v4255_v49  ;;  %v3949_v49 = vld [vmem:[%s5272_s9 + $0x18] sm:$0xff]  }
0x1837   :  { %v4183_v20 = vpop.eup %4182  ;;  %2930 = vxpose.xlu1.c.b16.end [2/2] (short) %v3949_v49, 128 }
0x1838   :  { %v2701_v35 = vmul.f32 %v4183_v20, %v4171_v14 }
0x1839   :  { %v2889_v19 = vpop.permute.xlu0 %2888 }
0x183a   :  { %v2706_v57 = vpack.c.bf16 %v2701_v35, %v2700_v33 }
0x183c   :  { %v2715_v36 = vsel %vm84_vm0, %v2706_v57, 0 }
0x183d   :  { %3880 = vmatpush3.bf16.xpose.msra.mxu1 %v2715_v36  ;;  %v2894_v26 = vpop.permute.xlu0 %2893 }
0x1844   :  { %3882 = vmatmul.mubr.msk.bf16.vlgmr.msra.gmra.mxu1 %vm84_vm0, %v2710_v38 }
0x1845   :  { %3889 = vmatprep.mubr.msk.bf16.mxu1 %vm164_vm1, %v2790_v39 }
0x1895   :  { %v2937_v43 = vpop.trf.xlu1 }
0x1899   :  { %v2938_v27 = vpop.trf.xlu1 }
0x189d   :  { %v2939_v20 = vpop.trf.xlu1 }
0x18a1   :  { %v2940_v33 = vpop.trf.xlu1 }
0x18a5   :  { %v2941_v35 = vpop.trf.xlu1 }
0x18a9   :  { %v2942_v57 = vpop.trf.xlu1 }
0x18ad   :  { %v2943_v36 = vpop.trf.xlu1 }
0x18b1   :  { %v2944_v38 = vpop.trf.xlu1 }
0x1904   :  { %v2757_v40 = vpop.f32.mrf.mxu1 }
0x1905   :  { %v2764_v17 = vpack.c.bf16 %v2757_v40, %v5098_v60  ;;  %v3950_v60 = vld [vmem:[%s5273_s10 + $0x20] sm:$0xff]   ;;  %s4257_s10 = smov 112  }
0x1906   :  { %v3883_v56 = vpop.f32.mrf.mxu1  ;;  %3167 = vxpose.xlu0.c.b16.start [1/4] (short) (narrow) %v3950_v60, 32 }
0x1907   :  { %3885 = vmatprep.subr.bf16.mxu1 %v2764_v17 }
0x1908   :  { %v2760_v41 = vpop.f32.mrf.mxu1  ;;  %3886 = vmatpush3.bf16.msra.mxu1 %v2764_v17 }
0x1909   :  { %3887 = vmatprep.subr.bf16.mxu1 %v2763_v29 }
0x190a   :  { %v3884_v59 = vpop.f32.mrf.mxu1  ;;  %3168 = vxpose.xlu0.c.b16.cont [2/4] (short) (narrow) %v3951_v63, 32 }
0x190c   :  { %3888 = vmatpush3.bf16.msra.mxu1 %v2763_v29 }
0x190e   :  { %3169 = vxpose.xlu0.c.b16.cont [3/4] (short) (narrow) %v3952_v7, 32 }
0x190f   :  { %3890 = vmatmul.mubr.msk.bf16.vlgmr.msra.gmra.mxu1 %vm164_vm1, %v2791_v42 }
0x1910   :  { %3897 = vmatprep.mubr.msk.bf16.mxu1 %vm164_vm1, %v2937_v43 }
0x1912   :  { %3170 = vxpose.xlu0.c.b16.end [4/4] (short) (narrow) %v3953_v45, 32 }
0x1968   :  { %v3175_v39 = vpop.trf.xlu0 }
0x1969   :  { %3921 = vmatprep.mubr.msk.bf16.mxu0 %vm1599_vm5, %v3175_v39 }
0x19cf   :  { %v3891_v46 = vpop.f32.mrf.mxu1 }
0x19d0   :  { %v5171_v52 = vadd.f32 %v3891_v46, %v4807_v13 }
0x19d1   :  { %v2838_v50 = vpop.f32.mrf.mxu1 }
0x19d2   :  { %v5168_v34 = vadd.f32 %v2838_v50, %v4804_v16  ;;  %v2864_v58 = vmul.f32 %v5171_v52, %v5171_v52 }
0x19d3   :  { %v3892_v51 = vpop.f32.mrf.mxu1 }
0x19d4   :  { %v2862_v54 = vmul.f32 %v5168_v34, %v5168_v34  ;;  %v5176_v55 = vadd.f32 %v3892_v51, %v4812_v23  ;;  %v2869_v23 = vsel %vm84_vm0, %v2864_v58, 0.0 }
0x19d5   :  { %v2841_v53 = vpop.f32.mrf.mxu1 }
0x19d6   :  { %v5179_v30 = vadd.f32 %v2841_v53, %v4815_v24  ;;  %v2866_v47 = vsel %vm84_vm0, %v2862_v54, 0.0  ;;  %v2865_v13 = vmul.f32 %v5176_v55, %v5176_v55 }
0x19d8   :  { %v2863_v16 = vmul.f32 %v5179_v30, %v5179_v30  ;;  %v2871_v24 = vsel %vm84_vm0, %v2865_v13, 0.0 }
0x19da   :  { %v2867_v31 = vsel %vm84_vm0, %v2863_v16, 0.0 }
0x19db   :  { %v2868_v14 = vadd.f32 %v2867_v31, %v2866_v47 }
0x19dd   :  { %v2870_v1 = vadd.f32 %v2869_v23, %v2868_v14 }
0x19df   :  { %v2872_v15 = vadd.f32 %v2871_v24, %v2870_v1 }
0x19e1   :  { %v2873_v3 = vrot.slane %v2872_v15, 4 }
0x19e3   :  { %v2874_v4 = vadd.f32 %v2873_v3, %v2872_v15 }
0x19e5   :  { %v2875_v25 = vrot.slane %v2874_v4, 2 }
0x19e7   :  { %v2876_v0 = vadd.f32 %v2875_v25, %v2874_v4 }
0x19e9   :  { %v2877_v5 = vrot.slane %v2876_v0, 1 }
0x19eb   :  { %v2878_v6 = vadd.f32 %v2877_v5, %v2876_v0 }
0x19ed   :  { %v2879_v62 = vmul.f32 0.03125, %v2878_v6 }
0x19ef   :  { %v2880_v10 = vadd.f32 1e-06, %v2879_v62 }
0x19f1   :  { %4184 = vrsqrt.f32 %v2880_v10 }
0x19fe   :  { %v4185_v8 = vpop.eup %4184 }
0x19ff   :  { %v2883_v11 = vmul.f32 %v4185_v8, %v5179_v30  ;;  %v2884_v21 = vmul.f32 %v4185_v8, %v5171_v52  ;;  %v2885_v22 = vmul.f32 %v4185_v8, %v5176_v55  ;;  %v2882_v18 = vmul.f32 %v4185_v8, %v5168_v34 }
0x1a01   :  { %v2908_v12 = vmul.f32 %v2899_v9, %v2884_v21  ;;  %v2909_v48 = vmul.f32 %v2904_v2, %v2885_v22  ;;  %v2906_v28 = vmul.f32 %v2889_v19, %v2882_v18  ;;  %v2907_v32 = vmul.f32 %v2894_v26, %v2883_v11 }
0x1a03   :  { %v2911_v44 = vpack.c.bf16 %v2909_v48, %v2908_v12  ;;  %v2910_v37 = vpack.c.bf16 %v2907_v32, %v2906_v28 }
0x1a05   :  { %3893 = vmatprep.subr.bf16.mxu1 %v2911_v44 }
0x1a06   :  { %3894 = vmatpush3.bf16.msra.mxu1 %v2911_v44 }
0x1a07   :  { %3895 = vmatprep.subr.bf16.mxu1 %v2910_v37 }
0x1a0a   :  { %3896 = vmatpush3.bf16.msra.mxu1 %v2910_v37 }
0x1a0d   :  { %3898 = vmatmul.mubr.msk.bf16.vlgmr.msra.gmra.mxu1 %vm164_vm1, %v2938_v27 }
0x1a0e   :  { %3901 = vmatprep.mubr.msk.bf16.mxu1 %vm164_vm1, %v2939_v20 }
0x1a15   :  { %3902 = vmatmul.mubr.msk.bf16.gmra.mxu1 %vm164_vm1, %v2940_v33 }
0x1a16   :  { %3905 = vmatprep.mubr.msk.bf16.mxu1 %vm164_vm1, %v2941_v35 }
0x1a1d   :  { %3906 = vmatmul.mubr.msk.bf16.gmra.mxu1 %vm164_vm1, %v2942_v57 }
0x1a1e   :  { %3909 = vmatprep.mubr.msk.bf16.mxu1 %vm164_vm1, %v2943_v36 }
0x1a25   :  { %3910 = vmatmul.mubr.msk.bf16.gmra.mxu1 %vm164_vm1, %v2944_v38 }
0x1acd   :  { %v5203_v61 = vpop.f32.mrf.mxu1 }
0x1ace   :  { %v3481_v29 = vmul.f32 -1.442695, %v5203_v61 }
0x1acf   :  { %v5205_v49 = vpop.f32.mrf.mxu1 }
0x1ad0   :  { %v3479_v63 = vmul.f32 -1.442695, %v5205_v49 }
0x1ad1   :  { %v3900_v40 = vpop.f32.mrf.mxu1 }
0x1ad2   :  { %v3482_v17 = vmul.f32 -1.442695, %v3900_v40 }
0x1ad3   :  { %v5207_v56 = vpop.f32.mrf.mxu1 }
0x1ad4   :  { %4186 = vpow2.f32 %v3482_v17  ;;  %v3480_v42 = vmul.f32 -1.442695, %v5207_v56 }
0x1ad5   :  { %v3903_v41 = vpop.f32.mrf.mxu1 }
0x1ad6   :  { %v3485_v59 = vmul.f32 -1.442695, %v3903_v41 }
0x1ad7   :  { %v3019_v43 = vpop.f32.mrf.mxu1 }
0x1ad8   :  { %4188 = vpow2.f32 %v3485_v59  ;;  %v3483_v60 = vmul.f32 -1.442695, %v3019_v43 }
0x1ad9   :  { %4190 = vpow2.f32 %v3481_v29  ;;  %v3904_v7 = vpop.f32.mrf.mxu1 }
0x1ada   :  { %4192 = vpow2.f32 %v3483_v60  ;;  %v3486_v45 = vmul.f32 -1.442695, %v3904_v7  ;;  %v3176_v60 = vpop.trf.xlu0 }
0x1adb   :  { %4194 = vpow2.f32 %v3480_v42  ;;  %v3022_v46 = vpop.f32.mrf.mxu1 }
0x1adc   :  { %4196 = vpow2.f32 %v3486_v45  ;;  %v3484_v50 = vmul.f32 -1.442695, %v3022_v46 }
0x1add   :  { %4198 = vpow2.f32 %v3479_v63  ;;  %v3907_v51 = vpop.f32.mrf.mxu1 }
0x1ade   :  { %4200 = vpow2.f32 %v3484_v50 }
0x1adf   :  { %v3035_v58 = vpop.f32.mrf.mxu1 }
0x1ae1   :  { %v4187_v53 = vpop.eup %4186  ;;  %v3908_v15 = vpop.f32.mrf.mxu1 }
0x1ae2   :  { %v3093_v31 = vadd.f32 1.0, %v4187_v53 }
0x1ae3   :  { %v3038_v6 = vpop.f32.mrf.mxu1 }
0x1ae5   :  { %v4189_v54 = vpop.eup %4188  ;;  %v3911_v9 = vpop.f32.mrf.mxu1 }
0x1ae6   :  { %v4191_v16 = vpop.eup %4190  ;;  %v3096_v47 = vadd.f32 1.0, %v4189_v54 }
0x1ae7   :  { %v4193_v13 = vpop.eup %4192  ;;  %v3092_v24 = vadd.f32 1.0, %v4191_v16  ;;  %v3051_v2 = vpop.f32.mrf.mxu1 }
0x1ae8   :  { %v4195_v14 = vpop.eup %4194  ;;  %4202 = vrcp.f32 %v3096_v47  ;;  %v3094_v23 = vadd.f32 1.0, %v4193_v13 }
0x1ae9   :  { %v4197_v1 = vpop.eup %4196  ;;  %v3091_v0 = vadd.f32 1.0, %v4195_v14  ;;  %v3912_v22 = vpop.f32.mrf.mxu1 }
0x1aea   :  { %v4199_v3 = vpop.eup %4198  ;;  %4204 = vrcp.f32 %v3094_v23  ;;  %v3097_v4 = vadd.f32 1.0, %v4197_v1 }
0x1aeb   :  { %v4201_v25 = vpop.eup %4200  ;;  %4206 = vrcp.f32 %v3093_v31  ;;  %v3090_v62 = vadd.f32 1.0, %v4199_v3  ;;  %v3054_v20 = vpop.f32.mrf.mxu1 }
0x1aec   :  { %4208 = vrcp.f32 %v3097_v4  ;;  %v3095_v5 = vadd.f32 1.0, %v4201_v25 }
0x1aed   :  { %4210 = vrcp.f32 %v3092_v24 }
0x1aee   :  { %4212 = vrcp.f32 %v3095_v5 }
0x1aef   :  { %4214 = vrcp.f32 %v3091_v0 }
0x1af0   :  { %4216 = vrcp.f32 %v3090_v62 }
0x1af5   :  { %v4203_v10 = vpop.eup %4202 }
0x1af6   :  { %v3120_v11 = vmul.f32 %v4203_v10, %v3903_v41 }
0x1af7   :  { %v4205_v19 = vpop.eup %4204 }
0x1af8   :  { %v4207_v8 = vpop.eup %4206  ;;  %v3118_v26 = vmul.f32 %v4205_v19, %v3019_v43  ;;  %v3128_v32 = vmul.f32 %v3911_v9, %v3120_v11 }
0x1af9   :  { %v4209_v21 = vpop.eup %4208  ;;  %v3117_v48 = vmul.f32 %v4207_v8, %v3900_v40 }
0x1afa   :  { %v4211_v18 = vpop.eup %4210  ;;  %v3121_v27 = vmul.f32 %v4209_v21, %v3904_v7  ;;  %v3126_v35 = vmul.f32 %v3118_v26, %v3051_v2 }
0x1afb   :  { %v4213_v12 = vpop.eup %4212  ;;  %v3116_v33 = vmul.f32 %v4211_v18, %v5203_v61  ;;  %v3125_v17 = vmul.f32 %v3908_v15, %v3117_v48 }
0x1afc   :  { %v3119_v28 = vmul.f32 %v4213_v12, %v3022_v46  ;;  %v3129_v44 = vmul.f32 %v3912_v22, %v3121_v27  ;;  %v4215_v37 = vpop.eup %4214 }
0x1afd   :  { %v4217_v38 = vpop.eup %4216  ;;  %v3115_v39 = vmul.f32 %v4215_v37, %v5207_v56  ;;  %v3124_v40 = vmul.f32 %v3907_v51, %v3116_v33  ;;  %v3309_v51 = vld [vmem:[%s5275_s11 + $0x8] sm:$0xff] }
0x1afe   :  { %v3133_v57 = vpack.c.bf16 %v3129_v44, %v3128_v32  ;;  %v3127_v36 = vmul.f32 %v3119_v28, %v3054_v20  ;;  %v3114_v41 = vmul.f32 %v4217_v38, %v5205_v49 }
0x1aff   :  { %v3131_v59 = vpack.c.bf16 %v3125_v17, %v3124_v40  ;;  %v3123_v42 = vmul.f32 %v3115_v39, %v3038_v6 }
0x1b00   :  { %v3132_v29 = vpack.c.bf16 %v3127_v36, %v3126_v35  ;;  %3913 = vmatprep.subr.bf16.mxu0 %v3133_v57  ;;  %v3122_v43 = vmul.f32 %v3114_v41, %v3035_v58 }
0x1b01   :  { %3914 = vmatpush3.bf16.msra.mxu0 %v3133_v57 }
0x1b02   :  { %3915 = vmatprep.subr.bf16.mxu0 %v3132_v29  ;;  %v3130_v61 = vpack.c.bf16 %v3123_v42, %v3122_v43 }
0x1b05   :  { %3916 = vmatpush3.bf16.msra.mxu0 %v3132_v29 }
0x1b06   :  { %3917 = vmatprep.subr.bf16.mxu0 %v3131_v59 }
0x1b09   :  { %3918 = vmatpush3.bf16.msra.mxu0 %v3131_v59 }
0x1b0a   :  { %3919 = vmatprep.subr.bf16.mxu0 %v3130_v61 }
0x1b0d   :  { %3920 = vmatpush3.bf16.msra.mxu0 %v3130_v61 }
0x1b10   :  { %3922 = vmatmul.mubr.msk.bf16.vlgmr.msra.gmra.mxu0 %vm1599_vm5, %v3176_v60 }
0x1bd0   :  { %v3923_v56 = vpop.f32.mrf.mxu0 }
0x1bd1   :  { %v3240_v63 = vadd.f32 %v3923_v56, %v5171_v52 }
0x1bd2   :  { %v3223_v49 = vpop.f32.mrf.mxu0 }
0x1bd3   :  { %3262 = vrot.lane.b32.xlu0 %v3240_v63, %s4257_s10  ;;  %3250 = vrot.lane.b32.xlu1 %v3240_v63, %s4258_s26  ;;  %v3238_v7 = vadd.f32 %v3223_v49, %v5168_v34  ;;  %v3311_v34 = vld [vmem:[%s5275_s11 + $0x18] sm:$0xff] }
0x1bd4   :  { %v3924_v45 = vpop.f32.mrf.mxu0 }
0x1bd5   :  { %v3241_v46 = vadd.f32 %v3924_v45, %v5176_v55  ;;  %v3308_v55 = vld [vmem:[%s5275_s11] sm:$0xff] }
0x1bd6   :  { %v3226_v50 = vpop.f32.mrf.mxu0 }
0x1bd7   :  { %3286 = vrot.lane.b32.xlu0 %v3240_v63, %s4259_s27  ;;  %3274 = vrot.lane.b32.xlu1 %v3240_v63, %s4260_s28  ;;  %v3239_v52 = vadd.f32 %v3226_v50, %v5179_v30  ;;  %v3310_v30 = vld [vmem:[%s5275_s11 + $0x10] sm:$0xff] }
0x1bdb   :  { %3270 = vrot.lane.b32.xlu0 %v3238_v7, %s4260_s28  ;;  %3246 = vrot.lane.b32.xlu1 %v3238_v7, %s4258_s26 }
0x1bdf   :  { %3258 = vrot.lane.b32.xlu1 %v3238_v7, %s4257_s10  ;;  %3252 = vrot.lane.b32.xlu0 %v3241_v46, %s4258_s26 }
0x1be3   :  { %3282 = vrot.lane.b32.xlu1 %v3238_v7, %s4259_s27  ;;  %3284 = vrot.lane.b32.xlu0 %v3239_v52, %s4259_s27 }
0x1be7   :  { %3264 = vrot.lane.b32.xlu1 %v3241_v46, %s4257_s10  ;;  %3288 = vrot.lane.b32.xlu0 %v3241_v46, %s4259_s27 }
0x1beb   :  { %3344 = vperm.xlu0 %3932, %v3309_v51   ;;  %3248 = vrot.lane.b32.xlu1 %v3239_v52, %s4258_s26 }
0x1bef   :  { %3354 = vperm.xlu0 %3932, %v3311_v34   ;;  %3260 = vrot.lane.b32.xlu1 %v3239_v52, %s4257_s10 }
0x1bf3   :  { %3272 = vrot.lane.b32.xlu1 %v3239_v52, %s4260_s28 }
0x1bf7   :  { %3276 = vrot.lane.b32.xlu1 %v3241_v46, %s4260_s28 }
0x1bfb   :  { %3339 = vperm.xlu1 %3933, %v3308_v55  }
0x1bff   :  { %3349 = vperm.xlu1 %3933, %v3310_v30  }
0x1c45   :  { %v3251_v53 = vpop.permute.xlu1 %3250  ;;  %v3263_v58 = vpop.permute.xlu0 %3262 }
0x1c46   :  { %v3297_v3 = vsel %vm3294_vm6, %v3251_v53, %v3263_v58 }
0x1c49   :  { %v3275_v54 = vpop.permute.xlu1 %3274  ;;  %v3287_v13 = vpop.permute.xlu0 %3286 }
0x1c4a   :  { %v3301_v25 = vsel %vm360_vm4, %v3297_v3, %v3275_v54 }
0x1c4b   :  { %v3306_v62 = vsel %vm3303_vm7, %v3301_v25, %v3287_v13 }
0x1c4c   :  { %v3314_v11 = vmul.f32 %v3306_v62, %v3306_v62 }
0x1c4d   :  { %v3247_v16 = vpop.permute.xlu1 %3246  ;;  %v3271_v14 = vpop.permute.xlu0 %3270 }
0x1c4e   :  { %v3320_v44 = vsel %vm3316_vm8, %v3314_v11, 0.0 }
0x1c51   :  { %v3259_v47 = vpop.permute.xlu1 %3258  ;;  %v3253_v24 = vpop.permute.xlu0 %3252 }
0x1c52   :  { %v3295_v15 = vsel %vm3294_vm6, %v3247_v16, %v3259_v47 }
0x1c53   :  { %v3299_v0 = vsel %vm360_vm4, %v3295_v15, %v3271_v14 }
0x1c55   :  { %v3283_v31 = vpop.permute.xlu1 %3282  ;;  %v3285_v6 = vpop.permute.xlu0 %3284 }
0x1c56   :  { %v3304_v5 = vsel %vm3303_vm7, %v3299_v0, %v3283_v31 }
0x1c57   :  { %v3312_v2 = vmul.f32 %v3304_v5, %v3304_v5 }
0x1c59   :  { %v3265_v23 = vpop.permute.xlu1 %3264  ;;  %v3317_v26 = vsel %vm3316_vm8, %v3312_v2, 0.0  ;;  %v3289_v27 = vpop.permute.xlu0 %3288 }
0x1c5a   :  { %v3298_v22 = vsel %vm3294_vm6, %v3253_v24, %v3265_v23 }
0x1c5d   :  { %v3249_v1 = vpop.permute.xlu1 %3248 }
0x1c61   :  { %v3261_v4 = vpop.permute.xlu1 %3260 }
0x1c62   :  { %v3296_v9 = vsel %vm3294_vm6, %v3249_v1, %v3261_v4 }
0x1c65   :  { %v3273_v10 = vpop.permute.xlu1 %3272 }
0x1c66   :  { %v3300_v19 = vsel %vm360_vm4, %v3296_v9, %v3273_v10  ;;  %v3345_v59 = vpop.permute.xlu0 %3344 }
0x1c67   :  { %v3305_v8 = vsel %vm3303_vm7, %v3300_v19, %v3285_v6 }
0x1c68   :  { %v3313_v21 = vmul.f32 %v3305_v8, %v3305_v8 }
0x1c69   :  { %v3277_v18 = vpop.permute.xlu1 %3276 }
0x1c6a   :  { %v3318_v12 = vsel %vm3316_vm8, %v3313_v21, 0.0  ;;  %v3302_v48 = vsel %vm360_vm4, %v3298_v22, %v3277_v18  ;;  %v3355_v49 = vpop.permute.xlu0 %3354 }
0x1c6b   :  { %v3319_v28 = vadd.f32 %v3318_v12, %v3317_v26  ;;  %v3307_v32 = vsel %vm3303_vm7, %v3302_v48, %v3289_v27 }
0x1c6c   :  { %v3315_v37 = vmul.f32 %v3307_v32, %v3307_v32 }
0x1c6d   :  { %v3321_v20 = vadd.f32 %v3320_v44, %v3319_v28 }
0x1c6e   :  { %v3322_v33 = vsel %vm3316_vm8, %v3315_v37, 0.0 }
0x1c6f   :  { %v3323_v35 = vadd.f32 %v3322_v33, %v3321_v20 }
0x1c71   :  { %v3324_v57 = vrot.slane %v3323_v35, 4 }
0x1c73   :  { %v3325_v36 = vadd.f32 %v3324_v57, %v3323_v35 }
0x1c75   :  { %v3326_v38 = vrot.slane %v3325_v36, 2 }
0x1c76   :  { %v3340_v42 = vpop.permute.xlu1 %3339 }
0x1c77   :  { %v3327_v39 = vadd.f32 %v3326_v38, %v3325_v36 }
0x1c79   :  { %v3328_v17 = vrot.slane %v3327_v39, 1 }
0x1c7a   :  { %v3350_v7 = vpop.permute.xlu1 %3349 }
0x1c7b   :  { %v3329_v29 = vadd.f32 %v3328_v17, %v3327_v39 }
0x1c7d   :  { %v3330_v41 = vmul.f32 0.03125, %v3329_v29 }
0x1c7f   :  { %v3331_v40 = vadd.f32 1e-06, %v3330_v41 }
0x1c81   :  { %4218 = vrsqrt.f32 %v3331_v40 }
0x1c8e   :  { %v4219_v43 = vpop.eup %4218 }
0x1c8f   :  { %v3334_v61 = vmul.f32 %v4219_v43, %v3305_v8  ;;  %v3336_v60 = vmul.f32 %v4219_v43, %v3307_v32  ;;  %v3333_v56 = vmul.f32 %v4219_v43, %v3304_v5  ;;  %v3335_v63 = vmul.f32 %v4219_v43, %v3306_v62 }
0x1c91   :  { %v3358_v45 = vmul.f32 %v3345_v59, %v3334_v61  ;;  %v3360_v46 = vmul.f32 %v3355_v49, %v3336_v60  ;;  %v3357_v50 = vmul.f32 %v3340_v42, %v3333_v56  ;;  %v3359_v52 = vmul.f32 %v3350_v7, %v3335_v63 }
0x1c93   :  { %3362 = vst.msk [vmem:[%s5276_s12 + $0x8] sm:$0xff] %vm3316_vm8, %v3358_v45  ;;  %3364 = vst.msk [vmem:[%s5276_s12 + $0x18] sm:$0xff] %vm3316_vm8, %v3360_v46 }
0x1c94   :  { %3361 = vst.msk [vmem:[%s5276_s12] sm:$0xff] %vm3316_vm8, %v3357_v50  ;;  %3363 = vst.msk [vmem:[%s5276_s12 + $0x10] sm:$0xff] %vm3316_vm8, %v3359_v52 }

</bundles_post_ra>
